<compile_context>
chip_gen: v5e
topology: v5e:2x2
jax: 0.10.0
libtpu: 0.0.40
codegen_flags: <defaults>
</compile_context>

<pallas_src>
import jax
import jax.numpy as jnp
import numpy as np
from jax.experimental import pallas as pl
from jax.experimental.pallas import tpu as pltpu

N_FEATS = 6   # features[:-1] -> 6 single-channel DexiNed side outputs
K7 = 7        # SpatialGate conv kernel
K3 = 3        # SegmentationHead conv kernel
PAD = 4       # per-image zero pad covering both the 7x7 and 3x3 halos
BN_EPS = 1e-5


def _sigmoid_eup(x):
    # sigmoid(x) = 0.5*tanh(0.5*x)+0.5 : transcendental on the EUP, no divide.
    return 0.5 * jnp.tanh(0.5 * x) + 0.5


def _vmem_limit_bytes():
    # Raise the scoped-VMEM cap (defaults 16/32 MiB) while staying well under
    # each generation's physical VMEM (64 MiB v7x, 128 MiB v5e/v6e).
    try:
        cap = pltpu.get_tpu_info().vmem_capacity_bytes
    except Exception:
        cap = 64 * 1024 * 1024
    return int(min(cap * 3 // 4, 96 * 1024 * 1024))


# ---------------------------------------------------------------------------
# Host-side parameter folding
# ---------------------------------------------------------------------------
def _fold_params(w7, b7, bn, w3, b3):
    """Fold *-1, the 1/6 channel-mean factor, and the eval-mode BatchNorm
    affine into the conv weights/biases.
    TODO(synk): train-mode BatchNorm (batch statistics) is not supported."""
    gamma, beta, rmean, rvar = bn
    s = gamma / jnp.sqrt(rvar + BN_EPS)
    t = beta - rmean * s
    # channel 0 sees max(-f) = -min(f); channel 1 sees mean(-f) = -(1/6)*sum(f)
    chan_scale = jnp.array([1.0, 1.0 / N_FEATS], jnp.float32).reshape(2, 1, 1)
    w7f = -(w7[0].astype(jnp.float32)) * chan_scale * s          # (2, 7, 7)
    b7f = (b7.astype(jnp.float32) * s + t).reshape(1)
    # the seg head runs on raw*scale = -(f*scale)  ->  negate its weights too
    w3f = -(w3[0].astype(jnp.float32))                           # (6, 3, 3)
    b3f = b3.astype(jnp.float32).reshape(1)
    return w7f, b7f, w3f, b3f


def _banded_weights(wk, k, width):
    """Shift-invariant banded (Toeplitz) matrix per (channel, kh):
    B[c, kh, j, x] = wk[c, kh, j - x] for 0 <= j - x < k, else 0.
    The same small matrix serves every 128-wide output column tile."""
    j = jnp.arange(width + k - 1)[:, None]
    x = jnp.arange(width)[None, :]
    d = j - x
    band = jnp.where(((d >= 0) & (d < k))[None, None],
                     wk[:, :, jnp.clip(d, 0, k - 1)], 0.0)
    return band.astype(jnp.bfloat16)


# ---------------------------------------------------------------------------
# Path A: lane-packed VPU kernel for small images (W < 128)
# ---------------------------------------------------------------------------
def _make_packed_kernel(h, w, g):
    hp, wp = h + 2 * PAD, w + 2 * PAD
    he = h + 2
    Wg = g * wp              # packed width: g padded images along the lane axis
    Wa = Wg - 6              # extended-output width (covers every image's he x we)

    def kernel(w7_ref, b7_ref, w3_ref, b3_ref, xp_ref, out_ref):
        # ---- ChannelPool over the whole packed plane (zero pads pool to 0) --
        x0 = xp_ref[0, 0].astype(jnp.float32)
        cmin = x0
        csum = x0
        for c in range(1, N_FEATS):
            xc = xp_ref[0, c].astype(jnp.float32)
            cmin = jnp.minimum(cmin, xc)
            csum = csum + xc

        # ---- 7x7 conv (+ folded sign/mean/BN) on the packed plane -----------
        acc = [jnp.zeros((he, Wa), jnp.float32) for _ in range(4)]
        t = 0
        for ci, plane in enumerate((cmin, csum)):
            for kw in range(K7):
                strip = plane[:, kw:kw + Wa]        # one lane shift per (c, kw)
                for kh in range(K7):
                    wt = w7_ref[ci * K7 * K7 + kh * K7 + kw]
                    acc[t & 3] = acc[t & 3] + wt * strip[kh:kh + he, :]
                    t += 1
        scale = _sigmoid_eup((acc[0] + acc[1]) + (acc[2] + acc[3]) + b7_ref[0])

        # ---- gating + 3x3 head, fused per channel (no attn scratch) ---------
        acc2 = [jnp.zeros((h, Wa - 2), jnp.float32) for _ in range(4)]
        t = 0
        for c in range(N_FEATS):
            a_c = xp_ref[0, c, PAD - 1:PAD - 1 + he,
                         PAD - 1:PAD - 1 + Wa].astype(jnp.float32) * scale
            for kw in range(K3):
                strip = a_c[:, kw:kw + Wa - 2]
                for kh in range(K3):
                    wt = w3_ref[c * K3 * K3 + kh * K3 + kw]
                    acc2[t & 3] = acc2[t & 3] + wt * strip[kh:kh + h, :]
                    t += 1
        out = (acc2[0] + acc2[1]) + (acc2[2] + acc2[3]) + b3_ref[0]
        out_ref[0, 0, :, :Wa - 2] = out.astype(out_ref.dtype)
        out_ref[0, 0, :, Wa - 2:] = jnp.zeros((h, Wg - (Wa - 2)), out_ref.dtype)

    return kernel


def _pick_group(n, wp):
    """Images packed per grid step along the lane axis: lane-dense (>=128
    lanes) when possible, capped at 512 lanes, while keeping grid steps."""
    divs = [d for d in range(1, n + 1) if n % d == 0 and d * wp <= 512]
    lane_dense = [d for d in divs if d * wp >= 128]
    if lane_dense:
        return min(lane_dense)
    return max(divs) if divs else 1


def _head_small_packed(fused, w7f, b7f, w3f, b3f):
    n, _, h, w = fused.shape
    hp, wp = h + 2 * PAD, w + 2 * PAD
    g = _pick_group(n, wp)
    Wg = g * wp

    x_pad = jnp.pad(fused.astype(jnp.float32),
                    ((0, 0), (0, 0), (PAD, PAD), (PAD, PAD)))
    # (n,6,hp,wp) -> (n//g, 6, hp, g*wp): g images side by side on the lane axis
    xp = (x_pad.reshape(n // g, g, N_FEATS, hp, wp)
          .transpose(0, 2, 3, 1, 4)
          .reshape(n // g, N_FEATS, hp, Wg))

    smem = pl.BlockSpec(memory_space=pltpu.MemorySpace.SMEM)
    grid_spec = pltpu.PrefetchScalarGridSpec(
        num_scalar_prefetch=0,
        grid=(n // g,),
        in_specs=[smem, smem, smem, smem,
                  pl.BlockSpec((1, N_FEATS, hp, Wg), lambda i: (i, 0, 0, 0))],
        out_specs=pl.BlockSpec((1, 1, h, Wg), lambda i: (i, 0, 0, 0)),
    )
    out_packed = pl.pallas_call(
        _make_packed_kernel(h, w, g),
        grid_spec=grid_spec,
        out_shape=jax.ShapeDtypeStruct((n // g, 1, h, Wg), jnp.float32),
        compiler_params=pltpu.CompilerParams(
            dimension_semantics=("parallel",),
            vmem_limit_bytes=_vmem_limit_bytes()),
    )(w7f.reshape(-1), b7f, w3f.reshape(-1), b3f, xp)

    # crop the lane-packed output back to (n, 1, h, w)
    o = out_packed.reshape(n // g, h, g, wp)[:, :, :, :w]
    return o.transpose(0, 2, 1, 3).reshape(n, h, w)[:, None]


# ---------------------------------------------------------------------------
# Path B: banded-MXU kernel for wide images (W >= 128)
# ---------------------------------------------------------------------------
def _make_mxu_kernel(h, w):
    hp, wp = h + 2 * PAD, w + 2 * PAD
    he, we = h + 2, w + 2
    rt7, ct7 = min(128, he), min(128, we)
    rt3, ct3 = min(128, h), min(128, w)
    n_rt7, n_ct7 = pl.cdiv(he, rt7), pl.cdiv(we, ct7)
    n_rt3, n_ct3 = pl.cdiv(h, rt3), pl.cdiv(w, ct3)

    def kernel(b7_ref, b3_ref, x_ref, B7_ref, B3_ref, out_ref,
               pool_ref, scale_ref, attn_ref):
        # ---- (re)zero the pad rings of the persistent scratch planes -------
        # done every step (tiny) so splitting the batch axis across TensorCores
        # stays correct; the interiors below are fully rewritten each step.
        pool_ref[:, :PAD, :] = jnp.zeros((2, PAD, wp), pool_ref.dtype)
        pool_ref[:, PAD + h:, :] = jnp.zeros((2, PAD, wp), pool_ref.dtype)
        pool_ref[:, :, :PAD] = jnp.zeros((2, hp, PAD), pool_ref.dtype)
        pool_ref[:, :, PAD + w:] = jnp.zeros((2, hp, PAD), pool_ref.dtype)
        attn_ref[:, :1, :] = jnp.zeros((N_FEATS, 1, we), attn_ref.dtype)
        attn_ref[:, he - 1:, :] = jnp.zeros((N_FEATS, 1, we), attn_ref.dtype)
        attn_ref[:, :, :1] = jnp.zeros((N_FEATS, he, 1), attn_ref.dtype)
        attn_ref[:, :, we - 1:] = jnp.zeros((N_FEATS, he, 1), attn_ref.dtype)

        # ---- ChannelPool (interior only; ring stays zero) -------------------
        xc0 = x_ref[0, 0].astype(jnp.float32)
        cmin = xc0
        csum = xc0
        for c in range(1, N_FEATS):
            xc = x_ref[0, c].astype(jnp.float32)
            cmin = jnp.minimum(cmin, xc)
            csum = csum + xc
        pool_ref[0, PAD:PAD + h, PAD:PAD + w] = cmin.astype(pool_ref.dtype)
        pool_ref[1, PAD:PAD + h, PAD:PAD + w] = csum.astype(pool_ref.dtype)

        b7 = b7_ref[0]
        b3 = b3_ref[0]

        # ---- 7x7 conv (+folded BN) + sigmoid: kw contraction on the MXU -----
        def conv7_cols(x0):
            @pl.loop(0, n_rt7)
            def _(ti):
                r0 = jnp.minimum(ti * rt7, he - rt7)
                acc = jnp.zeros((rt7, ct7), jnp.float32)
                for c in range(2):
                    for kh in range(K7):
                        slab = pool_ref[c, pl.ds(r0 + kh, rt7),
                                        x0:x0 + ct7 + K7 - 1]
                        acc = acc + jnp.dot(slab, B7_ref[c, kh],
                                            preferred_element_type=jnp.float32)
                scale_ref[pl.ds(r0, rt7), x0:x0 + ct7] = _sigmoid_eup(acc + b7)

        for j in range(n_ct7):
            conv7_cols(min(j * ct7, we - ct7))   # static (clamped) lane offsets

        # ---- gate the raw features (zero ring == zero padding of attn) ------
        for c in range(N_FEATS):
            attn_ref[c, 1:1 + h, 1:1 + w] = (
                x_ref[0, c].astype(jnp.float32) * scale_ref[1:1 + h, 1:1 + w]
            ).astype(attn_ref.dtype)

        # ---- 3x3 segmentation head: kw on the MXU, store-once per tile ------
        def conv3_cols(x0):
            @pl.loop(0, n_rt3)
            def _(ti):
                r0 = jnp.minimum(ti * rt3, h - rt3)
                acc = jnp.zeros((rt3, ct3), jnp.float32)
                for c in range(N_FEATS):
                    for kh in range(K3):
                        slab = attn_ref[c, pl.ds(r0 + kh, rt3),
                                        x0:x0 + ct3 + K3 - 1]
                        acc = acc + jnp.dot(slab, B3_ref[c, kh],
                                            preferred_element_type=jnp.float32)
                out_ref[0, 0, pl.ds(r0, rt3), x0:x0 + ct3] = (
                    acc + b3).astype(out_ref.dtype)

        for j in range(n_ct3):
            conv3_cols(min(j * ct3, w - ct3))

    return kernel


def _head_wide_mxu(fused, w7f, b7f, w3f, b3f):
    n, _, h, w = fused.shape
    hp, wp = h + 2 * PAD, w + 2 * PAD
    he, we = h + 2, w + 2
    ct7, ct3 = min(128, we), min(128, w)

    B7 = _banded_weights(w7f, K7, ct7)         # (2, 7, ct7+6, ct7) bf16
    B3 = _banded_weights(w3f, K3, ct3)         # (6, 3, ct3+2, ct3) bf16
    x = fused.astype(jnp.bfloat16)             # halve DMA bytes; f32 accumulate

    smem = pl.BlockSpec(memory_space=pltpu.MemorySpace.SMEM)
    grid_spec = pltpu.PrefetchScalarGridSpec(
        num_scalar_prefetch=0,
        grid=(n,),
        in_specs=[
            smem,                                                   # b7 folded
            smem,                                                   # b3
            pl.BlockSpec((1, N_FEATS, h, w), lambda b: (b, 0, 0, 0)),
            pl.BlockSpec((2, K7, ct7 + K7 - 1, ct7), lambda b: (0, 0, 0, 0)),
            pl.BlockSpec((N_FEATS, K3, ct3 + K3 - 1, ct3),
                         lambda b: (0, 0, 0, 0)),
        ],
        out_specs=pl.BlockSpec((1, 1, h, w), lambda b: (b, 0, 0, 0)),
        scratch_shapes=[
            pltpu.VMEM((2, hp, wp), jnp.bfloat16),        # zero-ringed pool
            pltpu.VMEM((he, we), jnp.float32),            # sigmoid gate
            pltpu.VMEM((N_FEATS, he, we), jnp.bfloat16),  # gated features
        ],
    )
    return pl.pallas_call(
        _make_mxu_kernel(h, w),
        grid_spec=grid_spec,
        out_shape=jax.ShapeDtypeStruct((n, 1, h, w), jnp.float32),
        compiler_params=pltpu.CompilerParams(
            dimension_semantics=("parallel",),
            vmem_limit_bytes=_vmem_limit_bytes()),
    )(b7f, b3f, x, B7, B3)


# ---------------------------------------------------------------------------
# Routing + full forward
# ---------------------------------------------------------------------------
def segmenter_head_pallas(fused_in, w7, b7, bn, w3, b3):
    """fused_in: (N, 6, H, W) concatenated side outputs BEFORE the *-1
    (the negation is folded into the conv weights)."""
    n, c, h, w = fused_in.shape
    assert c == N_FEATS
    w7f, b7f, w3f, b3f = _fold_params(w7, b7, bn, w3, b3)
    if w < 128 and h <= 256:
        return _head_small_packed(fused_in, w7f, b7f, w3f, b3f)
    return _head_wide_mxu(fused_in, w7f, b7f, w3f, b3f)


def surrogate_dexined_encoder(x):
    # TODO(synk): the DexiNed encoder class/weights were not provided; this is
    # a frozen deterministic surrogate emitting 7 single-channel side outputs
    # at input resolution, matching the interface the segmenter expects.
    n, c, h, w = x.shape
    outs = []
    for k in range(7):
        coeff = jnp.asarray(
            [(k + 1 + ci) / (7.0 + c) for ci in range(c)], jnp.float32)
        m = jnp.tanh(jnp.einsum("nchw,c->nhw", x, coeff) + 0.1 * k)
        outs.append(m[:, None, :, :])
    return outs


def dexined_segmenter_forward(x, params):
    w7, b7, bn, w3, b3 = params
    feats = surrogate_dexined_encoder(x)
    fused_in = jnp.concatenate(feats[:-1], axis=1)         # (N, 6, H, W)
    return segmenter_head_pallas(fused_in, w7, b7, bn, w3, b3)


# ---------------------------------------------------------------------------
# Pure-JAX reference for the kernelised part (correctness check)
# ---------------------------------------------------------------------------
def _ref_head(fused_in, w7, b7, bn, w3, b3):
    f = fused_in * -1.0
    comp = jnp.concatenate(
        [jnp.max(f, axis=1, keepdims=True), jnp.mean(f, axis=1, keepdims=True)],
        axis=1)
    conv7 = jax.lax.conv_general_dilated(
        comp, w7, (1, 1), [(3, 3), (3, 3)],
        dimension_numbers=("NCHW", "OIHW", "NCHW"),
        precision=jax.lax.Precision.HIGHEST) + b7.reshape(1, 1, 1, 1)
    gamma, beta, rm, rv = bn
    x_out = (conv7 - rm) / jnp.sqrt(rv + BN_EPS) * gamma + beta
    attn = f * jax.nn.sigmoid(x_out)
    conv3 = jax.lax.conv_general_dilated(
        attn, w3, (1, 1), [(1, 1), (1, 1)],
        dimension_numbers=("NCHW", "OIHW", "NCHW"),
        precision=jax.lax.Precision.HIGHEST) + b3.reshape(1, 1, 1, 1)
    return conv3


# ---------------------------------------------------------------------------
if __name__ == "__main__":
    key = jax.random.PRNGKey(0)
    k_w7, k_w3, k_x1, k_x2 = jax.random.split(key, 4)

    # Deterministic parameters (xavier-normal convs, zero biases, non-trivial
    # eval-mode BatchNorm running stats to exercise the folding).
    std7 = (2.0 / (2 * K7 * K7 + 1 * K7 * K7)) ** 0.5
    w7 = jax.random.normal(k_w7, (1, 2, K7, K7), jnp.float32) * std7
    b7 = jnp.zeros((1,), jnp.float32)
    bn = jnp.array([0.8, 0.1, 0.2, 1.5], jnp.float32)   # gamma, beta, mean, var

    std3 = (2.0 / (N_FEATS * K3 * K3 + 1 * K3 * K3)) ** 0.5
    w3 = jax.random.normal(k_w3, (1, N_FEATS, K3, K3), jnp.float32) * std3
    b3 = jnp.zeros((1,), jnp.float32)
    params = (w7, b7, bn, w3, b3)

    # 1) Small image batch -> lane-packed VPU path (pure f32, tight tolerance).
    x = jax.random.normal(k_x1, (2, 3, 16, 16), jnp.float32)
    masks = jax.block_until_ready(dexined_segmenter_forward(x, params))
    assert masks.shape == (2, 1, 16, 16), masks.shape
    fused = jnp.concatenate(surrogate_dexined_encoder(x)[:-1], axis=1)
    ref = _ref_head(fused, w7, b7, bn, w3, b3)
    np.testing.assert_allclose(np.asarray(masks), np.asarray(ref),
                               rtol=1e-4, atol=1e-4)

    # 2) Wider image batch (W=128) -> banded-MXU path (bf16 operands, f32 acc).
    xw = jax.random.normal(k_x2, (2, 3, 16, 128), jnp.float32)
    masks_w = jax.block_until_ready(dexined_segmenter_forward(xw, params))
    assert masks_w.shape == (2, 1, 16, 128), masks_w.shape
    fused_w = jnp.concatenate(surrogate_dexined_encoder(xw)[:-1], axis=1)
    # reference fed the same bf16-rounded features; remaining diff is bf16
    # operand rounding on the MXU (f32 accumulation).
    ref_w = _ref_head(fused_w.astype(jnp.bfloat16).astype(jnp.float32),
                      w7, b7, bn, w3, b3)
    np.testing.assert_allclose(np.asarray(masks_w), np.asarray(ref_w),
                               rtol=3e-2, atol=3e-2)

    print("KERNEL_OK")
</pallas_src>

<mosaic_0001>
module attributes {stable_mosaic.version = 11 : i64} {
  func.func @kernel(%arg0: i32, %arg1: memref<98xf32, #tpu.memory_space<smem>>, %arg2: memref<1xf32, #tpu.memory_space<smem>>, %arg3: memref<54xf32, #tpu.memory_space<smem>>, %arg4: memref<1xf32, #tpu.memory_space<smem>>, %arg5: memref<1x6x24x48xf32, #tpu.memory_space<vmem>>, %arg6: memref<1x1x16x48xf32, #tpu.memory_space<vmem>>) attributes {dimension_semantics = [#tpu.dimension_semantics<parallel>], iteration_bounds = array<i64: 1>, scalar_prefetch = 0 : i64, scratch_operands = 0 : i64, tpu.core_type = #tpu.core_type<tc>, window_params = [{transform_indices = @transform_0, window_bounds = array<i64: 98>}, {transform_indices = @transform_1, window_bounds = array<i64: 1>}, {transform_indices = @transform_2, window_bounds = array<i64: 54>}, {transform_indices = @transform_3, window_bounds = array<i64: 1>}, {transform_indices = @transform_4, window_bounds = array<i64: 1, 6, 24, 48>}, {transform_indices = @transform_5, window_bounds = array<i64: 1, 1, 16, 48>}]} {
    %c0 = arith.constant 0 : index
    %c0_0 = arith.constant 0 : index
    %c0_1 = arith.constant 0 : index
    %c0_2 = arith.constant 0 : index
    %0 = vector.load %arg5[%c0, %c0_0, %c0_1, %c0_2] : memref<1x6x24x48xf32, #tpu.memory_space<vmem>>, vector<1x1x24x48xf32>
    %1 = vector.shape_cast %0 : vector<1x1x24x48xf32> to vector<24x48xf32>
    %c0_3 = arith.constant 0 : index
    %c1 = arith.constant 1 : index
    %c0_4 = arith.constant 0 : index
    %c0_5 = arith.constant 0 : index
    %2 = vector.load %arg5[%c0_3, %c1, %c0_4, %c0_5] : memref<1x6x24x48xf32, #tpu.memory_space<vmem>>, vector<1x1x24x48xf32>
    %3 = vector.shape_cast %2 : vector<1x1x24x48xf32> to vector<24x48xf32>
    %4 = arith.minimumf %1, %3 : vector<24x48xf32>
    %5 = arith.addf %1, %3 : vector<24x48xf32>
    %c0_6 = arith.constant 0 : index
    %c2 = arith.constant 2 : index
    %c0_7 = arith.constant 0 : index
    %c0_8 = arith.constant 0 : index
    %6 = vector.load %arg5[%c0_6, %c2, %c0_7, %c0_8] : memref<1x6x24x48xf32, #tpu.memory_space<vmem>>, vector<1x1x24x48xf32>
    %7 = vector.shape_cast %6 : vector<1x1x24x48xf32> to vector<24x48xf32>
    %8 = arith.minimumf %4, %7 : vector<24x48xf32>
    %9 = arith.addf %5, %7 : vector<24x48xf32>
    %c0_9 = arith.constant 0 : index
    %c3 = arith.constant 3 : index
    %c0_10 = arith.constant 0 : index
    %c0_11 = arith.constant 0 : index
    %10 = vector.load %arg5[%c0_9, %c3, %c0_10, %c0_11] : memref<1x6x24x48xf32, #tpu.memory_space<vmem>>, vector<1x1x24x48xf32>
    %11 = vector.shape_cast %10 : vector<1x1x24x48xf32> to vector<24x48xf32>
    %12 = arith.minimumf %8, %11 : vector<24x48xf32>
    %13 = arith.addf %9, %11 : vector<24x48xf32>
    %c0_12 = arith.constant 0 : index
    %c4 = arith.constant 4 : index
    %c0_13 = arith.constant 0 : index
    %c0_14 = arith.constant 0 : index
    %14 = vector.load %arg5[%c0_12, %c4, %c0_13, %c0_14] : memref<1x6x24x48xf32, #tpu.memory_space<vmem>>, vector<1x1x24x48xf32>
    %15 = vector.shape_cast %14 : vector<1x1x24x48xf32> to vector<24x48xf32>
    %16 = arith.minimumf %12, %15 : vector<24x48xf32>
    %17 = arith.addf %13, %15 : vector<24x48xf32>
    %c0_15 = arith.constant 0 : index
    %c5 = arith.constant 5 : index
    %c0_16 = arith.constant 0 : index
    %c0_17 = arith.constant 0 : index
    %18 = vector.load %arg5[%c0_15, %c5, %c0_16, %c0_17] : memref<1x6x24x48xf32, #tpu.memory_space<vmem>>, vector<1x1x24x48xf32>
    %19 = vector.shape_cast %18 : vector<1x1x24x48xf32> to vector<24x48xf32>
    %20 = arith.minimumf %16, %19 : vector<24x48xf32>
    %21 = arith.addf %17, %19 : vector<24x48xf32>
    %cst = arith.constant 0.000000e+00 : f32
    %22 = vector.broadcast %cst : f32 to vector<18x42xf32>
    %cst_18 = arith.constant 0.000000e+00 : f32
    %23 = vector.broadcast %cst_18 : f32 to vector<18x42xf32>
    %cst_19 = arith.constant 0.000000e+00 : f32
    %24 = vector.broadcast %cst_19 : f32 to vector<18x42xf32>
    %cst_20 = arith.constant 0.000000e+00 : f32
    %25 = vector.broadcast %cst_20 : f32 to vector<18x42xf32>
    %26 = vector.extract_strided_slice %20 {offsets = [0, 0], sizes = [24, 42], strides = [1, 1]} : vector<24x48xf32> to vector<24x42xf32>
    %c0_21 = arith.constant 0 : index
    %27 = memref.load %arg1[%c0_21] : memref<98xf32, #tpu.memory_space<smem>>
    %28 = vector.extract_strided_slice %26 {offsets = [0, 0], sizes = [18, 42], strides = [1, 1]} : vector<24x42xf32> to vector<18x42xf32>
    %29 = vector.broadcast %27 : f32 to vector<18x42xf32>
    %30 = arith.mulf %29, %28 : vector<18x42xf32>
    %31 = arith.addf %22, %30 : vector<18x42xf32>
    %c7 = arith.constant 7 : index
    %32 = memref.load %arg1[%c7] : memref<98xf32, #tpu.memory_space<smem>>
    %33 = vector.extract_strided_slice %26 {offsets = [1, 0], sizes = [18, 42], strides = [1, 1]} : vector<24x42xf32> to vector<18x42xf32>
    %34 = vector.broadcast %32 : f32 to vector<18x42xf32>
    %35 = arith.mulf %34, %33 : vector<18x42xf32>
    %36 = arith.addf %23, %35 : vector<18x42xf32>
    %c14 = arith.constant 14 : index
    %37 = memref.load %arg1[%c14] : memref<98xf32, #tpu.memory_space<smem>>
    %38 = vector.extract_strided_slice %26 {offsets = [2, 0], sizes = [18, 42], strides = [1, 1]} : vector<24x42xf32> to vector<18x42xf32>
    %39 = vector.broadcast %37 : f32 to vector<18x42xf32>
    %40 = arith.mulf %39, %38 : vector<18x42xf32>
    %41 = arith.addf %24, %40 : vector<18x42xf32>
    %c21 = arith.constant 21 : index
    %42 = memref.load %arg1[%c21] : memref<98xf32, #tpu.memory_space<smem>>
    %43 = vector.extract_strided_slice %26 {offsets = [3, 0], sizes = [18, 42], strides = [1, 1]} : vector<24x42xf32> to vector<18x42xf32>
    %44 = vector.broadcast %42 : f32 to vector<18x42xf32>
    %45 = arith.mulf %44, %43 : vector<18x42xf32>
    %46 = arith.addf %25, %45 : vector<18x42xf32>
    %c28 = arith.constant 28 : index
    %47 = memref.load %arg1[%c28] : memref<98xf32, #tpu.memory_space<smem>>
    %48 = vector.extract_strided_slice %26 {offsets = [4, 0], sizes = [18, 42], strides = [1, 1]} : vector<24x42xf32> to vector<18x42xf32>
    %49 = vector.broadcast %47 : f32 to vector<18x42xf32>
    %50 = arith.mulf %49, %48 : vector<18x42xf32>
    %51 = arith.addf %31, %50 : vector<18x42xf32>
    %c35 = arith.constant 35 : index
    %52 = memref.load %arg1[%c35] : memref<98xf32, #tpu.memory_space<smem>>
    %53 = vector.extract_strided_slice %26 {offsets = [5, 0], sizes = [18, 42], strides = [1, 1]} : vector<24x42xf32> to vector<18x42xf32>
    %54 = vector.broadcast %52 : f32 to vector<18x42xf32>
    %55 = arith.mulf %54, %53 : vector<18x42xf32>
    %56 = arith.addf %36, %55 : vector<18x42xf32>
    %c42 = arith.constant 42 : index
    %57 = memref.load %arg1[%c42] : memref<98xf32, #tpu.memory_space<smem>>
    %58 = vector.extract_strided_slice %26 {offsets = [6, 0], sizes = [18, 42], strides = [1, 1]} : vector<24x42xf32> to vector<18x42xf32>
    %59 = vector.broadcast %57 : f32 to vector<18x42xf32>
    %60 = arith.mulf %59, %58 : vector<18x42xf32>
    %61 = arith.addf %41, %60 : vector<18x42xf32>
    %62 = vector.extract_strided_slice %20 {offsets = [0, 1], sizes = [24, 42], strides = [1, 1]} : vector<24x48xf32> to vector<24x42xf32>
    %c1_22 = arith.constant 1 : index
    %63 = memref.load %arg1[%c1_22] : memref<98xf32, #tpu.memory_space<smem>>
    %64 = vector.extract_strided_slice %62 {offsets = [0, 0], sizes = [18, 42], strides = [1, 1]} : vector<24x42xf32> to vector<18x42xf32>
    %65 = vector.broadcast %63 : f32 to vector<18x42xf32>
    %66 = arith.mulf %65, %64 : vector<18x42xf32>
    %67 = arith.addf %46, %66 : vector<18x42xf32>
    %c8 = arith.constant 8 : index
    %68 = memref.load %arg1[%c8] : memref<98xf32, #tpu.memory_space<smem>>
    %69 = vector.extract_strided_slice %62 {offsets = [1, 0], sizes = [18, 42], strides = [1, 1]} : vector<24x42xf32> to vector<18x42xf32>
    %70 = vector.broadcast %68 : f32 to vector<18x42xf32>
    %71 = arith.mulf %70, %69 : vector<18x42xf32>
    %72 = arith.addf %51, %71 : vector<18x42xf32>
    %c15 = arith.constant 15 : index
    %73 = memref.load %arg1[%c15] : memref<98xf32, #tpu.memory_space<smem>>
    %74 = vector.extract_strided_slice %62 {offsets = [2, 0], sizes = [18, 42], strides = [1, 1]} : vector<24x42xf32> to vector<18x42xf32>
    %75 = vector.broadcast %73 : f32 to vector<18x42xf32>
    %76 = arith.mulf %75, %74 : vector<18x42xf32>
    %77 = arith.addf %56, %76 : vector<18x42xf32>
    %c22 = arith.constant 22 : index
    %78 = memref.load %arg1[%c22] : memref<98xf32, #tpu.memory_space<smem>>
    %79 = vector.extract_strided_slice %62 {offsets = [3, 0], sizes = [18, 42], strides = [1, 1]} : vector<24x42xf32> to vector<18x42xf32>
    %80 = vector.broadcast %78 : f32 to vector<18x42xf32>
    %81 = arith.mulf %80, %79 : vector<18x42xf32>
    %82 = arith.addf %61, %81 : vector<18x42xf32>
    %c29 = arith.constant 29 : index
    %83 = memref.load %arg1[%c29] : memref<98xf32, #tpu.memory_space<smem>>
    %84 = vector.extract_strided_slice %62 {offsets = [4, 0], sizes = [18, 42], strides = [1, 1]} : vector<24x42xf32> to vector<18x42xf32>
    %85 = vector.broadcast %83 : f32 to vector<18x42xf32>
    %86 = arith.mulf %85, %84 : vector<18x42xf32>
    %87 = arith.addf %67, %86 : vector<18x42xf32>
    %c36 = arith.constant 36 : index
    %88 = memref.load %arg1[%c36] : memref<98xf32, #tpu.memory_space<smem>>
    %89 = vector.extract_strided_slice %62 {offsets = [5, 0], sizes = [18, 42], strides = [1, 1]} : vector<24x42xf32> to vector<18x42xf32>
    %90 = vector.broadcast %88 : f32 to vector<18x42xf32>
    %91 = arith.mulf %90, %89 : vector<18x42xf32>
    %92 = arith.addf %72, %91 : vector<18x42xf32>
    %c43 = arith.constant 43 : index
    %93 = memref.load %arg1[%c43] : memref<98xf32, #tpu.memory_space<smem>>
    %94 = vector.extract_strided_slice %62 {offsets = [6, 0], sizes = [18, 42], strides = [1, 1]} : vector<24x42xf32> to vector<18x42xf32>
    %95 = vector.broadcast %93 : f32 to vector<18x42xf32>
    %96 = arith.mulf %95, %94 : vector<18x42xf32>
    %97 = arith.addf %77, %96 : vector<18x42xf32>
    %98 = vector.extract_strided_slice %20 {offsets = [0, 2], sizes = [24, 42], strides = [1, 1]} : vector<24x48xf32> to vector<24x42xf32>
    %c2_23 = arith.constant 2 : index
    %99 = memref.load %arg1[%c2_23] : memref<98xf32, #tpu.memory_space<smem>>
    %100 = vector.extract_strided_slice %98 {offsets = [0, 0], sizes = [18, 42], strides = [1, 1]} : vector<24x42xf32> to vector<18x42xf32>
    %101 = vector.broadcast %99 : f32 to vector<18x42xf32>
    %102 = arith.mulf %101, %100 : vector<18x42xf32>
    %103 = arith.addf %82, %102 : vector<18x42xf32>
    %c9 = arith.constant 9 : index
    %104 = memref.load %arg1[%c9] : memref<98xf32, #tpu.memory_space<smem>>
    %105 = vector.extract_strided_slice %98 {offsets = [1, 0], sizes = [18, 42], strides = [1, 1]} : vector<24x42xf32> to vector<18x42xf32>
    %106 = vector.broadcast %104 : f32 to vector<18x42xf32>
    %107 = arith.mulf %106, %105 : vector<18x42xf32>
    %108 = arith.addf %87, %107 : vector<18x42xf32>
    %c16 = arith.constant 16 : index
    %109 = memref.load %arg1[%c16] : memref<98xf32, #tpu.memory_space<smem>>
    %110 = vector.extract_strided_slice %98 {offsets = [2, 0], sizes = [18, 42], strides = [1, 1]} : vector<24x42xf32> to vector<18x42xf32>
    %111 = vector.broadcast %109 : f32 to vector<18x42xf32>
    %112 = arith.mulf %111, %110 : vector<18x42xf32>
    %113 = arith.addf %92, %112 : vector<18x42xf32>
    %c23 = arith.constant 23 : index
    %114 = memref.load %arg1[%c23] : memref<98xf32, #tpu.memory_space<smem>>
    %115 = vector.extract_strided_slice %98 {offsets = [3, 0], sizes = [18, 42], strides = [1, 1]} : vector<24x42xf32> to vector<18x42xf32>
    %116 = vector.broadcast %114 : f32 to vector<18x42xf32>
    %117 = arith.mulf %116, %115 : vector<18x42xf32>
    %118 = arith.addf %97, %117 : vector<18x42xf32>
    %c30 = arith.constant 30 : index
    %119 = memref.load %arg1[%c30] : memref<98xf32, #tpu.memory_space<smem>>
    %120 = vector.extract_strided_slice %98 {offsets = [4, 0], sizes = [18, 42], strides = [1, 1]} : vector<24x42xf32> to vector<18x42xf32>
    %121 = vector.broadcast %119 : f32 to vector<18x42xf32>
    %122 = arith.mulf %121, %120 : vector<18x42xf32>
    %123 = arith.addf %103, %122 : vector<18x42xf32>
    %c37 = arith.constant 37 : index
    %124 = memref.load %arg1[%c37] : memref<98xf32, #tpu.memory_space<smem>>
    %125 = vector.extract_strided_slice %98 {offsets = [5, 0], sizes = [18, 42], strides = [1, 1]} : vector<24x42xf32> to vector<18x42xf32>
    %126 = vector.broadcast %124 : f32 to vector<18x42xf32>
    %127 = arith.mulf %126, %125 : vector<18x42xf32>
    %128 = arith.addf %108, %127 : vector<18x42xf32>
    %c44 = arith.constant 44 : index
    %129 = memref.load %arg1[%c44] : memref<98xf32, #tpu.memory_space<smem>>
    %130 = vector.extract_strided_slice %98 {offsets = [6, 0], sizes = [18, 42], strides = [1, 1]} : vector<24x42xf32> to vector<18x42xf32>
    %131 = vector.broadcast %129 : f32 to vector<18x42xf32>
    %132 = arith.mulf %131, %130 : vector<18x42xf32>
    %133 = arith.addf %113, %132 : vector<18x42xf32>
    %134 = vector.extract_strided_slice %20 {offsets = [0, 3], sizes = [24, 42], strides = [1, 1]} : vector<24x48xf32> to vector<24x42xf32>
    %c3_24 = arith.constant 3 : index
    %135 = memref.load %arg1[%c3_24] : memref<98xf32, #tpu.memory_space<smem>>
    %136 = vector.extract_strided_slice %134 {offsets = [0, 0], sizes = [18, 42], strides = [1, 1]} : vector<24x42xf32> to vector<18x42xf32>
    %137 = vector.broadcast %135 : f32 to vector<18x42xf32>
    %138 = arith.mulf %137, %136 : vector<18x42xf32>
    %139 = arith.addf %118, %138 : vector<18x42xf32>
    %c10 = arith.constant 10 : index
    %140 = memref.load %arg1[%c10] : memref<98xf32, #tpu.memory_space<smem>>
    %141 = vector.extract_strided_slice %134 {offsets = [1, 0], sizes = [18, 42], strides = [1, 1]} : vector<24x42xf32> to vector<18x42xf32>
    %142 = vector.broadcast %140 : f32 to vector<18x42xf32>
    %143 = arith.mulf %142, %141 : vector<18x42xf32>
    %144 = arith.addf %123, %143 : vector<18x42xf32>
    %c17 = arith.constant 17 : index
    %145 = memref.load %arg1[%c17] : memref<98xf32, #tpu.memory_space<smem>>
    %146 = vector.extract_strided_slice %134 {offsets = [2, 0], sizes = [18, 42], strides = [1, 1]} : vector<24x42xf32> to vector<18x42xf32>
    %147 = vector.broadcast %145 : f32 to vector<18x42xf32>
    %148 = arith.mulf %147, %146 : vector<18x42xf32>
    %149 = arith.addf %128, %148 : vector<18x42xf32>
    %c24 = arith.constant 24 : index
    %150 = memref.load %arg1[%c24] : memref<98xf32, #tpu.memory_space<smem>>
    %151 = vector.extract_strided_slice %134 {offsets = [3, 0], sizes = [18, 42], strides = [1, 1]} : vector<24x42xf32> to vector<18x42xf32>
    %152 = vector.broadcast %150 : f32 to vector<18x42xf32>
    %153 = arith.mulf %152, %151 : vector<18x42xf32>
    %154 = arith.addf %133, %153 : vector<18x42xf32>
    %c31 = arith.constant 31 : index
    %155 = memref.load %arg1[%c31] : memref<98xf32, #tpu.memory_space<smem>>
    %156 = vector.extract_strided_slice %134 {offsets = [4, 0], sizes = [18, 42], strides = [1, 1]} : vector<24x42xf32> to vector<18x42xf32>
    %157 = vector.broadcast %155 : f32 to vector<18x42xf32>
    %158 = arith.mulf %157, %156 : vector<18x42xf32>
    %159 = arith.addf %139, %158 : vector<18x42xf32>
    %c38 = arith.constant 38 : index
    %160 = memref.load %arg1[%c38] : memref<98xf32, #tpu.memory_space<smem>>
    %161 = vector.extract_strided_slice %134 {offsets = [5, 0], sizes = [18, 42], strides = [1, 1]} : vector<24x42xf32> to vector<18x42xf32>
    %162 = vector.broadcast %160 : f32 to vector<18x42xf32>
    %163 = arith.mulf %162, %161 : vector<18x42xf32>
    %164 = arith.addf %144, %163 : vector<18x42xf32>
    %c45 = arith.constant 45 : index
    %165 = memref.load %arg1[%c45] : memref<98xf32, #tpu.memory_space<smem>>
    %166 = vector.extract_strided_slice %134 {offsets = [6, 0], sizes = [18, 42], strides = [1, 1]} : vector<24x42xf32> to vector<18x42xf32>
    %167 = vector.broadcast %165 : f32 to vector<18x42xf32>
    %168 = arith.mulf %167, %166 : vector<18x42xf32>
    %169 = arith.addf %149, %168 : vector<18x42xf32>
    %170 = vector.extract_strided_slice %20 {offsets = [0, 4], sizes = [24, 42], strides = [1, 1]} : vector<24x48xf32> to vector<24x42xf32>
    %c4_25 = arith.constant 4 : index
    %171 = memref.load %arg1[%c4_25] : memref<98xf32, #tpu.memory_space<smem>>
    %172 = vector.extract_strided_slice %170 {offsets = [0, 0], sizes = [18, 42], strides = [1, 1]} : vector<24x42xf32> to vector<18x42xf32>
    %173 = vector.broadcast %171 : f32 to vector<18x42xf32>
    %174 = arith.mulf %173, %172 : vector<18x42xf32>
    %175 = arith.addf %154, %174 : vector<18x42xf32>
    %c11 = arith.constant 11 : index
    %176 = memref.load %arg1[%c11] : memref<98xf32, #tpu.memory_space<smem>>
    %177 = vector.extract_strided_slice %170 {offsets = [1, 0], sizes = [18, 42], strides = [1, 1]} : vector<24x42xf32> to vector<18x42xf32>
    %178 = vector.broadcast %176 : f32 to vector<18x42xf32>
    %179 = arith.mulf %178, %177 : vector<18x42xf32>
    %180 = arith.addf %159, %179 : vector<18x42xf32>
    %c18 = arith.constant 18 : index
    %181 = memref.load %arg1[%c18] : memref<98xf32, #tpu.memory_space<smem>>
    %182 = vector.extract_strided_slice %170 {offsets = [2, 0], sizes = [18, 42], strides = [1, 1]} : vector<24x42xf32> to vector<18x42xf32>
    %183 = vector.broadcast %181 : f32 to vector<18x42xf32>
    %184 = arith.mulf %183, %182 : vector<18x42xf32>
    %185 = arith.addf %164, %184 : vector<18x42xf32>
    %c25 = arith.constant 25 : index
    %186 = memref.load %arg1[%c25] : memref<98xf32, #tpu.memory_space<smem>>
    %187 = vector.extract_strided_slice %170 {offsets = [3, 0], sizes = [18, 42], strides = [1, 1]} : vector<24x42xf32> to vector<18x42xf32>
    %188 = vector.broadcast %186 : f32 to vector<18x42xf32>
    %189 = arith.mulf %188, %187 : vector<18x42xf32>
    %190 = arith.addf %169, %189 : vector<18x42xf32>
    %c32 = arith.constant 32 : index
    %191 = memref.load %arg1[%c32] : memref<98xf32, #tpu.memory_space<smem>>
    %192 = vector.extract_strided_slice %170 {offsets = [4, 0], sizes = [18, 42], strides = [1, 1]} : vector<24x42xf32> to vector<18x42xf32>
    %193 = vector.broadcast %191 : f32 to vector<18x42xf32>
    %194 = arith.mulf %193, %192 : vector<18x42xf32>
    %195 = arith.addf %175, %194 : vector<18x42xf32>
    %c39 = arith.constant 39 : index
    %196 = memref.load %arg1[%c39] : memref<98xf32, #tpu.memory_space<smem>>
    %197 = vector.extract_strided_slice %170 {offsets = [5, 0], sizes = [18, 42], strides = [1, 1]} : vector<24x42xf32> to vector<18x42xf32>
    %198 = vector.broadcast %196 : f32 to vector<18x42xf32>
    %199 = arith.mulf %198, %197 : vector<18x42xf32>
    %200 = arith.addf %180, %199 : vector<18x42xf32>
    %c46 = arith.constant 46 : index
    %201 = memref.load %arg1[%c46] : memref<98xf32, #tpu.memory_space<smem>>
    %202 = vector.extract_strided_slice %170 {offsets = [6, 0], sizes = [18, 42], strides = [1, 1]} : vector<24x42xf32> to vector<18x42xf32>
    %203 = vector.broadcast %201 : f32 to vector<18x42xf32>
    %204 = arith.mulf %203, %202 : vector<18x42xf32>
    %205 = arith.addf %185, %204 : vector<18x42xf32>
    %206 = vector.extract_strided_slice %20 {offsets = [0, 5], sizes = [24, 42], strides = [1, 1]} : vector<24x48xf32> to vector<24x42xf32>
    %c5_26 = arith.constant 5 : index
    %207 = memref.load %arg1[%c5_26] : memref<98xf32, #tpu.memory_space<smem>>
    %208 = vector.extract_strided_slice %206 {offsets = [0, 0], sizes = [18, 42], strides = [1, 1]} : vector<24x42xf32> to vector<18x42xf32>
    %209 = vector.broadcast %207 : f32 to vector<18x42xf32>
    %210 = arith.mulf %209, %208 : vector<18x42xf32>
    %211 = arith.addf %190, %210 : vector<18x42xf32>
    %c12 = arith.constant 12 : index
    %212 = memref.load %arg1[%c12] : memref<98xf32, #tpu.memory_space<smem>>
    %213 = vector.extract_strided_slice %206 {offsets = [1, 0], sizes = [18, 42], strides = [1, 1]} : vector<24x42xf32> to vector<18x42xf32>
    %214 = vector.broadcast %212 : f32 to vector<18x42xf32>
    %215 = arith.mulf %214, %213 : vector<18x42xf32>
    %216 = arith.addf %195, %215 : vector<18x42xf32>
    %c19 = arith.constant 19 : index
    %217 = memref.load %arg1[%c19] : memref<98xf32, #tpu.memory_space<smem>>
    %218 = vector.extract_strided_slice %206 {offsets = [2, 0], sizes = [18, 42], strides = [1, 1]} : vector<24x42xf32> to vector<18x42xf32>
    %219 = vector.broadcast %217 : f32 to vector<18x42xf32>
    %220 = arith.mulf %219, %218 : vector<18x42xf32>
    %221 = arith.addf %200, %220 : vector<18x42xf32>
    %c26 = arith.constant 26 : index
    %222 = memref.load %arg1[%c26] : memref<98xf32, #tpu.memory_space<smem>>
    %223 = vector.extract_strided_slice %206 {offsets = [3, 0], sizes = [18, 42], strides = [1, 1]} : vector<24x42xf32> to vector<18x42xf32>
    %224 = vector.broadcast %222 : f32 to vector<18x42xf32>
    %225 = arith.mulf %224, %223 : vector<18x42xf32>
    %226 = arith.addf %205, %225 : vector<18x42xf32>
    %c33 = arith.constant 33 : index
    %227 = memref.load %arg1[%c33] : memref<98xf32, #tpu.memory_space<smem>>
    %228 = vector.extract_strided_slice %206 {offsets = [4, 0], sizes = [18, 42], strides = [1, 1]} : vector<24x42xf32> to vector<18x42xf32>
    %229 = vector.broadcast %227 : f32 to vector<18x42xf32>
    %230 = arith.mulf %229, %228 : vector<18x42xf32>
    %231 = arith.addf %211, %230 : vector<18x42xf32>
    %c40 = arith.constant 40 : index
    %232 = memref.load %arg1[%c40] : memref<98xf32, #tpu.memory_space<smem>>
    %233 = vector.extract_strided_slice %206 {offsets = [5, 0], sizes = [18, 42], strides = [1, 1]} : vector<24x42xf32> to vector<18x42xf32>
    %234 = vector.broadcast %232 : f32 to vector<18x42xf32>
    %235 = arith.mulf %234, %233 : vector<18x42xf32>
    %236 = arith.addf %216, %235 : vector<18x42xf32>
    %c47 = arith.constant 47 : index
    %237 = memref.load %arg1[%c47] : memref<98xf32, #tpu.memory_space<smem>>
    %238 = vector.extract_strided_slice %206 {offsets = [6, 0], sizes = [18, 42], strides = [1, 1]} : vector<24x42xf32> to vector<18x42xf32>
    %239 = vector.broadcast %237 : f32 to vector<18x42xf32>
    %240 = arith.mulf %239, %238 : vector<18x42xf32>
    %241 = arith.addf %221, %240 : vector<18x42xf32>
    %242 = vector.extract_strided_slice %20 {offsets = [0, 6], sizes = [24, 42], strides = [1, 1]} : vector<24x48xf32> to vector<24x42xf32>
    %c6 = arith.constant 6 : index
    %243 = memref.load %arg1[%c6] : memref<98xf32, #tpu.memory_space<smem>>
    %244 = vector.extract_strided_slice %242 {offsets = [0, 0], sizes = [18, 42], strides = [1, 1]} : vector<24x42xf32> to vector<18x42xf32>
    %245 = vector.broadcast %243 : f32 to vector<18x42xf32>
    %246 = arith.mulf %245, %244 : vector<18x42xf32>
    %247 = arith.addf %226, %246 : vector<18x42xf32>
    %c13 = arith.constant 13 : index
    %248 = memref.load %arg1[%c13] : memref<98xf32, #tpu.memory_space<smem>>
    %249 = vector.extract_strided_slice %242 {offsets = [1, 0], sizes = [18, 42], strides = [1, 1]} : vector<24x42xf32> to vector<18x42xf32>
    %250 = vector.broadcast %248 : f32 to vector<18x42xf32>
    %251 = arith.mulf %250, %249 : vector<18x42xf32>
    %252 = arith.addf %231, %251 : vector<18x42xf32>
    %c20 = arith.constant 20 : index
    %253 = memref.load %arg1[%c20] : memref<98xf32, #tpu.memory_space<smem>>
    %254 = vector.extract_strided_slice %242 {offsets = [2, 0], sizes = [18, 42], strides = [1, 1]} : vector<24x42xf32> to vector<18x42xf32>
    %255 = vector.broadcast %253 : f32 to vector<18x42xf32>
    %256 = arith.mulf %255, %254 : vector<18x42xf32>
    %257 = arith.addf %236, %256 : vector<18x42xf32>
    %c27 = arith.constant 27 : index
    %258 = memref.load %arg1[%c27] : memref<98xf32, #tpu.memory_space<smem>>
    %259 = vector.extract_strided_slice %242 {offsets = [3, 0], sizes = [18, 42], strides = [1, 1]} : vector<24x42xf32> to vector<18x42xf32>
    %260 = vector.broadcast %258 : f32 to vector<18x42xf32>
    %261 = arith.mulf %260, %259 : vector<18x42xf32>
    %262 = arith.addf %241, %261 : vector<18x42xf32>
    %c34 = arith.constant 34 : index
    %263 = memref.load %arg1[%c34] : memref<98xf32, #tpu.memory_space<smem>>
    %264 = vector.extract_strided_slice %242 {offsets = [4, 0], sizes = [18, 42], strides = [1, 1]} : vector<24x42xf32> to vector<18x42xf32>
    %265 = vector.broadcast %263 : f32 to vector<18x42xf32>
    %266 = arith.mulf %265, %264 : vector<18x42xf32>
    %267 = arith.addf %247, %266 : vector<18x42xf32>
    %c41 = arith.constant 41 : index
    %268 = memref.load %arg1[%c41] : memref<98xf32, #tpu.memory_space<smem>>
    %269 = vector.extract_strided_slice %242 {offsets = [5, 0], sizes = [18, 42], strides = [1, 1]} : vector<24x42xf32> to vector<18x42xf32>
    %270 = vector.broadcast %268 : f32 to vector<18x42xf32>
    %271 = arith.mulf %270, %269 : vector<18x42xf32>
    %272 = arith.addf %252, %271 : vector<18x42xf32>
    %c48 = arith.constant 48 : index
    %273 = memref.load %arg1[%c48] : memref<98xf32, #tpu.memory_space<smem>>
    %274 = vector.extract_strided_slice %242 {offsets = [6, 0], sizes = [18, 42], strides = [1, 1]} : vector<24x42xf32> to vector<18x42xf32>
    %275 = vector.broadcast %273 : f32 to vector<18x42xf32>
    %276 = arith.mulf %275, %274 : vector<18x42xf32>
    %277 = arith.addf %257, %276 : vector<18x42xf32>
    %278 = vector.extract_strided_slice %21 {offsets = [0, 0], sizes = [24, 42], strides = [1, 1]} : vector<24x48xf32> to vector<24x42xf32>
    %c49 = arith.constant 49 : index
    %279 = memref.load %arg1[%c49] : memref<98xf32, #tpu.memory_space<smem>>
    %280 = vector.extract_strided_slice %278 {offsets = [0, 0], sizes = [18, 42], strides = [1, 1]} : vector<24x42xf32> to vector<18x42xf32>
    %281 = vector.broadcast %279 : f32 to vector<18x42xf32>
    %282 = arith.mulf %281, %280 : vector<18x42xf32>
    %283 = arith.addf %262, %282 : vector<18x42xf32>
    %c56 = arith.constant 56 : index
    %284 = memref.load %arg1[%c56] : memref<98xf32, #tpu.memory_space<smem>>
    %285 = vector.extract_strided_slice %278 {offsets = [1, 0], sizes = [18, 42], strides = [1, 1]} : vector<24x42xf32> to vector<18x42xf32>
    %286 = vector.broadcast %284 : f32 to vector<18x42xf32>
    %287 = arith.mulf %286, %285 : vector<18x42xf32>
    %288 = arith.addf %267, %287 : vector<18x42xf32>
    %c63 = arith.constant 63 : index
    %289 = memref.load %arg1[%c63] : memref<98xf32, #tpu.memory_space<smem>>
    %290 = vector.extract_strided_slice %278 {offsets = [2, 0], sizes = [18, 42], strides = [1, 1]} : vector<24x42xf32> to vector<18x42xf32>
    %291 = vector.broadcast %289 : f32 to vector<18x42xf32>
    %292 = arith.mulf %291, %290 : vector<18x42xf32>
    %293 = arith.addf %272, %292 : vector<18x42xf32>
    %c70 = arith.constant 70 : index
    %294 = memref.load %arg1[%c70] : memref<98xf32, #tpu.memory_space<smem>>
    %295 = vector.extract_strided_slice %278 {offsets = [3, 0], sizes = [18, 42], strides = [1, 1]} : vector<24x42xf32> to vector<18x42xf32>
    %296 = vector.broadcast %294 : f32 to vector<18x42xf32>
    %297 = arith.mulf %296, %295 : vector<18x42xf32>
    %298 = arith.addf %277, %297 : vector<18x42xf32>
    %c77 = arith.constant 77 : index
    %299 = memref.load %arg1[%c77] : memref<98xf32, #tpu.memory_space<smem>>
    %300 = vector.extract_strided_slice %278 {offsets = [4, 0], sizes = [18, 42], strides = [1, 1]} : vector<24x42xf32> to vector<18x42xf32>
    %301 = vector.broadcast %299 : f32 to vector<18x42xf32>
    %302 = arith.mulf %301, %300 : vector<18x42xf32>
    %303 = arith.addf %283, %302 : vector<18x42xf32>
    %c84 = arith.constant 84 : index
    %304 = memref.load %arg1[%c84] : memref<98xf32, #tpu.memory_space<smem>>
    %305 = vector.extract_strided_slice %278 {offsets = [5, 0], sizes = [18, 42], strides = [1, 1]} : vector<24x42xf32> to vector<18x42xf32>
    %306 = vector.broadcast %304 : f32 to vector<18x42xf32>
    %307 = arith.mulf %306, %305 : vector<18x42xf32>
    %308 = arith.addf %288, %307 : vector<18x42xf32>
    %c91 = arith.constant 91 : index
    %309 = memref.load %arg1[%c91] : memref<98xf32, #tpu.memory_space<smem>>
    %310 = vector.extract_strided_slice %278 {offsets = [6, 0], sizes = [18, 42], strides = [1, 1]} : vector<24x42xf32> to vector<18x42xf32>
    %311 = vector.broadcast %309 : f32 to vector<18x42xf32>
    %312 = arith.mulf %311, %310 : vector<18x42xf32>
    %313 = arith.addf %293, %312 : vector<18x42xf32>
    %314 = vector.extract_strided_slice %21 {offsets = [0, 1], sizes = [24, 42], strides = [1, 1]} : vector<24x48xf32> to vector<24x42xf32>
    %c50 = arith.constant 50 : index
    %315 = memref.load %arg1[%c50] : memref<98xf32, #tpu.memory_space<smem>>
    %316 = vector.extract_strided_slice %314 {offsets = [0, 0], sizes = [18, 42], strides = [1, 1]} : vector<24x42xf32> to vector<18x42xf32>
    %317 = vector.broadcast %315 : f32 to vector<18x42xf32>
    %318 = arith.mulf %317, %316 : vector<18x42xf32>
    %319 = arith.addf %298, %318 : vector<18x42xf32>
    %c57 = arith.constant 57 : index
    %320 = memref.load %arg1[%c57] : memref<98xf32, #tpu.memory_space<smem>>
    %321 = vector.extract_strided_slice %314 {offsets = [1, 0], sizes = [18, 42], strides = [1, 1]} : vector<24x42xf32> to vector<18x42xf32>
    %322 = vector.broadcast %320 : f32 to vector<18x42xf32>
    %323 = arith.mulf %322, %321 : vector<18x42xf32>
    %324 = arith.addf %303, %323 : vector<18x42xf32>
    %c64 = arith.constant 64 : index
    %325 = memref.load %arg1[%c64] : memref<98xf32, #tpu.memory_space<smem>>
    %326 = vector.extract_strided_slice %314 {offsets = [2, 0], sizes = [18, 42], strides = [1, 1]} : vector<24x42xf32> to vector<18x42xf32>
    %327 = vector.broadcast %325 : f32 to vector<18x42xf32>
    %328 = arith.mulf %327, %326 : vector<18x42xf32>
    %329 = arith.addf %308, %328 : vector<18x42xf32>
    %c71 = arith.constant 71 : index
    %330 = memref.load %arg1[%c71] : memref<98xf32, #tpu.memory_space<smem>>
    %331 = vector.extract_strided_slice %314 {offsets = [3, 0], sizes = [18, 42], strides = [1, 1]} : vector<24x42xf32> to vector<18x42xf32>
    %332 = vector.broadcast %330 : f32 to vector<18x42xf32>
    %333 = arith.mulf %332, %331 : vector<18x42xf32>
    %334 = arith.addf %313, %333 : vector<18x42xf32>
    %c78 = arith.constant 78 : index
    %335 = memref.load %arg1[%c78] : memref<98xf32, #tpu.memory_space<smem>>
    %336 = vector.extract_strided_slice %314 {offsets = [4, 0], sizes = [18, 42], strides = [1, 1]} : vector<24x42xf32> to vector<18x42xf32>
    %337 = vector.broadcast %335 : f32 to vector<18x42xf32>
    %338 = arith.mulf %337, %336 : vector<18x42xf32>
    %339 = arith.addf %319, %338 : vector<18x42xf32>
    %c85 = arith.constant 85 : index
    %340 = memref.load %arg1[%c85] : memref<98xf32, #tpu.memory_space<smem>>
    %341 = vector.extract_strided_slice %314 {offsets = [5, 0], sizes = [18, 42], strides = [1, 1]} : vector<24x42xf32> to vector<18x42xf32>
    %342 = vector.broadcast %340 : f32 to vector<18x42xf32>
    %343 = arith.mulf %342, %341 : vector<18x42xf32>
    %344 = arith.addf %324, %343 : vector<18x42xf32>
    %c92 = arith.constant 92 : index
    %345 = memref.load %arg1[%c92] : memref<98xf32, #tpu.memory_space<smem>>
    %346 = vector.extract_strided_slice %314 {offsets = [6, 0], sizes = [18, 42], strides = [1, 1]} : vector<24x42xf32> to vector<18x42xf32>
    %347 = vector.broadcast %345 : f32 to vector<18x42xf32>
    %348 = arith.mulf %347, %346 : vector<18x42xf32>
    %349 = arith.addf %329, %348 : vector<18x42xf32>
    %350 = vector.extract_strided_slice %21 {offsets = [0, 2], sizes = [24, 42], strides = [1, 1]} : vector<24x48xf32> to vector<24x42xf32>
    %c51 = arith.constant 51 : index
    %351 = memref.load %arg1[%c51] : memref<98xf32, #tpu.memory_space<smem>>
    %352 = vector.extract_strided_slice %350 {offsets = [0, 0], sizes = [18, 42], strides = [1, 1]} : vector<24x42xf32> to vector<18x42xf32>
    %353 = vector.broadcast %351 : f32 to vector<18x42xf32>
    %354 = arith.mulf %353, %352 : vector<18x42xf32>
    %355 = arith.addf %334, %354 : vector<18x42xf32>
    %c58 = arith.constant 58 : index
    %356 = memref.load %arg1[%c58] : memref<98xf32, #tpu.memory_space<smem>>
    %357 = vector.extract_strided_slice %350 {offsets = [1, 0], sizes = [18, 42], strides = [1, 1]} : vector<24x42xf32> to vector<18x42xf32>
    %358 = vector.broadcast %356 : f32 to vector<18x42xf32>
    %359 = arith.mulf %358, %357 : vector<18x42xf32>
    %360 = arith.addf %339, %359 : vector<18x42xf32>
    %c65 = arith.constant 65 : index
    %361 = memref.load %arg1[%c65] : memref<98xf32, #tpu.memory_space<smem>>
    %362 = vector.extract_strided_slice %350 {offsets = [2, 0], sizes = [18, 42], strides = [1, 1]} : vector<24x42xf32> to vector<18x42xf32>
    %363 = vector.broadcast %361 : f32 to vector<18x42xf32>
    %364 = arith.mulf %363, %362 : vector<18x42xf32>
    %365 = arith.addf %344, %364 : vector<18x42xf32>
    %c72 = arith.constant 72 : index
    %366 = memref.load %arg1[%c72] : memref<98xf32, #tpu.memory_space<smem>>
    %367 = vector.extract_strided_slice %350 {offsets = [3, 0], sizes = [18, 42], strides = [1, 1]} : vector<24x42xf32> to vector<18x42xf32>
    %368 = vector.broadcast %366 : f32 to vector<18x42xf32>
    %369 = arith.mulf %368, %367 : vector<18x42xf32>
    %370 = arith.addf %349, %369 : vector<18x42xf32>
    %c79 = arith.constant 79 : index
    %371 = memref.load %arg1[%c79] : memref<98xf32, #tpu.memory_space<smem>>
    %372 = vector.extract_strided_slice %350 {offsets = [4, 0], sizes = [18, 42], strides = [1, 1]} : vector<24x42xf32> to vector<18x42xf32>
    %373 = vector.broadcast %371 : f32 to vector<18x42xf32>
    %374 = arith.mulf %373, %372 : vector<18x42xf32>
    %375 = arith.addf %355, %374 : vector<18x42xf32>
    %c86 = arith.constant 86 : index
    %376 = memref.load %arg1[%c86] : memref<98xf32, #tpu.memory_space<smem>>
    %377 = vector.extract_strided_slice %350 {offsets = [5, 0], sizes = [18, 42], strides = [1, 1]} : vector<24x42xf32> to vector<18x42xf32>
    %378 = vector.broadcast %376 : f32 to vector<18x42xf32>
    %379 = arith.mulf %378, %377 : vector<18x42xf32>
    %380 = arith.addf %360, %379 : vector<18x42xf32>
    %c93 = arith.constant 93 : index
    %381 = memref.load %arg1[%c93] : memref<98xf32, #tpu.memory_space<smem>>
    %382 = vector.extract_strided_slice %350 {offsets = [6, 0], sizes = [18, 42], strides = [1, 1]} : vector<24x42xf32> to vector<18x42xf32>
    %383 = vector.broadcast %381 : f32 to vector<18x42xf32>
    %384 = arith.mulf %383, %382 : vector<18x42xf32>
    %385 = arith.addf %365, %384 : vector<18x42xf32>
    %386 = vector.extract_strided_slice %21 {offsets = [0, 3], sizes = [24, 42], strides = [1, 1]} : vector<24x48xf32> to vector<24x42xf32>
    %c52 = arith.constant 52 : index
    %387 = memref.load %arg1[%c52] : memref<98xf32, #tpu.memory_space<smem>>
    %388 = vector.extract_strided_slice %386 {offsets = [0, 0], sizes = [18, 42], strides = [1, 1]} : vector<24x42xf32> to vector<18x42xf32>
    %389 = vector.broadcast %387 : f32 to vector<18x42xf32>
    %390 = arith.mulf %389, %388 : vector<18x42xf32>
    %391 = arith.addf %370, %390 : vector<18x42xf32>
    %c59 = arith.constant 59 : index
    %392 = memref.load %arg1[%c59] : memref<98xf32, #tpu.memory_space<smem>>
    %393 = vector.extract_strided_slice %386 {offsets = [1, 0], sizes = [18, 42], strides = [1, 1]} : vector<24x42xf32> to vector<18x42xf32>
    %394 = vector.broadcast %392 : f32 to vector<18x42xf32>
    %395 = arith.mulf %394, %393 : vector<18x42xf32>
    %396 = arith.addf %375, %395 : vector<18x42xf32>
    %c66 = arith.constant 66 : index
    %397 = memref.load %arg1[%c66] : memref<98xf32, #tpu.memory_space<smem>>
    %398 = vector.extract_strided_slice %386 {offsets = [2, 0], sizes = [18, 42], strides = [1, 1]} : vector<24x42xf32> to vector<18x42xf32>
    %399 = vector.broadcast %397 : f32 to vector<18x42xf32>
    %400 = arith.mulf %399, %398 : vector<18x42xf32>
    %401 = arith.addf %380, %400 : vector<18x42xf32>
    %c73 = arith.constant 73 : index
    %402 = memref.load %arg1[%c73] : memref<98xf32, #tpu.memory_space<smem>>
    %403 = vector.extract_strided_slice %386 {offsets = [3, 0], sizes = [18, 42], strides = [1, 1]} : vector<24x42xf32> to vector<18x42xf32>
    %404 = vector.broadcast %402 : f32 to vector<18x42xf32>
    %405 = arith.mulf %404, %403 : vector<18x42xf32>
    %406 = arith.addf %385, %405 : vector<18x42xf32>
    %c80 = arith.constant 80 : index
    %407 = memref.load %arg1[%c80] : memref<98xf32, #tpu.memory_space<smem>>
    %408 = vector.extract_strided_slice %386 {offsets = [4, 0], sizes = [18, 42], strides = [1, 1]} : vector<24x42xf32> to vector<18x42xf32>
    %409 = vector.broadcast %407 : f32 to vector<18x42xf32>
    %410 = arith.mulf %409, %408 : vector<18x42xf32>
    %411 = arith.addf %391, %410 : vector<18x42xf32>
    %c87 = arith.constant 87 : index
    %412 = memref.load %arg1[%c87] : memref<98xf32, #tpu.memory_space<smem>>
    %413 = vector.extract_strided_slice %386 {offsets = [5, 0], sizes = [18, 42], strides = [1, 1]} : vector<24x42xf32> to vector<18x42xf32>
    %414 = vector.broadcast %412 : f32 to vector<18x42xf32>
    %415 = arith.mulf %414, %413 : vector<18x42xf32>
    %416 = arith.addf %396, %415 : vector<18x42xf32>
    %c94 = arith.constant 94 : index
    %417 = memref.load %arg1[%c94] : memref<98xf32, #tpu.memory_space<smem>>
    %418 = vector.extract_strided_slice %386 {offsets = [6, 0], sizes = [18, 42], strides = [1, 1]} : vector<24x42xf32> to vector<18x42xf32>
    %419 = vector.broadcast %417 : f32 to vector<18x42xf32>
    %420 = arith.mulf %419, %418 : vector<18x42xf32>
    %421 = arith.addf %401, %420 : vector<18x42xf32>
    %422 = vector.extract_strided_slice %21 {offsets = [0, 4], sizes = [24, 42], strides = [1, 1]} : vector<24x48xf32> to vector<24x42xf32>
    %c53 = arith.constant 53 : index
    %423 = memref.load %arg1[%c53] : memref<98xf32, #tpu.memory_space<smem>>
    %424 = vector.extract_strided_slice %422 {offsets = [0, 0], sizes = [18, 42], strides = [1, 1]} : vector<24x42xf32> to vector<18x42xf32>
    %425 = vector.broadcast %423 : f32 to vector<18x42xf32>
    %426 = arith.mulf %425, %424 : vector<18x42xf32>
    %427 = arith.addf %406, %426 : vector<18x42xf32>
    %c60 = arith.constant 60 : index
    %428 = memref.load %arg1[%c60] : memref<98xf32, #tpu.memory_space<smem>>
    %429 = vector.extract_strided_slice %422 {offsets = [1, 0], sizes = [18, 42], strides = [1, 1]} : vector<24x42xf32> to vector<18x42xf32>
    %430 = vector.broadcast %428 : f32 to vector<18x42xf32>
    %431 = arith.mulf %430, %429 : vector<18x42xf32>
    %432 = arith.addf %411, %431 : vector<18x42xf32>
    %c67 = arith.constant 67 : index
    %433 = memref.load %arg1[%c67] : memref<98xf32, #tpu.memory_space<smem>>
    %434 = vector.extract_strided_slice %422 {offsets = [2, 0], sizes = [18, 42], strides = [1, 1]} : vector<24x42xf32> to vector<18x42xf32>
    %435 = vector.broadcast %433 : f32 to vector<18x42xf32>
    %436 = arith.mulf %435, %434 : vector<18x42xf32>
    %437 = arith.addf %416, %436 : vector<18x42xf32>
    %c74 = arith.constant 74 : index
    %438 = memref.load %arg1[%c74] : memref<98xf32, #tpu.memory_space<smem>>
    %439 = vector.extract_strided_slice %422 {offsets = [3, 0], sizes = [18, 42], strides = [1, 1]} : vector<24x42xf32> to vector<18x42xf32>
    %440 = vector.broadcast %438 : f32 to vector<18x42xf32>
    %441 = arith.mulf %440, %439 : vector<18x42xf32>
    %442 = arith.addf %421, %441 : vector<18x42xf32>
    %c81 = arith.constant 81 : index
    %443 = memref.load %arg1[%c81] : memref<98xf32, #tpu.memory_space<smem>>
    %444 = vector.extract_strided_slice %422 {offsets = [4, 0], sizes = [18, 42], strides = [1, 1]} : vector<24x42xf32> to vector<18x42xf32>
    %445 = vector.broadcast %443 : f32 to vector<18x42xf32>
    %446 = arith.mulf %445, %444 : vector<18x42xf32>
    %447 = arith.addf %427, %446 : vector<18x42xf32>
    %c88 = arith.constant 88 : index
    %448 = memref.load %arg1[%c88] : memref<98xf32, #tpu.memory_space<smem>>
    %449 = vector.extract_strided_slice %422 {offsets = [5, 0], sizes = [18, 42], strides = [1, 1]} : vector<24x42xf32> to vector<18x42xf32>
    %450 = vector.broadcast %448 : f32 to vector<18x42xf32>
    %451 = arith.mulf %450, %449 : vector<18x42xf32>
    %452 = arith.addf %432, %451 : vector<18x42xf32>
    %c95 = arith.constant 95 : index
    %453 = memref.load %arg1[%c95] : memref<98xf32, #tpu.memory_space<smem>>
    %454 = vector.extract_strided_slice %422 {offsets = [6, 0], sizes = [18, 42], strides = [1, 1]} : vector<24x42xf32> to vector<18x42xf32>
    %455 = vector.broadcast %453 : f32 to vector<18x42xf32>
    %456 = arith.mulf %455, %454 : vector<18x42xf32>
    %457 = arith.addf %437, %456 : vector<18x42xf32>
    %458 = vector.extract_strided_slice %21 {offsets = [0, 5], sizes = [24, 42], strides = [1, 1]} : vector<24x48xf32> to vector<24x42xf32>
    %c54 = arith.constant 54 : index
    %459 = memref.load %arg1[%c54] : memref<98xf32, #tpu.memory_space<smem>>
    %460 = vector.extract_strided_slice %458 {offsets = [0, 0], sizes = [18, 42], strides = [1, 1]} : vector<24x42xf32> to vector<18x42xf32>
    %461 = vector.broadcast %459 : f32 to vector<18x42xf32>
    %462 = arith.mulf %461, %460 : vector<18x42xf32>
    %463 = arith.addf %442, %462 : vector<18x42xf32>
    %c61 = arith.constant 61 : index
    %464 = memref.load %arg1[%c61] : memref<98xf32, #tpu.memory_space<smem>>
    %465 = vector.extract_strided_slice %458 {offsets = [1, 0], sizes = [18, 42], strides = [1, 1]} : vector<24x42xf32> to vector<18x42xf32>
    %466 = vector.broadcast %464 : f32 to vector<18x42xf32>
    %467 = arith.mulf %466, %465 : vector<18x42xf32>
    %468 = arith.addf %447, %467 : vector<18x42xf32>
    %c68 = arith.constant 68 : index
    %469 = memref.load %arg1[%c68] : memref<98xf32, #tpu.memory_space<smem>>
    %470 = vector.extract_strided_slice %458 {offsets = [2, 0], sizes = [18, 42], strides = [1, 1]} : vector<24x42xf32> to vector<18x42xf32>
    %471 = vector.broadcast %469 : f32 to vector<18x42xf32>
    %472 = arith.mulf %471, %470 : vector<18x42xf32>
    %473 = arith.addf %452, %472 : vector<18x42xf32>
    %c75 = arith.constant 75 : index
    %474 = memref.load %arg1[%c75] : memref<98xf32, #tpu.memory_space<smem>>
    %475 = vector.extract_strided_slice %458 {offsets = [3, 0], sizes = [18, 42], strides = [1, 1]} : vector<24x42xf32> to vector<18x42xf32>
    %476 = vector.broadcast %474 : f32 to vector<18x42xf32>
    %477 = arith.mulf %476, %475 : vector<18x42xf32>
    %478 = arith.addf %457, %477 : vector<18x42xf32>
    %c82 = arith.constant 82 : index
    %479 = memref.load %arg1[%c82] : memref<98xf32, #tpu.memory_space<smem>>
    %480 = vector.extract_strided_slice %458 {offsets = [4, 0], sizes = [18, 42], strides = [1, 1]} : vector<24x42xf32> to vector<18x42xf32>
    %481 = vector.broadcast %479 : f32 to vector<18x42xf32>
    %482 = arith.mulf %481, %480 : vector<18x42xf32>
    %483 = arith.addf %463, %482 : vector<18x42xf32>
    %c89 = arith.constant 89 : index
    %484 = memref.load %arg1[%c89] : memref<98xf32, #tpu.memory_space<smem>>
    %485 = vector.extract_strided_slice %458 {offsets = [5, 0], sizes = [18, 42], strides = [1, 1]} : vector<24x42xf32> to vector<18x42xf32>
    %486 = vector.broadcast %484 : f32 to vector<18x42xf32>
    %487 = arith.mulf %486, %485 : vector<18x42xf32>
    %488 = arith.addf %468, %487 : vector<18x42xf32>
    %c96 = arith.constant 96 : index
    %489 = memref.load %arg1[%c96] : memref<98xf32, #tpu.memory_space<smem>>
    %490 = vector.extract_strided_slice %458 {offsets = [6, 0], sizes = [18, 42], strides = [1, 1]} : vector<24x42xf32> to vector<18x42xf32>
    %491 = vector.broadcast %489 : f32 to vector<18x42xf32>
    %492 = arith.mulf %491, %490 : vector<18x42xf32>
    %493 = arith.addf %473, %492 : vector<18x42xf32>
    %494 = vector.extract_strided_slice %21 {offsets = [0, 6], sizes = [24, 42], strides = [1, 1]} : vector<24x48xf32> to vector<24x42xf32>
    %c55 = arith.constant 55 : index
    %495 = memref.load %arg1[%c55] : memref<98xf32, #tpu.memory_space<smem>>
    %496 = vector.extract_strided_slice %494 {offsets = [0, 0], sizes = [18, 42], strides = [1, 1]} : vector<24x42xf32> to vector<18x42xf32>
    %497 = vector.broadcast %495 : f32 to vector<18x42xf32>
    %498 = arith.mulf %497, %496 : vector<18x42xf32>
    %499 = arith.addf %478, %498 : vector<18x42xf32>
    %c62 = arith.constant 62 : index
    %500 = memref.load %arg1[%c62] : memref<98xf32, #tpu.memory_space<smem>>
    %501 = vector.extract_strided_slice %494 {offsets = [1, 0], sizes = [18, 42], strides = [1, 1]} : vector<24x42xf32> to vector<18x42xf32>
    %502 = vector.broadcast %500 : f32 to vector<18x42xf32>
    %503 = arith.mulf %502, %501 : vector<18x42xf32>
    %504 = arith.addf %483, %503 : vector<18x42xf32>
    %c69 = arith.constant 69 : index
    %505 = memref.load %arg1[%c69] : memref<98xf32, #tpu.memory_space<smem>>
    %506 = vector.extract_strided_slice %494 {offsets = [2, 0], sizes = [18, 42], strides = [1, 1]} : vector<24x42xf32> to vector<18x42xf32>
    %507 = vector.broadcast %505 : f32 to vector<18x42xf32>
    %508 = arith.mulf %507, %506 : vector<18x42xf32>
    %509 = arith.addf %488, %508 : vector<18x42xf32>
    %c76 = arith.constant 76 : index
    %510 = memref.load %arg1[%c76] : memref<98xf32, #tpu.memory_space<smem>>
    %511 = vector.extract_strided_slice %494 {offsets = [3, 0], sizes = [18, 42], strides = [1, 1]} : vector<24x42xf32> to vector<18x42xf32>
    %512 = vector.broadcast %510 : f32 to vector<18x42xf32>
    %513 = arith.mulf %512, %511 : vector<18x42xf32>
    %514 = arith.addf %493, %513 : vector<18x42xf32>
    %c83 = arith.constant 83 : index
    %515 = memref.load %arg1[%c83] : memref<98xf32, #tpu.memory_space<smem>>
    %516 = vector.extract_strided_slice %494 {offsets = [4, 0], sizes = [18, 42], strides = [1, 1]} : vector<24x42xf32> to vector<18x42xf32>
    %517 = vector.broadcast %515 : f32 to vector<18x42xf32>
    %518 = arith.mulf %517, %516 : vector<18x42xf32>
    %519 = arith.addf %499, %518 : vector<18x42xf32>
    %c90 = arith.constant 90 : index
    %520 = memref.load %arg1[%c90] : memref<98xf32, #tpu.memory_space<smem>>
    %521 = vector.extract_strided_slice %494 {offsets = [5, 0], sizes = [18, 42], strides = [1, 1]} : vector<24x42xf32> to vector<18x42xf32>
    %522 = vector.broadcast %520 : f32 to vector<18x42xf32>
    %523 = arith.mulf %522, %521 : vector<18x42xf32>
    %524 = arith.addf %504, %523 : vector<18x42xf32>
    %c97 = arith.constant 97 : index
    %525 = memref.load %arg1[%c97] : memref<98xf32, #tpu.memory_space<smem>>
    %526 = vector.extract_strided_slice %494 {offsets = [6, 0], sizes = [18, 42], strides = [1, 1]} : vector<24x42xf32> to vector<18x42xf32>
    %527 = vector.broadcast %525 : f32 to vector<18x42xf32>
    %528 = arith.mulf %527, %526 : vector<18x42xf32>
    %529 = arith.addf %509, %528 : vector<18x42xf32>
    %530 = arith.addf %524, %529 : vector<18x42xf32>
    %531 = arith.addf %514, %519 : vector<18x42xf32>
    %532 = arith.addf %530, %531 : vector<18x42xf32>
    %c0_27 = arith.constant 0 : index
    %533 = memref.load %arg2[%c0_27] : memref<1xf32, #tpu.memory_space<smem>>
    %534 = vector.broadcast %533 : f32 to vector<18x42xf32>
    %535 = arith.addf %532, %534 : vector<18x42xf32>
    %cst_28 = arith.constant 5.000000e-01 : f32
    %536 = vector.broadcast %cst_28 : f32 to vector<18x42xf32>
    %537 = arith.mulf %536, %535 : vector<18x42xf32>
    %538 = math.tanh %537 : vector<18x42xf32>
    %cst_29 = arith.constant 5.000000e-01 : f32
    %539 = vector.broadcast %cst_29 : f32 to vector<18x42xf32>
    %540 = arith.mulf %539, %538 : vector<18x42xf32>
    %cst_30 = arith.constant 5.000000e-01 : f32
    %541 = vector.broadcast %cst_30 : f32 to vector<18x42xf32>
    %542 = arith.addf %540, %541 : vector<18x42xf32>
    %cst_31 = arith.constant 0.000000e+00 : f32
    %543 = vector.broadcast %cst_31 : f32 to vector<16x40xf32>
    %cst_32 = arith.constant 0.000000e+00 : f32
    %544 = vector.broadcast %cst_32 : f32 to vector<16x40xf32>
    %cst_33 = arith.constant 0.000000e+00 : f32
    %545 = vector.broadcast %cst_33 : f32 to vector<16x40xf32>
    %cst_34 = arith.constant 0.000000e+00 : f32
    %546 = vector.broadcast %cst_34 : f32 to vector<16x40xf32>
    %c0_35 = arith.constant 0 : index
    %c0_36 = arith.constant 0 : index
    %c3_37 = arith.constant 3 : index
    %c3_38 = arith.constant 3 : index
    %547 = vector.load %arg5[%c0_35, %c0_36, %c3_37, %c3_38] : memref<1x6x24x48xf32, #tpu.memory_space<vmem>>, vector<1x1x18x42xf32>
    %548 = vector.shape_cast %547 : vector<1x1x18x42xf32> to vector<18x42xf32>
    %549 = arith.mulf %548, %542 : vector<18x42xf32>
    %550 = vector.extract_strided_slice %549 {offsets = [0, 0], sizes = [18, 40], strides = [1, 1]} : vector<18x42xf32> to vector<18x40xf32>
    %c0_39 = arith.constant 0 : index
    %551 = memref.load %arg3[%c0_39] : memref<54xf32, #tpu.memory_space<smem>>
    %552 = vector.extract_strided_slice %550 {offsets = [0, 0], sizes = [16, 40], strides = [1, 1]} : vector<18x40xf32> to vector<16x40xf32>
    %553 = vector.broadcast %551 : f32 to vector<16x40xf32>
    %554 = arith.mulf %553, %552 : vector<16x40xf32>
    %555 = arith.addf %543, %554 : vector<16x40xf32>
    %c3_40 = arith.constant 3 : index
    %556 = memref.load %arg3[%c3_40] : memref<54xf32, #tpu.memory_space<smem>>
    %557 = vector.extract_strided_slice %550 {offsets = [1, 0], sizes = [16, 40], strides = [1, 1]} : vector<18x40xf32> to vector<16x40xf32>
    %558 = vector.broadcast %556 : f32 to vector<16x40xf32>
    %559 = arith.mulf %558, %557 : vector<16x40xf32>
    %560 = arith.addf %544, %559 : vector<16x40xf32>
    %c6_41 = arith.constant 6 : index
    %561 = memref.load %arg3[%c6_41] : memref<54xf32, #tpu.memory_space<smem>>
    %562 = vector.extract_strided_slice %550 {offsets = [2, 0], sizes = [16, 40], strides = [1, 1]} : vector<18x40xf32> to vector<16x40xf32>
    %563 = vector.broadcast %561 : f32 to vector<16x40xf32>
    %564 = arith.mulf %563, %562 : vector<16x40xf32>
    %565 = arith.addf %545, %564 : vector<16x40xf32>
    %566 = vector.extract_strided_slice %549 {offsets = [0, 1], sizes = [18, 40], strides = [1, 1]} : vector<18x42xf32> to vector<18x40xf32>
    %c1_42 = arith.constant 1 : index
    %567 = memref.load %arg3[%c1_42] : memref<54xf32, #tpu.memory_space<smem>>
    %568 = vector.extract_strided_slice %566 {offsets = [0, 0], sizes = [16, 40], strides = [1, 1]} : vector<18x40xf32> to vector<16x40xf32>
    %569 = vector.broadcast %567 : f32 to vector<16x40xf32>
    %570 = arith.mulf %569, %568 : vector<16x40xf32>
    %571 = arith.addf %546, %570 : vector<16x40xf32>
    %c4_43 = arith.constant 4 : index
    %572 = memref.load %arg3[%c4_43] : memref<54xf32, #tpu.memory_space<smem>>
    %573 = vector.extract_strided_slice %566 {offsets = [1, 0], sizes = [16, 40], strides = [1, 1]} : vector<18x40xf32> to vector<16x40xf32>
    %574 = vector.broadcast %572 : f32 to vector<16x40xf32>
    %575 = arith.mulf %574, %573 : vector<16x40xf32>
    %576 = arith.addf %555, %575 : vector<16x40xf32>
    %c7_44 = arith.constant 7 : index
    %577 = memref.load %arg3[%c7_44] : memref<54xf32, #tpu.memory_space<smem>>
    %578 = vector.extract_strided_slice %566 {offsets = [2, 0], sizes = [16, 40], strides = [1, 1]} : vector<18x40xf32> to vector<16x40xf32>
    %579 = vector.broadcast %577 : f32 to vector<16x40xf32>
    %580 = arith.mulf %579, %578 : vector<16x40xf32>
    %581 = arith.addf %560, %580 : vector<16x40xf32>
    %582 = vector.extract_strided_slice %549 {offsets = [0, 2], sizes = [18, 40], strides = [1, 1]} : vector<18x42xf32> to vector<18x40xf32>
    %c2_45 = arith.constant 2 : index
    %583 = memref.load %arg3[%c2_45] : memref<54xf32, #tpu.memory_space<smem>>
    %584 = vector.extract_strided_slice %582 {offsets = [0, 0], sizes = [16, 40], strides = [1, 1]} : vector<18x40xf32> to vector<16x40xf32>
    %585 = vector.broadcast %583 : f32 to vector<16x40xf32>
    %586 = arith.mulf %585, %584 : vector<16x40xf32>
    %587 = arith.addf %565, %586 : vector<16x40xf32>
    %c5_46 = arith.constant 5 : index
    %588 = memref.load %arg3[%c5_46] : memref<54xf32, #tpu.memory_space<smem>>
    %589 = vector.extract_strided_slice %582 {offsets = [1, 0], sizes = [16, 40], strides = [1, 1]} : vector<18x40xf32> to vector<16x40xf32>
    %590 = vector.broadcast %588 : f32 to vector<16x40xf32>
    %591 = arith.mulf %590, %589 : vector<16x40xf32>
    %592 = arith.addf %571, %591 : vector<16x40xf32>
    %c8_47 = arith.constant 8 : index
    %593 = memref.load %arg3[%c8_47] : memref<54xf32, #tpu.memory_space<smem>>
    %594 = vector.extract_strided_slice %582 {offsets = [2, 0], sizes = [16, 40], strides = [1, 1]} : vector<18x40xf32> to vector<16x40xf32>
    %595 = vector.broadcast %593 : f32 to vector<16x40xf32>
    %596 = arith.mulf %595, %594 : vector<16x40xf32>
    %597 = arith.addf %576, %596 : vector<16x40xf32>
    %c0_48 = arith.constant 0 : index
    %c1_49 = arith.constant 1 : index
    %c3_50 = arith.constant 3 : index
    %c3_51 = arith.constant 3 : index
    %598 = vector.load %arg5[%c0_48, %c1_49, %c3_50, %c3_51] : memref<1x6x24x48xf32, #tpu.memory_space<vmem>>, vector<1x1x18x42xf32>
    %599 = vector.shape_cast %598 : vector<1x1x18x42xf32> to vector<18x42xf32>
    %600 = arith.mulf %599, %542 : vector<18x42xf32>
    %601 = vector.extract_strided_slice %600 {offsets = [0, 0], sizes = [18, 40], strides = [1, 1]} : vector<18x42xf32> to vector<18x40xf32>
    %c9_52 = arith.constant 9 : index
    %602 = memref.load %arg3[%c9_52] : memref<54xf32, #tpu.memory_space<smem>>
    %603 = vector.extract_strided_slice %601 {offsets = [0, 0], sizes = [16, 40], strides = [1, 1]} : vector<18x40xf32> to vector<16x40xf32>
    %604 = vector.broadcast %602 : f32 to vector<16x40xf32>
    %605 = arith.mulf %604, %603 : vector<16x40xf32>
    %606 = arith.addf %581, %605 : vector<16x40xf32>
    %c12_53 = arith.constant 12 : index
    %607 = memref.load %arg3[%c12_53] : memref<54xf32, #tpu.memory_space<smem>>
    %608 = vector.extract_strided_slice %601 {offsets = [1, 0], sizes = [16, 40], strides = [1, 1]} : vector<18x40xf32> to vector<16x40xf32>
    %609 = vector.broadcast %607 : f32 to vector<16x40xf32>
    %610 = arith.mulf %609, %608 : vector<16x40xf32>
    %611 = arith.addf %587, %610 : vector<16x40xf32>
    %c15_54 = arith.constant 15 : index
    %612 = memref.load %arg3[%c15_54] : memref<54xf32, #tpu.memory_space<smem>>
    %613 = vector.extract_strided_slice %601 {offsets = [2, 0], sizes = [16, 40], strides = [1, 1]} : vector<18x40xf32> to vector<16x40xf32>
    %614 = vector.broadcast %612 : f32 to vector<16x40xf32>
    %615 = arith.mulf %614, %613 : vector<16x40xf32>
    %616 = arith.addf %592, %615 : vector<16x40xf32>
    %617 = vector.extract_strided_slice %600 {offsets = [0, 1], sizes = [18, 40], strides = [1, 1]} : vector<18x42xf32> to vector<18x40xf32>
    %c10_55 = arith.constant 10 : index
    %618 = memref.load %arg3[%c10_55] : memref<54xf32, #tpu.memory_space<smem>>
    %619 = vector.extract_strided_slice %617 {offsets = [0, 0], sizes = [16, 40], strides = [1, 1]} : vector<18x40xf32> to vector<16x40xf32>
    %620 = vector.broadcast %618 : f32 to vector<16x40xf32>
    %621 = arith.mulf %620, %619 : vector<16x40xf32>
    %622 = arith.addf %597, %621 : vector<16x40xf32>
    %c13_56 = arith.constant 13 : index
    %623 = memref.load %arg3[%c13_56] : memref<54xf32, #tpu.memory_space<smem>>
    %624 = vector.extract_strided_slice %617 {offsets = [1, 0], sizes = [16, 40], strides = [1, 1]} : vector<18x40xf32> to vector<16x40xf32>
    %625 = vector.broadcast %623 : f32 to vector<16x40xf32>
    %626 = arith.mulf %625, %624 : vector<16x40xf32>
    %627 = arith.addf %606, %626 : vector<16x40xf32>
    %c16_57 = arith.constant 16 : index
    %628 = memref.load %arg3[%c16_57] : memref<54xf32, #tpu.memory_space<smem>>
    %629 = vector.extract_strided_slice %617 {offsets = [2, 0], sizes = [16, 40], strides = [1, 1]} : vector<18x40xf32> to vector<16x40xf32>
    %630 = vector.broadcast %628 : f32 to vector<16x40xf32>
    %631 = arith.mulf %630, %629 : vector<16x40xf32>
    %632 = arith.addf %611, %631 : vector<16x40xf32>
    %633 = vector.extract_strided_slice %600 {offsets = [0, 2], sizes = [18, 40], strides = [1, 1]} : vector<18x42xf32> to vector<18x40xf32>
    %c11_58 = arith.constant 11 : index
    %634 = memref.load %arg3[%c11_58] : memref<54xf32, #tpu.memory_space<smem>>
    %635 = vector.extract_strided_slice %633 {offsets = [0, 0], sizes = [16, 40], strides = [1, 1]} : vector<18x40xf32> to vector<16x40xf32>
    %636 = vector.broadcast %634 : f32 to vector<16x40xf32>
    %637 = arith.mulf %636, %635 : vector<16x40xf32>
    %638 = arith.addf %616, %637 : vector<16x40xf32>
    %c14_59 = arith.constant 14 : index
    %639 = memref.load %arg3[%c14_59] : memref<54xf32, #tpu.memory_space<smem>>
    %640 = vector.extract_strided_slice %633 {offsets = [1, 0], sizes = [16, 40], strides = [1, 1]} : vector<18x40xf32> to vector<16x40xf32>
    %641 = vector.broadcast %639 : f32 to vector<16x40xf32>
    %642 = arith.mulf %641, %640 : vector<16x40xf32>
    %643 = arith.addf %622, %642 : vector<16x40xf32>
    %c17_60 = arith.constant 17 : index
    %644 = memref.load %arg3[%c17_60] : memref<54xf32, #tpu.memory_space<smem>>
    %645 = vector.extract_strided_slice %633 {offsets = [2, 0], sizes = [16, 40], strides = [1, 1]} : vector<18x40xf32> to vector<16x40xf32>
    %646 = vector.broadcast %644 : f32 to vector<16x40xf32>
    %647 = arith.mulf %646, %645 : vector<16x40xf32>
    %648 = arith.addf %627, %647 : vector<16x40xf32>
    %c0_61 = arith.constant 0 : index
    %c2_62 = arith.constant 2 : index
    %c3_63 = arith.constant 3 : index
    %c3_64 = arith.constant 3 : index
    %649 = vector.load %arg5[%c0_61, %c2_62, %c3_63, %c3_64] : memref<1x6x24x48xf32, #tpu.memory_space<vmem>>, vector<1x1x18x42xf32>
    %650 = vector.shape_cast %649 : vector<1x1x18x42xf32> to vector<18x42xf32>
    %651 = arith.mulf %650, %542 : vector<18x42xf32>
    %652 = vector.extract_strided_slice %651 {offsets = [0, 0], sizes = [18, 40], strides = [1, 1]} : vector<18x42xf32> to vector<18x40xf32>
    %c18_65 = arith.constant 18 : index
    %653 = memref.load %arg3[%c18_65] : memref<54xf32, #tpu.memory_space<smem>>
    %654 = vector.extract_strided_slice %652 {offsets = [0, 0], sizes = [16, 40], strides = [1, 1]} : vector<18x40xf32> to vector<16x40xf32>
    %655 = vector.broadcast %653 : f32 to vector<16x40xf32>
    %656 = arith.mulf %655, %654 : vector<16x40xf32>
    %657 = arith.addf %632, %656 : vector<16x40xf32>
    %c21_66 = arith.constant 21 : index
    %658 = memref.load %arg3[%c21_66] : memref<54xf32, #tpu.memory_space<smem>>
    %659 = vector.extract_strided_slice %652 {offsets = [1, 0], sizes = [16, 40], strides = [1, 1]} : vector<18x40xf32> to vector<16x40xf32>
    %660 = vector.broadcast %658 : f32 to vector<16x40xf32>
    %661 = arith.mulf %660, %659 : vector<16x40xf32>
    %662 = arith.addf %638, %661 : vector<16x40xf32>
    %c24_67 = arith.constant 24 : index
    %663 = memref.load %arg3[%c24_67] : memref<54xf32, #tpu.memory_space<smem>>
    %664 = vector.extract_strided_slice %652 {offsets = [2, 0], sizes = [16, 40], strides = [1, 1]} : vector<18x40xf32> to vector<16x40xf32>
    %665 = vector.broadcast %663 : f32 to vector<16x40xf32>
    %666 = arith.mulf %665, %664 : vector<16x40xf32>
    %667 = arith.addf %643, %666 : vector<16x40xf32>
    %668 = vector.extract_strided_slice %651 {offsets = [0, 1], sizes = [18, 40], strides = [1, 1]} : vector<18x42xf32> to vector<18x40xf32>
    %c19_68 = arith.constant 19 : index
    %669 = memref.load %arg3[%c19_68] : memref<54xf32, #tpu.memory_space<smem>>
    %670 = vector.extract_strided_slice %668 {offsets = [0, 0], sizes = [16, 40], strides = [1, 1]} : vector<18x40xf32> to vector<16x40xf32>
    %671 = vector.broadcast %669 : f32 to vector<16x40xf32>
    %672 = arith.mulf %671, %670 : vector<16x40xf32>
    %673 = arith.addf %648, %672 : vector<16x40xf32>
    %c22_69 = arith.constant 22 : index
    %674 = memref.load %arg3[%c22_69] : memref<54xf32, #tpu.memory_space<smem>>
    %675 = vector.extract_strided_slice %668 {offsets = [1, 0], sizes = [16, 40], strides = [1, 1]} : vector<18x40xf32> to vector<16x40xf32>
    %676 = vector.broadcast %674 : f32 to vector<16x40xf32>
    %677 = arith.mulf %676, %675 : vector<16x40xf32>
    %678 = arith.addf %657, %677 : vector<16x40xf32>
    %c25_70 = arith.constant 25 : index
    %679 = memref.load %arg3[%c25_70] : memref<54xf32, #tpu.memory_space<smem>>
    %680 = vector.extract_strided_slice %668 {offsets = [2, 0], sizes = [16, 40], strides = [1, 1]} : vector<18x40xf32> to vector<16x40xf32>
    %681 = vector.broadcast %679 : f32 to vector<16x40xf32>
    %682 = arith.mulf %681, %680 : vector<16x40xf32>
    %683 = arith.addf %662, %682 : vector<16x40xf32>
    %684 = vector.extract_strided_slice %651 {offsets = [0, 2], sizes = [18, 40], strides = [1, 1]} : vector<18x42xf32> to vector<18x40xf32>
    %c20_71 = arith.constant 20 : index
    %685 = memref.load %arg3[%c20_71] : memref<54xf32, #tpu.memory_space<smem>>
    %686 = vector.extract_strided_slice %684 {offsets = [0, 0], sizes = [16, 40], strides = [1, 1]} : vector<18x40xf32> to vector<16x40xf32>
    %687 = vector.broadcast %685 : f32 to vector<16x40xf32>
    %688 = arith.mulf %687, %686 : vector<16x40xf32>
    %689 = arith.addf %667, %688 : vector<16x40xf32>
    %c23_72 = arith.constant 23 : index
    %690 = memref.load %arg3[%c23_72] : memref<54xf32, #tpu.memory_space<smem>>
    %691 = vector.extract_strided_slice %684 {offsets = [1, 0], sizes = [16, 40], strides = [1, 1]} : vector<18x40xf32> to vector<16x40xf32>
    %692 = vector.broadcast %690 : f32 to vector<16x40xf32>
    %693 = arith.mulf %692, %691 : vector<16x40xf32>
    %694 = arith.addf %673, %693 : vector<16x40xf32>
    %c26_73 = arith.constant 26 : index
    %695 = memref.load %arg3[%c26_73] : memref<54xf32, #tpu.memory_space<smem>>
    %696 = vector.extract_strided_slice %684 {offsets = [2, 0], sizes = [16, 40], strides = [1, 1]} : vector<18x40xf32> to vector<16x40xf32>
    %697 = vector.broadcast %695 : f32 to vector<16x40xf32>
    %698 = arith.mulf %697, %696 : vector<16x40xf32>
    %699 = arith.addf %678, %698 : vector<16x40xf32>
    %c0_74 = arith.constant 0 : index
    %c3_75 = arith.constant 3 : index
    %c3_76 = arith.constant 3 : index
    %c3_77 = arith.constant 3 : index
    %700 = vector.load %arg5[%c0_74, %c3_75, %c3_76, %c3_77] : memref<1x6x24x48xf32, #tpu.memory_space<vmem>>, vector<1x1x18x42xf32>
    %701 = vector.shape_cast %700 : vector<1x1x18x42xf32> to vector<18x42xf32>
    %702 = arith.mulf %701, %542 : vector<18x42xf32>
    %703 = vector.extract_strided_slice %702 {offsets = [0, 0], sizes = [18, 40], strides = [1, 1]} : vector<18x42xf32> to vector<18x40xf32>
    %c27_78 = arith.constant 27 : index
    %704 = memref.load %arg3[%c27_78] : memref<54xf32, #tpu.memory_space<smem>>
    %705 = vector.extract_strided_slice %703 {offsets = [0, 0], sizes = [16, 40], strides = [1, 1]} : vector<18x40xf32> to vector<16x40xf32>
    %706 = vector.broadcast %704 : f32 to vector<16x40xf32>
    %707 = arith.mulf %706, %705 : vector<16x40xf32>
    %708 = arith.addf %683, %707 : vector<16x40xf32>
    %c30_79 = arith.constant 30 : index
    %709 = memref.load %arg3[%c30_79] : memref<54xf32, #tpu.memory_space<smem>>
    %710 = vector.extract_strided_slice %703 {offsets = [1, 0], sizes = [16, 40], strides = [1, 1]} : vector<18x40xf32> to vector<16x40xf32>
    %711 = vector.broadcast %709 : f32 to vector<16x40xf32>
    %712 = arith.mulf %711, %710 : vector<16x40xf32>
    %713 = arith.addf %689, %712 : vector<16x40xf32>
    %c33_80 = arith.constant 33 : index
    %714 = memref.load %arg3[%c33_80] : memref<54xf32, #tpu.memory_space<smem>>
    %715 = vector.extract_strided_slice %703 {offsets = [2, 0], sizes = [16, 40], strides = [1, 1]} : vector<18x40xf32> to vector<16x40xf32>
    %716 = vector.broadcast %714 : f32 to vector<16x40xf32>
    %717 = arith.mulf %716, %715 : vector<16x40xf32>
    %718 = arith.addf %694, %717 : vector<16x40xf32>
    %719 = vector.extract_strided_slice %702 {offsets = [0, 1], sizes = [18, 40], strides = [1, 1]} : vector<18x42xf32> to vector<18x40xf32>
    %c28_81 = arith.constant 28 : index
    %720 = memref.load %arg3[%c28_81] : memref<54xf32, #tpu.memory_space<smem>>
    %721 = vector.extract_strided_slice %719 {offsets = [0, 0], sizes = [16, 40], strides = [1, 1]} : vector<18x40xf32> to vector<16x40xf32>
    %722 = vector.broadcast %720 : f32 to vector<16x40xf32>
    %723 = arith.mulf %722, %721 : vector<16x40xf32>
    %724 = arith.addf %699, %723 : vector<16x40xf32>
    %c31_82 = arith.constant 31 : index
    %725 = memref.load %arg3[%c31_82] : memref<54xf32, #tpu.memory_space<smem>>
    %726 = vector.extract_strided_slice %719 {offsets = [1, 0], sizes = [16, 40], strides = [1, 1]} : vector<18x40xf32> to vector<16x40xf32>
    %727 = vector.broadcast %725 : f32 to vector<16x40xf32>
    %728 = arith.mulf %727, %726 : vector<16x40xf32>
    %729 = arith.addf %708, %728 : vector<16x40xf32>
    %c34_83 = arith.constant 34 : index
    %730 = memref.load %arg3[%c34_83] : memref<54xf32, #tpu.memory_space<smem>>
    %731 = vector.extract_strided_slice %719 {offsets = [2, 0], sizes = [16, 40], strides = [1, 1]} : vector<18x40xf32> to vector<16x40xf32>
    %732 = vector.broadcast %730 : f32 to vector<16x40xf32>
    %733 = arith.mulf %732, %731 : vector<16x40xf32>
    %734 = arith.addf %713, %733 : vector<16x40xf32>
    %735 = vector.extract_strided_slice %702 {offsets = [0, 2], sizes = [18, 40], strides = [1, 1]} : vector<18x42xf32> to vector<18x40xf32>
    %c29_84 = arith.constant 29 : index
    %736 = memref.load %arg3[%c29_84] : memref<54xf32, #tpu.memory_space<smem>>
    %737 = vector.extract_strided_slice %735 {offsets = [0, 0], sizes = [16, 40], strides = [1, 1]} : vector<18x40xf32> to vector<16x40xf32>
    %738 = vector.broadcast %736 : f32 to vector<16x40xf32>
    %739 = arith.mulf %738, %737 : vector<16x40xf32>
    %740 = arith.addf %718, %739 : vector<16x40xf32>
    %c32_85 = arith.constant 32 : index
    %741 = memref.load %arg3[%c32_85] : memref<54xf32, #tpu.memory_space<smem>>
    %742 = vector.extract_strided_slice %735 {offsets = [1, 0], sizes = [16, 40], strides = [1, 1]} : vector<18x40xf32> to vector<16x40xf32>
    %743 = vector.broadcast %741 : f32 to vector<16x40xf32>
    %744 = arith.mulf %743, %742 : vector<16x40xf32>
    %745 = arith.addf %724, %744 : vector<16x40xf32>
    %c35_86 = arith.constant 35 : index
    %746 = memref.load %arg3[%c35_86] : memref<54xf32, #tpu.memory_space<smem>>
    %747 = vector.extract_strided_slice %735 {offsets = [2, 0], sizes = [16, 40], strides = [1, 1]} : vector<18x40xf32> to vector<16x40xf32>
    %748 = vector.broadcast %746 : f32 to vector<16x40xf32>
    %749 = arith.mulf %748, %747 : vector<16x40xf32>
    %750 = arith.addf %729, %749 : vector<16x40xf32>
    %c0_87 = arith.constant 0 : index
    %c4_88 = arith.constant 4 : index
    %c3_89 = arith.constant 3 : index
    %c3_90 = arith.constant 3 : index
    %751 = vector.load %arg5[%c0_87, %c4_88, %c3_89, %c3_90] : memref<1x6x24x48xf32, #tpu.memory_space<vmem>>, vector<1x1x18x42xf32>
    %752 = vector.shape_cast %751 : vector<1x1x18x42xf32> to vector<18x42xf32>
    %753 = arith.mulf %752, %542 : vector<18x42xf32>
    %754 = vector.extract_strided_slice %753 {offsets = [0, 0], sizes = [18, 40], strides = [1, 1]} : vector<18x42xf32> to vector<18x40xf32>
    %c36_91 = arith.constant 36 : index
    %755 = memref.load %arg3[%c36_91] : memref<54xf32, #tpu.memory_space<smem>>
    %756 = vector.extract_strided_slice %754 {offsets = [0, 0], sizes = [16, 40], strides = [1, 1]} : vector<18x40xf32> to vector<16x40xf32>
    %757 = vector.broadcast %755 : f32 to vector<16x40xf32>
    %758 = arith.mulf %757, %756 : vector<16x40xf32>
    %759 = arith.addf %734, %758 : vector<16x40xf32>
    %c39_92 = arith.constant 39 : index
    %760 = memref.load %arg3[%c39_92] : memref<54xf32, #tpu.memory_space<smem>>
    %761 = vector.extract_strided_slice %754 {offsets = [1, 0], sizes = [16, 40], strides = [1, 1]} : vector<18x40xf32> to vector<16x40xf32>
    %762 = vector.broadcast %760 : f32 to vector<16x40xf32>
    %763 = arith.mulf %762, %761 : vector<16x40xf32>
    %764 = arith.addf %740, %763 : vector<16x40xf32>
    %c42_93 = arith.constant 42 : index
    %765 = memref.load %arg3[%c42_93] : memref<54xf32, #tpu.memory_space<smem>>
    %766 = vector.extract_strided_slice %754 {offsets = [2, 0], sizes = [16, 40], strides = [1, 1]} : vector<18x40xf32> to vector<16x40xf32>
    %767 = vector.broadcast %765 : f32 to vector<16x40xf32>
    %768 = arith.mulf %767, %766 : vector<16x40xf32>
    %769 = arith.addf %745, %768 : vector<16x40xf32>
    %770 = vector.extract_strided_slice %753 {offsets = [0, 1], sizes = [18, 40], strides = [1, 1]} : vector<18x42xf32> to vector<18x40xf32>
    %c37_94 = arith.constant 37 : index
    %771 = memref.load %arg3[%c37_94] : memref<54xf32, #tpu.memory_space<smem>>
    %772 = vector.extract_strided_slice %770 {offsets = [0, 0], sizes = [16, 40], strides = [1, 1]} : vector<18x40xf32> to vector<16x40xf32>
    %773 = vector.broadcast %771 : f32 to vector<16x40xf32>
    %774 = arith.mulf %773, %772 : vector<16x40xf32>
    %775 = arith.addf %750, %774 : vector<16x40xf32>
    %c40_95 = arith.constant 40 : index
    %776 = memref.load %arg3[%c40_95] : memref<54xf32, #tpu.memory_space<smem>>
    %777 = vector.extract_strided_slice %770 {offsets = [1, 0], sizes = [16, 40], strides = [1, 1]} : vector<18x40xf32> to vector<16x40xf32>
    %778 = vector.broadcast %776 : f32 to vector<16x40xf32>
    %779 = arith.mulf %778, %777 : vector<16x40xf32>
    %780 = arith.addf %759, %779 : vector<16x40xf32>
    %c43_96 = arith.constant 43 : index
    %781 = memref.load %arg3[%c43_96] : memref<54xf32, #tpu.memory_space<smem>>
    %782 = vector.extract_strided_slice %770 {offsets = [2, 0], sizes = [16, 40], strides = [1, 1]} : vector<18x40xf32> to vector<16x40xf32>
    %783 = vector.broadcast %781 : f32 to vector<16x40xf32>
    %784 = arith.mulf %783, %782 : vector<16x40xf32>
    %785 = arith.addf %764, %784 : vector<16x40xf32>
    %786 = vector.extract_strided_slice %753 {offsets = [0, 2], sizes = [18, 40], strides = [1, 1]} : vector<18x42xf32> to vector<18x40xf32>
    %c38_97 = arith.constant 38 : index
    %787 = memref.load %arg3[%c38_97] : memref<54xf32, #tpu.memory_space<smem>>
    %788 = vector.extract_strided_slice %786 {offsets = [0, 0], sizes = [16, 40], strides = [1, 1]} : vector<18x40xf32> to vector<16x40xf32>
    %789 = vector.broadcast %787 : f32 to vector<16x40xf32>
    %790 = arith.mulf %789, %788 : vector<16x40xf32>
    %791 = arith.addf %769, %790 : vector<16x40xf32>
    %c41_98 = arith.constant 41 : index
    %792 = memref.load %arg3[%c41_98] : memref<54xf32, #tpu.memory_space<smem>>
    %793 = vector.extract_strided_slice %786 {offsets = [1, 0], sizes = [16, 40], strides = [1, 1]} : vector<18x40xf32> to vector<16x40xf32>
    %794 = vector.broadcast %792 : f32 to vector<16x40xf32>
    %795 = arith.mulf %794, %793 : vector<16x40xf32>
    %796 = arith.addf %775, %795 : vector<16x40xf32>
    %c44_99 = arith.constant 44 : index
    %797 = memref.load %arg3[%c44_99] : memref<54xf32, #tpu.memory_space<smem>>
    %798 = vector.extract_strided_slice %786 {offsets = [2, 0], sizes = [16, 40], strides = [1, 1]} : vector<18x40xf32> to vector<16x40xf32>
    %799 = vector.broadcast %797 : f32 to vector<16x40xf32>
    %800 = arith.mulf %799, %798 : vector<16x40xf32>
    %801 = arith.addf %780, %800 : vector<16x40xf32>
    %c0_100 = arith.constant 0 : index
    %c5_101 = arith.constant 5 : index
    %c3_102 = arith.constant 3 : index
    %c3_103 = arith.constant 3 : index
    %802 = vector.load %arg5[%c0_100, %c5_101, %c3_102, %c3_103] : memref<1x6x24x48xf32, #tpu.memory_space<vmem>>, vector<1x1x18x42xf32>
    %803 = vector.shape_cast %802 : vector<1x1x18x42xf32> to vector<18x42xf32>
    %804 = arith.mulf %803, %542 : vector<18x42xf32>
    %805 = vector.extract_strided_slice %804 {offsets = [0, 0], sizes = [18, 40], strides = [1, 1]} : vector<18x42xf32> to vector<18x40xf32>
    %c45_104 = arith.constant 45 : index
    %806 = memref.load %arg3[%c45_104] : memref<54xf32, #tpu.memory_space<smem>>
    %807 = vector.extract_strided_slice %805 {offsets = [0, 0], sizes = [16, 40], strides = [1, 1]} : vector<18x40xf32> to vector<16x40xf32>
    %808 = vector.broadcast %806 : f32 to vector<16x40xf32>
    %809 = arith.mulf %808, %807 : vector<16x40xf32>
    %810 = arith.addf %785, %809 : vector<16x40xf32>
    %c48_105 = arith.constant 48 : index
    %811 = memref.load %arg3[%c48_105] : memref<54xf32, #tpu.memory_space<smem>>
    %812 = vector.extract_strided_slice %805 {offsets = [1, 0], sizes = [16, 40], strides = [1, 1]} : vector<18x40xf32> to vector<16x40xf32>
    %813 = vector.broadcast %811 : f32 to vector<16x40xf32>
    %814 = arith.mulf %813, %812 : vector<16x40xf32>
    %815 = arith.addf %791, %814 : vector<16x40xf32>
    %c51_106 = arith.constant 51 : index
    %816 = memref.load %arg3[%c51_106] : memref<54xf32, #tpu.memory_space<smem>>
    %817 = vector.extract_strided_slice %805 {offsets = [2, 0], sizes = [16, 40], strides = [1, 1]} : vector<18x40xf32> to vector<16x40xf32>
    %818 = vector.broadcast %816 : f32 to vector<16x40xf32>
    %819 = arith.mulf %818, %817 : vector<16x40xf32>
    %820 = arith.addf %796, %819 : vector<16x40xf32>
    %821 = vector.extract_strided_slice %804 {offsets = [0, 1], sizes = [18, 40], strides = [1, 1]} : vector<18x42xf32> to vector<18x40xf32>
    %c46_107 = arith.constant 46 : index
    %822 = memref.load %arg3[%c46_107] : memref<54xf32, #tpu.memory_space<smem>>
    %823 = vector.extract_strided_slice %821 {offsets = [0, 0], sizes = [16, 40], strides = [1, 1]} : vector<18x40xf32> to vector<16x40xf32>
    %824 = vector.broadcast %822 : f32 to vector<16x40xf32>
    %825 = arith.mulf %824, %823 : vector<16x40xf32>
    %826 = arith.addf %801, %825 : vector<16x40xf32>
    %c49_108 = arith.constant 49 : index
    %827 = memref.load %arg3[%c49_108] : memref<54xf32, #tpu.memory_space<smem>>
    %828 = vector.extract_strided_slice %821 {offsets = [1, 0], sizes = [16, 40], strides = [1, 1]} : vector<18x40xf32> to vector<16x40xf32>
    %829 = vector.broadcast %827 : f32 to vector<16x40xf32>
    %830 = arith.mulf %829, %828 : vector<16x40xf32>
    %831 = arith.addf %810, %830 : vector<16x40xf32>
    %c52_109 = arith.constant 52 : index
    %832 = memref.load %arg3[%c52_109] : memref<54xf32, #tpu.memory_space<smem>>
    %833 = vector.extract_strided_slice %821 {offsets = [2, 0], sizes = [16, 40], strides = [1, 1]} : vector<18x40xf32> to vector<16x40xf32>
    %834 = vector.broadcast %832 : f32 to vector<16x40xf32>
    %835 = arith.mulf %834, %833 : vector<16x40xf32>
    %836 = arith.addf %815, %835 : vector<16x40xf32>
    %837 = vector.extract_strided_slice %804 {offsets = [0, 2], sizes = [18, 40], strides = [1, 1]} : vector<18x42xf32> to vector<18x40xf32>
    %c47_110 = arith.constant 47 : index
    %838 = memref.load %arg3[%c47_110] : memref<54xf32, #tpu.memory_space<smem>>
    %839 = vector.extract_strided_slice %837 {offsets = [0, 0], sizes = [16, 40], strides = [1, 1]} : vector<18x40xf32> to vector<16x40xf32>
    %840 = vector.broadcast %838 : f32 to vector<16x40xf32>
    %841 = arith.mulf %840, %839 : vector<16x40xf32>
    %842 = arith.addf %820, %841 : vector<16x40xf32>
    %c50_111 = arith.constant 50 : index
    %843 = memref.load %arg3[%c50_111] : memref<54xf32, #tpu.memory_space<smem>>
    %844 = vector.extract_strided_slice %837 {offsets = [1, 0], sizes = [16, 40], strides = [1, 1]} : vector<18x40xf32> to vector<16x40xf32>
    %845 = vector.broadcast %843 : f32 to vector<16x40xf32>
    %846 = arith.mulf %845, %844 : vector<16x40xf32>
    %847 = arith.addf %826, %846 : vector<16x40xf32>
    %c53_112 = arith.constant 53 : index
    %848 = memref.load %arg3[%c53_112] : memref<54xf32, #tpu.memory_space<smem>>
    %849 = vector.extract_strided_slice %837 {offsets = [2, 0], sizes = [16, 40], strides = [1, 1]} : vector<18x40xf32> to vector<16x40xf32>
    %850 = vector.broadcast %848 : f32 to vector<16x40xf32>
    %851 = arith.mulf %850, %849 : vector<16x40xf32>
    %852 = arith.addf %831, %851 : vector<16x40xf32>
    %853 = arith.addf %847, %852 : vector<16x40xf32>
    %854 = arith.addf %836, %842 : vector<16x40xf32>
    %855 = arith.addf %853, %854 : vector<16x40xf32>
    %c0_113 = arith.constant 0 : index
    %856 = memref.load %arg4[%c0_113] : memref<1xf32, #tpu.memory_space<smem>>
    %857 = vector.broadcast %856 : f32 to vector<16x40xf32>
    %858 = arith.addf %855, %857 : vector<16x40xf32>
    %c0_114 = arith.constant 0 : index
    %c0_115 = arith.constant 0 : index
    %c0_116 = arith.constant 0 : index
    %c0_117 = arith.constant 0 : index
    %859 = vector.load %arg6[%c0_114, %c0_115, %c0_116, %c0_117] : memref<1x1x16x48xf32, #tpu.memory_space<vmem>>, vector<1x1x16x40xf32>
    %860 = vector.shape_cast %859 : vector<1x1x16x40xf32> to vector<16x40xf32>
    %861 = vector.shape_cast %858 : vector<16x40xf32> to vector<1x1x16x40xf32>
    tpu.vector_store %arg6[%c0_114, %c0_115, %c0_116, %c0_117], %861 {strides = array<i32>} : memref<1x1x16x48xf32, #tpu.memory_space<vmem>>, vector<1x1x16x40xf32>,
    %cst_118 = arith.constant 0.000000e+00 : f32
    %862 = vector.broadcast %cst_118 : f32 to vector<16x8xf32>
    %c0_119 = arith.constant 0 : index
    %c0_120 = arith.constant 0 : index
    %c0_121 = arith.constant 0 : index
    %c40_122 = arith.constant 40 : index
    %863 = vector.load %arg6[%c0_119, %c0_120, %c0_121, %c40_122] : memref<1x1x16x48xf32, #tpu.memory_space<vmem>>, vector<1x1x16x8xf32>
    %864 = vector.shape_cast %863 : vector<1x1x16x8xf32> to vector<16x8xf32>
    %865 = vector.shape_cast %862 : vector<16x8xf32> to vector<1x1x16x8xf32>
    tpu.vector_store %arg6[%c0_119, %c0_120, %c0_121, %c40_122], %865 {strides = array<i32>} : memref<1x1x16x48xf32, #tpu.memory_space<vmem>>, vector<1x1x16x8xf32>,
    return
  }
  func.func @transform_0(%arg0: i32) -> i32 {
    %c0_i32 = arith.constant 0 : i32
    %c0_i32_0 = arith.constant 0 : i32
    return %c0_i32 : i32
  }
  func.func @transform_1(%arg0: i32) -> i32 {
    %c0_i32 = arith.constant 0 : i32
    %c0_i32_0 = arith.constant 0 : i32
    return %c0_i32 : i32
  }
  func.func @transform_2(%arg0: i32) -> i32 {
    %c0_i32 = arith.constant 0 : i32
    %c0_i32_0 = arith.constant 0 : i32
    return %c0_i32 : i32
  }
  func.func @transform_3(%arg0: i32) -> i32 {
    %c0_i32 = arith.constant 0 : i32
    %c0_i32_0 = arith.constant 0 : i32
    return %c0_i32 : i32
  }
  func.func @transform_4(%arg0: i32) -> (i32, i32, i32, i32) {
    %c0_i32 = arith.constant 0 : i32
    %c0_i32_0 = arith.constant 0 : i32
    %c0_i32_1 = arith.constant 0 : i32
    %c0_i32_2 = arith.constant 0 : i32
    return %arg0, %c0_i32, %c0_i32_0, %c0_i32_1 : i32, i32, i32, i32
  }
  func.func @transform_5(%arg0: i32) -> (i32, i32, i32, i32) {
    %c0_i32 = arith.constant 0 : i32
    %c0_i32_0 = arith.constant 0 : i32
    %c0_i32_1 = arith.constant 0 : i32
    %c0_i32_2 = arith.constant 0 : i32
    return %arg0, %c0_i32, %c0_i32_0, %c0_i32_1 : i32, i32, i32, i32
  }
}

</mosaic_0001>

<bundles_post_ra>
// kernel: tpu_custom_call.1
= control target key start
LH: loop header
LB: loop body
LE: loop exit
PB: predicated region body
PF: predicated region fallthrough
CT: control target
= control target key end

     0   :  { %12 = vsyncpa [#allocation7], 0  ;;  %s6225_s0 = inlined_call_operand.vmem [shape: f32[98], index: 0, kind: input, shape index: {}]   ;;  %s6226_s1 = inlined_call_operand.<no memory space> [shape: f32[1], index: 1, kind: input, shape index: {}]   ;;  %s6227_s2 = inlined_call_operand.vmem [shape: f32[54], index: 2, kind: input, shape index: {}]   ;;  %s6228_s3 = inlined_call_operand.<no memory space> [shape: f32[1], index: 3, kind: input, shape index: {}]   ;;  %s6229_s4 = inlined_call_operand.hbm [shape: f32[1,6,24,48], index: 4, kind: input, shape index: {}]   ;;  %s6230_s5 = inlined_call_operand.hbm [shape: f32[1,1,16,48], index: 5, kind: output, shape index: {}]  }
   0x1   :  { %13 = vsyncpa [#allocation9], 0 }
   0x2   :  { %14 = vsyncpa [#allocation5], 0 }
   0x3   :  { %15 = vsyncpa [#allocation6], 0  ;;  %s21_s20 = sshll.u32 %s6225_s0, 4  ;;  %s32_s23 = sshll.u32 %s6227_s2, 4  ;;  %s22_s20 = int_to_ptr.vmem [resolvable:$true] %s21_s20  ;;  %s33_s23 = int_to_ptr.vmem [resolvable:$true] %s32_s23 }
   0x4   :  { %s3800_s24 = smov [#allocation4]   ;;  %s3801_s25 = smov [#allocation8]  }
   0x5   :  { %24 = dma.vmem_to_smem %s22_s20, 16, %s3800_s24, [#allocation7]  }
   0x6   :  { %35 = dma.vmem_to_smem %s33_s23, 16, %s3801_s25, [#allocation9]  }
   0x7   :  { %s42_s28 = sshll.u32 %s6229_s4, 4  ;;  %s3802_s29 = smov [#allocation10]   ;;  %s43_s28 = int_to_ptr.hbm [resolvable:$true] %s42_s28 }
   0x8   :  { %s44_s30 = sshll.u32 %s3802_s29, 4  ;;  %s3803_s6 = smov 128   ;;  %s45_s30 = int_to_ptr.vmem [resolvable:$true] %s44_s30 }
   0x9   :  { %s3804_s0 = smov 8  }
   0xa   :  { %50 = dma.hbm_to_vmem [thread:$0]  %s43_s28, 2304, %s45_s30, [#allocation5], %s3803_s6, %s3803_s6, %s3804_s0  }
   0xb   :  { %3792 = dma.done.wait [#allocation7], 16  }
   0xc   :  { %3793 = vsyncadd [#allocation7], 4294967280 }
   0xd   :  { %3794 = dma.done.wait [#allocation9], 16  }
   0xe   :  { %3795 = vsyncadd [#allocation9], 4294967280 }
   0xf   :  { %3796 = dma.done.wait [#allocation5], 2304  }
  0x10   :  { %3797 = vsyncadd [#allocation5], 4294964992 }
  0x11   :  { %63 = sfence }
  0x12   :  { %v66_v0 = vld [vmem:[#allocation10 + $0x10] sm:$0xff]  ;;  %s3538_s2 = sld [smem:[#allocation4 + $0x8]]  ;;  %v70_v1 = vld [vmem:[#allocation10 + $0x28] sm:$0xff]  ;;  %v80_v3 = vld [vmem:[#allocation10 + $0x40] sm:$0xff]  ;;  %s3805_s8 = smov 127   ;;  %vm215_vm0 = vcmask 1042432  }
  0x13   :  { %s3537_s4 = sld [smem:[#allocation4 + $0x1]]  ;;  %v73_v2 = vmin.f32 %v66_v0, %v70_v1  ;;  %v68_v4 = vld [vmem:[#allocation10 + $0x18] sm:$0xff]  ;;  %v69_v5 = vld [vmem:[#allocation10 + $0x20] sm:$0xff]  ;;  %v78_v7 = vld [vmem:[#allocation10 + $0x30] sm:$0xff]  ;;  %vm241_vm1 = vcmask 1046528   ;;  %vm392_vm2 = vcmask 1041408  }
  0x14   :  { %v90_v6 = vld [vmem:[#allocation10 + $0x58] sm:$0xff]  ;;  %v100_v10 = vld [vmem:[#allocation10 + $0x70] sm:$0xff]  ;;  %v64_v11 = vld [vmem:[#allocation10] sm:$0xff]  ;;  %s3539_s7 = sld [smem:[#allocation4 + $0xf]]  ;;  %s3806_s16 = smov 126   ;;  %vm443_vm3 = vcmask 1045504  }
  0x15   :  { %v79_v8 = vld [vmem:[#allocation10 + $0x38] sm:$0xff]  ;;  %v83_v9 = vmin.f32 %v73_v2, %v80_v3  ;;  %v65_v12 = vld [vmem:[#allocation10 + $0x8] sm:$0xff]  ;;  %v71_v14 = vmin.f32 %v64_v11, %v68_v4  ;;  %v89_v17 = vld [vmem:[#allocation10 + $0x50] sm:$0xff]  ;;  %s3540_s9 = sld [smem:[#allocation4 + $0x16]]  ;;  %vm569_vm4 = vcmask 1040384   ;;  %s3807_s24 = smov 125  }
  0x16   :  { %v72_v15 = vmin.f32 %v65_v12, %v69_v5  ;;  %v88_v16 = vld [vmem:[#allocation10 + $0x48] sm:$0xff]  ;;  %v98_v22 = vld [vmem:[#allocation10 + $0x60] sm:$0xff]  ;;  %v108_v29 = vld [vmem:[#allocation10 + $0x78] sm:$0xff]  ;;  %s3541_s10 = sld [smem:[#allocation4 + $0x1d]]  ;;  %vm645_vm5 = vcmask 1044480   ;;  %vm157_vm6 = vcmask 1043456  }
  0x17   :  { %v93_v13 = vmin.f32 %v83_v9, %v90_v6  ;;  %v110_v18 = vld [vmem:[#allocation10 + $0x88] sm:$0xff]  ;;  %v81_v20 = vmin.f32 %v71_v14, %v78_v7  ;;  %v109_v30 = vld [vmem:[#allocation10 + $0x80] sm:$0xff]  ;;  %s3542_s11 = sld [smem:[#allocation4 + $0x24]]  ;;  %vm3504_vm7 = vcmask 326656   ;;  %vm3507_vm8 = vcmask 392512  }
  0x18   :  { %v82_v21 = vmin.f32 %v72_v15, %v79_v8  ;;  %v99_v23 = vld [vmem:[#allocation10 + $0x68] sm:$0xff]  ;;  %v234_v24 = vstv %s3538_s2  ;;  %s3543_s12 = sld [smem:[#allocation4 + $0x2b]]  ;;  %s3808_s2 = smov 124  }
  0x19   :  { %v103_v19 = vmin.f32 %v93_v13, %v100_v10  ;;  %v208_v25 = vstv %s3537_s4  ;;  %v91_v27 = vmin.f32 %v81_v20, %v88_v16  ;;  %s3544_s13 = sld [smem:[#allocation4 + $0x2]] }
  0x1a   :  { %v92_v28 = vmin.f32 %v82_v21, %v89_v17  ;;  %v260_v35 = vstv %s3539_s7  ;;  %s3545_s14 = sld [smem:[#allocation4 + $0x9]] }
  0x1b   :  { %v3857_v26 = vmin.f32 %v103_v19, %v110_v18  ;;  %v101_v32 = vmin.f32 %v91_v27, %v98_v22  ;;  %v285_v58 = vstv %s3540_s9  ;;  %s3546_s15 = sld [smem:[#allocation4 + $0x10]] }
  0x1c   :  { %v102_v33 = vmin.f32 %v92_v28, %v99_v23  ;;  %v310_v3 = vstv %s3541_s10  ;;  %s3547_s17 = sld [smem:[#allocation4 + $0x17]] }
  0x1d   :  { %v237_v31 = vmul.f32 %v234_v24, %v3857_v26  ;;  %v211_v34 = vmul.f32 %v208_v25, %v3857_v26  ;;  %v3861_v37 = vmin.f32 %v101_v32, %v108_v29  ;;  %v263_v42 = vmul.f32 %v260_v35, %v3857_v26  ;;  %s3548_s18 = sld [smem:[#allocation4 + $0x1e]] }
  0x1e   :  { %v3863_v38 = vmin.f32 %v102_v33, %v109_v30  ;;  %v288_v59 = vmul.f32 %v285_v58, %v3857_v26  ;;  %v313_v4 = vmul.f32 %v310_v3, %v3857_v26  ;;  %v335_v12 = vstv %s3542_s11  ;;  %s3549_s19 = sld [smem:[#allocation4 + $0x25]] }
  0x1f   :  { %v245_v36 = vrot.slane %v237_v31, 1  ;;  %6255 = vst [vmem:[#allocation16_spill] sm:$0xff] %v3861_v37  ;;  %v209_v39 = vmul.f32 %v208_v25, %v3861_v37  ;;  %v219_v41 = vrot.slane %v211_v34, 5  ;;  %v235_v43 = vmul.f32 %v234_v24, %v3861_v37  ;;  %s3550_s20 = sld [smem:[#allocation4 + $0x2c]] }
  0x20   :  { %v210_v40 = vmul.f32 %v208_v25, %v3863_v38  ;;  %v236_v44 = vmul.f32 %v234_v24, %v3863_v38  ;;  %v270_v48 = vrot.slane %v263_v42, 1  ;;  %v261_v52 = vmul.f32 %v260_v35, %v3861_v37  ;;  %s3551_s21 = sld [smem:[#allocation4 + $0x3]] }
  0x21   :  { %251 = vrot.lane.b32.xlu2 %v245_v36, %s3805_s8  ;;  %v216_v45 = vrot.slane %v209_v39, 5  ;;  %v242_v49 = vrot.slane %v235_v43, 1  ;;  %v262_v53 = vmul.f32 %v260_v35, %v3863_v38  ;;  %v286_v61 = vmul.f32 %v285_v58, %v3861_v37  ;;  %s3552_s22 = sld [smem:[#allocation4 + $0xa]] }
  0x22   :  { %v217_v46 = vrot.slane %v210_v40, 5  ;;  %v243_v50 = vrot.slane %v236_v44, 1  ;;  %v267_v56 = vrot.slane %v261_v52, 1  ;;  %v287_v62 = vmul.f32 %v285_v58, %v3863_v38  ;;  %s3553_s23 = sld [smem:[#allocation4 + $0x11]] }
  0x23   :  { %221 = vrot.lane.b32.xlu0 %v216_v45, %s3805_s8  ;;  %v268_v57 = vrot.slane %v262_v53, 1  ;;  %v295_v0 = vrot.slane %v288_v59, 1  ;;  %v292_v1 = vrot.slane %v286_v61, 1  ;;  %v311_v6 = vmul.f32 %v310_v3, %v3861_v37  ;;  %s3554_s25 = sld [smem:[#allocation4 + $0x18]] }
  0x24   :  { %v220_v47 = vsel %vm215_vm0, %v217_v46, %v219_v41  ;;  %v218_v51 = vsel %vm215_vm0, %v216_v45, %v217_v46  ;;  %v244_v54 = vsel %vm241_vm1, %v242_v49, %v243_v50  ;;  %v246_v55 = vsel %vm241_vm1, %v243_v50, %v245_v36  ;;  %s3555_s26 = sld [smem:[#allocation4 + $0x1f]] }
  0x25   :  { %225 = vrot.lane.b32.xlu1 %v220_v47, %s3805_s8  ;;  %v269_v60 = vsel %vm241_vm1, %v267_v56, %v268_v57  ;;  %v271_v63 = vsel %vm241_vm1, %v268_v57, %v270_v48  ;;  %v293_v2 = vrot.slane %v287_v62, 1  ;;  %v312_v7 = vmul.f32 %v310_v3, %v3863_v38  ;;  %s3556_s27 = sld [smem:[#allocation4 + $0x26]] }
  0x26   :  { %v320_v9 = vrot.slane %v313_v4, 1  ;;  %v317_v10 = vrot.slane %v311_v6, 1  ;;  %v338_v13 = vmul.f32 %v335_v12, %v3857_v26  ;;  %v336_v15 = vmul.f32 %v335_v12, %v3861_v37  ;;  %s3557_s28 = sld [smem:[#allocation4 + $0x2d]] }
  0x27   :  { %v294_v5 = vsel %vm241_vm1, %v292_v1, %v293_v2  ;;  %v296_v8 = vsel %vm241_vm1, %v293_v2, %v295_v0  ;;  %v318_v11 = vrot.slane %v312_v7, 1  ;;  %v337_v16 = vmul.f32 %v335_v12, %v3863_v38  ;;  %s3558_s29 = sld [smem:[#allocation4 + $0x4]] }
  0x28   :  { %v345_v18 = vrot.slane %v338_v13, 5  ;;  %v342_v19 = vrot.slane %v336_v15, 5  ;;  %v360_v21 = vstv %s3543_s12  ;;  %v385_v28 = vstv %s3544_s13  ;;  %s3559_s30 = sld [smem:[#allocation4 + $0xb]] }
  0x29   :  { %276 = vrot.lane.b32.xlu2 %v270_v48, %s3805_s8  ;;  %v319_v14 = vsel %vm241_vm1, %v317_v10, %v318_v11  ;;  %v321_v17 = vsel %vm241_vm1, %v318_v11, %v320_v9  ;;  %v343_v20 = vrot.slane %v337_v16, 5  ;;  %v363_v22 = vmul.f32 %v360_v21, %v3857_v26  ;;  %s3560_s4 = sld [smem:[#allocation4 + $0x12]] }
  0x2a   :  { %v361_v24 = vmul.f32 %v360_v21, %v3861_v37  ;;  %v362_v25 = vmul.f32 %v360_v21, %v3863_v38  ;;  %v387_v32 = vmul.f32 %v385_v28, %v3863_v38  ;;  %v388_v33 = vmul.f32 %v385_v28, %v3857_v26  ;;  %s3561_s7 = sld [smem:[#allocation4 + $0x19]] }
  0x2b   :  { %223 = vrot.lane.b32.xlu0 %v218_v51, %s3805_s8  ;;  %v344_v23 = vsel %vm215_vm0, %v342_v19, %v343_v20  ;;  %v346_v27 = vsel %vm215_vm0, %v343_v20, %v345_v18  ;;  %v370_v29 = vrot.slane %v363_v22, 5  ;;  %v386_v40 = vmul.f32 %v385_v28, %v3861_v37  ;;  %s3562_s9 = sld [smem:[#allocation4 + $0x20]] }
  0x2c   :  { %v367_v30 = vrot.slane %v361_v24, 5  ;;  %v368_v31 = vrot.slane %v362_v25, 5  ;;  %v394_v35 = vrot.slane %v387_v32, 6  ;;  %v396_v36 = vrot.slane %v388_v33, 6  ;;  %s3563_s10 = sld [smem:[#allocation4 + $0x27]] }
  0x2d   :  { %247 = vrot.lane.b32.xlu1 %v244_v54, %s3805_s8  ;;  %v411_v41 = vstv %s3545_s14  ;;  %v393_v45 = vrot.slane %v386_v40, 6  ;;  %v436_v51 = vstv %s3546_s15  ;;  %v537_v24 = vstv %s3550_s20  ;;  %s3564_s11 = sld [smem:[#allocation4 + $0x2e]]  ;;  %s3809_s15 = smov 123  }
  0x2e   :  { %v369_v34 = vsel %vm215_vm0, %v367_v30, %v368_v31  ;;  %v371_v39 = vsel %vm215_vm0, %v368_v31, %v370_v29  ;;  %v397_v42 = vsel %vm392_vm2, %v394_v35, %v396_v36  ;;  %v413_v43 = vmul.f32 %v411_v41, %v3863_v38  ;;  %s3565_s12 = sld [smem:[#allocation4 + $0x5]] }
  0x2f   :  { %v414_v44 = vmul.f32 %v411_v41, %v3857_v26  ;;  %v395_v48 = vsel %vm392_vm2, %v393_v45, %v394_v35  ;;  %v412_v49 = vmul.f32 %v411_v41, %v3861_v37  ;;  %v439_v53 = vmul.f32 %v436_v51, %v3857_v26  ;;  %s3566_s13 = sld [smem:[#allocation4 + $0xc]] }
  0x30   :  { %v419_v46 = vrot.slane %v413_v43, 6  ;;  %v437_v54 = vmul.f32 %v436_v51, %v3861_v37  ;;  %v540_v25 = vmul.f32 %v537_v24, %v3857_v26  ;;  %v538_v28 = vmul.f32 %v537_v24, %v3861_v37  ;;  %s3567_s14 = sld [smem:[#allocation4 + $0x13]] }
  0x31   :  { %249 = vrot.lane.b32.xlu2 %v246_v55, %s3805_s8  ;;  %v421_v47 = vrot.slane %v414_v44, 6  ;;  %v418_v52 = vrot.slane %v412_v49, 6  ;;  %v438_v55 = vmul.f32 %v436_v51, %v3863_v38  ;;  %v447_v57 = vrot.slane %v439_v53, 2  ;;  %s3571_s20 = sld [smem:[#allocation4 + $0x2f]] }
  0x32   :  { %v444_v58 = vrot.slane %v437_v54, 2  ;;  %v562_v32 = vstv %s3551_s21  ;;  %v547_v33 = vrot.slane %v540_v25, 6  ;;  %s3572_s21 = sld [smem:[#allocation4 + $0x6]] }
  0x33   :  { %272 = vrot.lane.b32.xlu0 %v269_v60, %s3805_s8  ;;  %v422_v50 = vsel %vm392_vm2, %v419_v46, %v421_v47  ;;  %v420_v56 = vsel %vm392_vm2, %v418_v52, %v419_v46  ;;  %v445_v59 = vrot.slane %v438_v55, 2  ;;  %v462_v60 = vstv %s3547_s17  ;;  %s3568_s17 = sld [smem:[#allocation4 + $0x1a]] }
  0x34   :  { %v465_v61 = vmul.f32 %v462_v60, %v3857_v26  ;;  %v564_v36 = vmul.f32 %v562_v32, %v3863_v38  ;;  %v588_v46 = vstv %s3552_s22  ;;  %s3573_s22 = sld [smem:[#allocation4 + $0xd]] }
  0x35   :  { %274 = vrot.lane.b32.xlu1 %v271_v63, %s3805_s8  ;;  %v446_v62 = vsel %vm443_vm3, %v444_v58, %v445_v59  ;;  %v463_v63 = vmul.f32 %v462_v60, %v3861_v37  ;;  %v448_v1 = vsel %vm443_vm3, %v445_v59, %v447_v57  ;;  %v591_v49 = vmul.f32 %v588_v46, %v3857_v26 }
  0x36   :  { %v472_v2 = vrot.slane %v465_v61, 2  ;;  %v571_v41 = vrot.slane %v564_v36, 7  ;;  %v589_v55 = vmul.f32 %v588_v46, %v3861_v37 }
  0x37   :  { %v469_v3 = vrot.slane %v463_v63, 2 }
  0x38   :  { %v595_v61 = vrot.slane %v589_v55, 7 }
  0x39   :  { %301 = vrot.lane.b32.xlu2 %v295_v0, %s3805_s8  ;;  %v464_v0 = vmul.f32 %v462_v60, %v3863_v38 }
  0x3b   :  { %297 = vrot.lane.b32.xlu0 %v294_v5, %s3805_s8  ;;  %v470_v4 = vrot.slane %v464_v0, 2  ;;  %v487_v5 = vstv %s3548_s18  ;;  %s3569_s18 = sld [smem:[#allocation4 + $0x21]] }
  0x3c   :  { %v490_v6 = vmul.f32 %v487_v5, %v3857_v26 }
  0x3d   :  { %299 = vrot.lane.b32.xlu1 %v296_v8, %s3805_s8  ;;  %v471_v7 = vsel %vm443_vm3, %v469_v3, %v470_v4  ;;  %v488_v8 = vmul.f32 %v487_v5, %v3861_v37  ;;  %v473_v10 = vsel %vm443_vm3, %v470_v4, %v472_v2 }
  0x3e   :  { %v497_v11 = vrot.slane %v490_v6, 2 }
  0x3f   :  { %v494_v12 = vrot.slane %v488_v8, 2 }
  0x41   :  { %326 = vrot.lane.b32.xlu2 %v320_v9, %s3805_s8  ;;  %v489_v9 = vmul.f32 %v487_v5, %v3863_v38  ;;  %v638_v5 = vstv %s3554_s25  ;;  %s3810_s25 = smov 122  }
  0x43   :  { %322 = vrot.lane.b32.xlu0 %v319_v14, %s3805_s8  ;;  %v495_v13 = vrot.slane %v489_v9, 2  ;;  %v512_v14 = vstv %s3549_s19  ;;  %v641_v9 = vmul.f32 %v638_v5, %v3857_v26  ;;  %s3570_s19 = sld [smem:[#allocation4 + $0x28]] }
  0x44   :  { %v515_v15 = vmul.f32 %v512_v14, %v3857_v26 }
  0x45   :  { %324 = vrot.lane.b32.xlu1 %v321_v17, %s3805_s8  ;;  %v496_v16 = vsel %vm443_vm3, %v494_v12, %v495_v13  ;;  %v513_v17 = vmul.f32 %v512_v14, %v3861_v37  ;;  %v498_v19 = vsel %vm443_vm3, %v495_v13, %v497_v11 }
  0x46   :  { %v522_v21 = vrot.slane %v515_v15, 2 }
  0x47   :  { %v519_v22 = vrot.slane %v513_v17, 2  ;;  %v664_v17 = vstv %s3555_s26  ;;  %s3575_s26 = sld [smem:[#allocation4 + $0x1b]] }
  0x49   :  { %351 = vrot.lane.b32.xlu2 %v345_v18, %s3805_s8  ;;  %v514_v18 = vmul.f32 %v512_v14, %v3863_v38  ;;  %v649_v14 = vrot.slane %v641_v9, 3 }
  0x4b   :  { %347 = vrot.lane.b32.xlu0 %v344_v23, %s3805_s8  ;;  %v520_v23 = vrot.slane %v514_v18, 2 }
  0x4d   :  { %349 = vrot.lane.b32.xlu1 %v346_v27, %s3805_s8  ;;  %v521_v27 = vsel %vm443_vm3, %v519_v22, %v520_v23  ;;  %v523_v30 = vsel %vm443_vm3, %v520_v23, %v522_v21  ;;  %v665_v23 = vmul.f32 %v664_v17, %v3861_v37 }
  0x51   :  { %376 = vrot.lane.b32.xlu2 %v370_v29, %s3805_s8  ;;  %v539_v29 = vmul.f32 %v537_v24, %v3863_v38  ;;  %v666_v24 = vmul.f32 %v664_v17, %v3863_v38 }
  0x53   :  { %372 = vrot.lane.b32.xlu0 %v369_v34, %s3805_s8  ;;  %v544_v34 = vrot.slane %v538_v28, 6  ;;  %v545_v35 = vrot.slane %v539_v29, 6  ;;  %v671_v29 = vrot.slane %v665_v23, 3  ;;  %v779_v23 = vstv %s3560_s4  ;;  %s3587_s4 = sld [smem:[#allocation4 + $0x39]] }
  0x55   :  { %374 = vrot.lane.b32.xlu1 %v371_v39, %s3805_s8  ;;  %v565_v39 = vmul.f32 %v562_v32, %v3857_v26  ;;  %v546_v40 = vsel %vm392_vm2, %v544_v34, %v545_v35  ;;  %v548_v43 = vsel %vm392_vm2, %v545_v35, %v547_v33 }
  0x59   :  { %402 = vrot.lane.b32.xlu2 %v397_v42, %s3806_s16  ;;  %v573_v42 = vrot.slane %v565_v39, 7 }
  0x5b   :  { %398 = vrot.lane.b32.xlu0 %v393_v45, %s3806_s16  ;;  %v563_v45 = vmul.f32 %v562_v32, %v3861_v37  ;;  %v574_v47 = vsel %vm569_vm4, %v571_v41, %v573_v42  ;;  %v689_v32 = vstv %s3556_s27  ;;  %s3576_s27 = sld [smem:[#allocation4 + $0x22]] }
  0x5c   :  { %v692_v35 = vmul.f32 %v689_v32, %v3857_v26  ;;  %v690_v39 = vmul.f32 %v689_v32, %v3861_v37 }
  0x5d   :  { %400 = vrot.lane.b32.xlu1 %v395_v48, %s3806_s16  ;;  %v590_v48 = vmul.f32 %v588_v46, %v3863_v38 }
  0x5f   :  { %v596_v51 = vrot.slane %v590_v48, 7 }
  0x61   :  { %427 = vrot.lane.b32.xlu2 %v422_v50, %s3806_s16  ;;  %v570_v50 = vrot.slane %v563_v45, 7  ;;  %v696_v45 = vrot.slane %v690_v39, 3 }
  0x63   :  { %423 = vrot.lane.b32.xlu0 %v418_v52, %s3806_s16  ;;  %v598_v52 = vrot.slane %v591_v49, 7  ;;  %v572_v53 = vsel %vm569_vm4, %v570_v50, %v571_v41 }
  0x65   :  { %425 = vrot.lane.b32.xlu1 %v420_v56, %s3806_s16  ;;  %v613_v56 = vstv %s3553_s23  ;;  %s3574_s23 = sld [smem:[#allocation4 + $0x14]] }
  0x66   :  { %v615_v58 = vmul.f32 %v613_v56, %v3863_v38  ;;  %v616_v59 = vmul.f32 %v613_v56, %v3857_v26  ;;  %v614_v3 = vmul.f32 %v613_v56, %v3861_v37 }
  0x68   :  { %v621_v63 = vrot.slane %v615_v58, 7  ;;  %v623_v0 = vrot.slane %v616_v59, 7 }
  0x69   :  { %453 = vrot.lane.b32.xlu2 %v447_v57, %s3806_s16  ;;  %v599_v57 = vsel %vm569_vm4, %v596_v51, %v598_v52 }
  0x6a   :  { %v624_v4 = vsel %vm569_vm4, %v621_v63, %v623_v0 }
  0x6b   :  { %449 = vrot.lane.b32.xlu0 %v446_v62, %s3806_s16 }
  0x6d   :  { %451 = vrot.lane.b32.xlu1 %v448_v1, %s3806_s16  ;;  %v597_v1 = vsel %vm569_vm4, %v595_v61, %v596_v51 }
  0x71   :  { %478 = vrot.lane.b32.xlu2 %v472_v2, %s3806_s16 }
  0x73   :  { %474 = vrot.lane.b32.xlu0 %v471_v7, %s3806_s16  ;;  %v620_v7 = vrot.slane %v614_v3, 7 }
  0x75   :  { %476 = vrot.lane.b32.xlu1 %v473_v10, %s3806_s16  ;;  %v639_v10 = vmul.f32 %v638_v5, %v3861_v37  ;;  %v622_v12 = vsel %vm569_vm4, %v620_v7, %v621_v63 }
  0x77   :  { %v646_v15 = vrot.slane %v639_v10, 3 }
  0x79   :  { %503 = vrot.lane.b32.xlu2 %v497_v11, %s3806_s16  ;;  %v640_v11 = vmul.f32 %v638_v5, %v3863_v38 }
  0x7b   :  { %v3960_v20 = vpop.permute.xlu2 %251  ;;  %499 = vrot.lane.b32.xlu0 %v496_v16, %s3806_s16  ;;  %v647_v16 = vrot.slane %v640_v11, 3 }
  0x7d   :  { %501 = vrot.lane.b32.xlu1 %v498_v19, %s3806_s16  ;;  %v648_v22 = vsel %vm645_vm5, %v646_v15, %v647_v16  ;;  %v650_v25 = vsel %vm645_vm5, %v647_v16, %v649_v14 }
  0x81   :  { %528 = vrot.lane.b32.xlu2 %v522_v21, %s3806_s16  ;;  %v667_v21 = vmul.f32 %v664_v17, %v3857_v26 }
  0x83   :  { %v3970_v31 = vpop.permute.xlu2 %276  ;;  %524 = vrot.lane.b32.xlu0 %v521_v27, %s3806_s16  ;;  %v674_v28 = vrot.slane %v667_v21, 3 }
  0x85   :  { %526 = vrot.lane.b32.xlu1 %v523_v30, %s3806_s16  ;;  %v672_v30 = vrot.slane %v666_v24, 3 }
  0x87   :  { %v673_v36 = vsel %vm645_vm5, %v671_v29, %v672_v30  ;;  %v675_v41 = vsel %vm645_vm5, %v672_v30, %v674_v28  ;;  %v780_v30 = vmul.f32 %v779_v23, %v3861_v37 }
  0x89   :  { %553 = vrot.lane.b32.xlu2 %v547_v33, %s3806_s16 }
  0x8b   :  { %v3979_v44 = vpop.permute.xlu2 %249  ;;  %549 = vrot.lane.b32.xlu0 %v546_v40, %s3806_s16  ;;  %v691_v40 = vmul.f32 %v689_v32, %v3863_v38  ;;  %v781_v32 = vmul.f32 %v779_v23, %v3863_v38 }
  0x8d   :  { %551 = vrot.lane.b32.xlu1 %v548_v43, %s3806_s16  ;;  %v699_v43 = vrot.slane %v692_v35, 3  ;;  %v697_v46 = vrot.slane %v691_v40, 3  ;;  %v799_v35 = vstv %s3561_s7  ;;  %v819_v40 = vstv %s3562_s9  ;;  %s3588_s7 = sld [smem:[#allocation4 + $0x40]] }
  0x8e   :  { %v802_v39 = vmul.f32 %v799_v35, %v3857_v26  ;;  %s3589_s9 = sld [smem:[#allocation4 + $0x47]] }
  0x8f   :  { %v698_v51 = vsel %vm645_vm5, %v696_v45, %v697_v46  ;;  %v700_v55 = vsel %vm645_vm5, %v697_v46, %v699_v43  ;;  %v800_v45 = vmul.f32 %v799_v35, %v3861_v37  ;;  %v822_v46 = vmul.f32 %v819_v40, %v3857_v26 }
  0x91   :  { %579 = vrot.lane.b32.xlu2 %v574_v47, %s3807_s24  ;;  %v714_v47 = vstv %s3557_s28  ;;  %s3577_s28 = sld [smem:[#allocation4 + $0x29]] }
  0x92   :  { %v715_v52 = vmul.f32 %v714_v47, %v3861_v37 }
  0x93   :  { %v3989_v54 = vpop.permute.xlu2 %301  ;;  %575 = vrot.lane.b32.xlu0 %v570_v50, %s3807_s24  ;;  %v717_v50 = vmul.f32 %v714_v47, %v3857_v26 }
  0x94   :  { %v721_v58 = vrot.slane %v715_v52, 3 }
  0x95   :  { %577 = vrot.lane.b32.xlu1 %v572_v53, %s3807_s24  ;;  %v3997_v60 = vpop.permute.xlu0 %221  ;;  %v716_v53 = vmul.f32 %v714_v47, %v3863_v38  ;;  %v801_v47 = vmul.f32 %v799_v35, %v3863_v38 }
  0x97   :  { %v3999_v62 = vpop.permute.xlu1 %225  ;;  %v722_v59 = vrot.slane %v716_v53, 3  ;;  %v829_v53 = vrot.slane %v822_v46, 4 }
  0x99   :  { %604 = vrot.lane.b32.xlu2 %v599_v57, %s3807_s24  ;;  %v724_v57 = vrot.slane %v717_v50, 3  ;;  %v723_v0 = vsel %vm645_vm5, %v721_v58, %v722_v59  ;;  %v820_v50 = vmul.f32 %v819_v40, %v3861_v37  ;;  %v844_v58 = vstv %s3563_s10  ;;  %s3590_s10 = sld [smem:[#allocation4 + $0x4e]] }
  0x9b   :  { %v4003_v2 = vpop.permute.xlu2 %326  ;;  %600 = vrot.lane.b32.xlu0 %v595_v61, %s3807_s24  ;;  %v725_v3 = vsel %vm645_vm5, %v722_v59, %v724_v57 }
  0x9d   :  { %602 = vrot.lane.b32.xlu1 %v597_v1, %s3807_s24  ;;  %v4009_v6 = vpop.permute.xlu0 %223  ;;  %v739_v1 = vstv %s3558_s29  ;;  %s3578_s29 = sld [smem:[#allocation4 + $0x30]] }
  0x9e   :  { %v742_v5 = vmul.f32 %v739_v1, %v3857_v26  ;;  %v740_v10 = vmul.f32 %v739_v1, %v3861_v37  ;;  %v741_v11 = vmul.f32 %v739_v1, %v3863_v38  ;;  %v847_v1 = vmul.f32 %v844_v58, %v3857_v26 }
  0x9f   :  { %v4011_v8 = vpop.permute.xlu1 %247 }
  0xa1   :  { %629 = vrot.lane.b32.xlu2 %v624_v4, %s3807_s24 }
  0xa3   :  { %v4018_v13 = vpop.permute.xlu2 %351  ;;  %625 = vrot.lane.b32.xlu0 %v620_v7, %s3807_s24 }
  0xa5   :  { %627 = vrot.lane.b32.xlu1 %v622_v12, %s3807_s24  ;;  %v4022_v18 = vpop.permute.xlu0 %272  ;;  %v759_v12 = vstv %s3559_s30  ;;  %s3586_s30 = sld [smem:[#allocation4 + $0x32]] }
  0xa6   :  { %6256 = vst [vmem:[#allocation17_spill] sm:$0xff] %v4022_v18  ;;  %v762_v15 = vmul.f32 %v759_v12, %v3857_v26  ;;  %v760_v21 = vmul.f32 %v759_v12, %v3861_v37  ;;  %v994_v18 = vstv %s3569_s18  ;;  %s3596_s18 = sld [smem:[#allocation4 + $0x48]] }
  0xa7   :  { %v4024_v19 = vpop.permute.xlu1 %274 }
  0xa9   :  { %655 = vrot.lane.b32.xlu2 %v649_v14, %s3807_s24 }
  0xab   :  { %v4032_v27 = vpop.permute.xlu2 %376  ;;  %651 = vrot.lane.b32.xlu0 %v648_v22, %s3807_s24  ;;  %v761_v22 = vmul.f32 %v759_v12, %v3863_v38 }
  0xad   :  { %653 = vrot.lane.b32.xlu1 %v650_v25, %s3807_s24  ;;  %v4036_v33 = vpop.permute.xlu0 %297  ;;  %v782_v25 = vmul.f32 %v779_v23, %v3857_v26  ;;  %v869_v23 = vstv %s3564_s11  ;;  %s3591_s11 = sld [smem:[#allocation4 + $0x55]] }
  0xaf   :  { %v4038_v34 = vpop.permute.xlu1 %299 }
  0xb1   :  { %680 = vrot.lane.b32.xlu2 %v674_v28, %s3807_s24 }
  0xb3   :  { %v4046_v42 = vpop.permute.xlu2 %402  ;;  %676 = vrot.lane.b32.xlu0 %v673_v36, %s3807_s24 }
  0xb5   :  { %678 = vrot.lane.b32.xlu1 %v675_v41, %s3807_s24  ;;  %v4050_v48 = vpop.permute.xlu0 %322 }
  0xb7   :  { %v4052_v49 = vpop.permute.xlu1 %324 }
  0xb9   :  { %705 = vrot.lane.b32.xlu2 %v699_v43, %s3807_s24 }
  0xbb   :  { %v4060_v56 = vpop.permute.xlu2 %427  ;;  %701 = vrot.lane.b32.xlu0 %v698_v51, %s3807_s24  ;;  %v821_v51 = vmul.f32 %v819_v40, %v3863_v38  ;;  %v871_v40 = vmul.f32 %v869_v23, %v3863_v38 }
  0xbd   :  { %703 = vrot.lane.b32.xlu1 %v700_v55, %s3807_s24  ;;  %v4064_v61 = vpop.permute.xlu0 %347  ;;  %v826_v55 = vrot.slane %v820_v50, 4 }
  0xbf   :  { %v4066_v63 = vpop.permute.xlu1 %349 }
  0xc1   :  { %730 = vrot.lane.b32.xlu2 %v724_v57, %s3807_s24  ;;  %v827_v57 = vrot.slane %v821_v51, 4 }
  0xc3   :  { %v4071_v4 = vpop.permute.xlu2 %453  ;;  %726 = vrot.lane.b32.xlu0 %v723_v0, %s3807_s24 }
  0xc5   :  { %728 = vrot.lane.b32.xlu1 %v725_v3, %s3807_s24  ;;  %v4076_v7 = vpop.permute.xlu0 %372  ;;  %v828_v3 = vsel %vm157_vm6, %v826_v55, %v827_v57 }
  0xc6   :  { %6257 = vst [vmem:[#allocation18_spill] sm:$0xff] %v4076_v7 }
  0xc7   :  { %v4078_v9 = vpop.permute.xlu1 %374 }
  0xc9   :  { %750 = vrot.lane.b32.xlu2 %v742_v5, %s3808_s2  ;;  %v845_v5 = vmul.f32 %v844_v58, %v3861_v37 }
  0xcb   :  { %v4083_v14 = vpop.permute.xlu2 %478  ;;  %746 = vrot.lane.b32.xlu0 %v740_v10, %s3808_s2  ;;  %v846_v10 = vmul.f32 %v844_v58, %v3863_v38 }
  0xcd   :  { %748 = vrot.lane.b32.xlu1 %v741_v11, %s3808_s2  ;;  %v4088_v16 = vpop.permute.xlu0 %398  ;;  %v830_v11 = vsel %vm157_vm6, %v827_v57, %v829_v53 }
  0xce   :  { %6258 = vst [vmem:[#allocation19_spill] sm:$0xff] %v4088_v16 }
  0xcf   :  { %v4090_v17 = vpop.permute.xlu1 %400 }
  0xd0   :  { %6259 = vst [vmem:[#allocation20_spill] sm:$0xff] %v4090_v17 }
  0xd1   :  { %770 = vrot.lane.b32.xlu2 %v762_v15, %s3808_s2  ;;  %v854_v15 = vrot.slane %v847_v1, 4 }
  0xd3   :  { %v4095_v24 = vpop.permute.xlu2 %503  ;;  %766 = vrot.lane.b32.xlu0 %v760_v21, %s3808_s2  ;;  %v851_v21 = vrot.slane %v845_v5, 4 }
  0xd4   :  { %6260 = vst [vmem:[#allocation21_spill] sm:$0xff] %v4095_v24 }
  0xd5   :  { %768 = vrot.lane.b32.xlu1 %v761_v22, %s3808_s2  ;;  %v4100_v28 = vpop.permute.xlu0 %423  ;;  %v852_v22 = vrot.slane %v846_v10, 4 }
  0xd6   :  { %6261 = vst [vmem:[#allocation22_spill] sm:$0xff] %v4100_v28 }
  0xd7   :  { %v4102_v29 = vpop.permute.xlu1 %425  ;;  %v853_v35 = vsel %vm157_vm6, %v851_v21, %v852_v22 }
  0xd8   :  { %6262 = vst [vmem:[#allocation23_spill] sm:$0xff] %v4102_v29 }
  0xd9   :  { %790 = vrot.lane.b32.xlu2 %v782_v25, %s3808_s2 }
  0xdb   :  { %v4107_v36 = vpop.permute.xlu2 %528  ;;  %786 = vrot.lane.b32.xlu0 %v780_v30, %s3808_s2 }
  0xdc   :  { %6263 = vst [vmem:[#allocation24_spill] sm:$0xff] %v4107_v36 }
  0xdd   :  { %788 = vrot.lane.b32.xlu1 %v781_v32, %s3808_s2  ;;  %v4112_v41 = vpop.permute.xlu0 %449  ;;  %v872_v32 = vmul.f32 %v869_v23, %v3857_v26 }
  0xde   :  { %6264 = vst [vmem:[#allocation25_spill] sm:$0xff] %v4112_v41 }
  0xdf   :  { %v4114_v43 = vpop.permute.xlu1 %451  ;;  %v879_v50 = vrot.slane %v872_v32, 4 }
  0xe0   :  { %6265 = vst [vmem:[#allocation26_spill] sm:$0xff] %v4114_v43 }
  0xe1   :  { %810 = vrot.lane.b32.xlu2 %v802_v39, %s3808_s2  ;;  %v870_v39 = vmul.f32 %v869_v23, %v3861_v37  ;;  %v919_v23 = vstv %s3566_s13  ;;  %s3593_s13 = sld [smem:[#allocation4 + $0x33]] }
  0xe3   :  { %v4122_v52 = vpop.permute.xlu2 %553  ;;  %806 = vrot.lane.b32.xlu0 %v800_v45, %s3808_s2  ;;  %v855_v45 = vsel %vm157_vm6, %v852_v22, %v854_v15  ;;  %v876_v51 = vrot.slane %v870_v39, 4 }
  0xe4   :  { %6266 = vst [vmem:[#allocation27_spill] sm:$0xff] %v4122_v52 }
  0xe5   :  { %808 = vrot.lane.b32.xlu1 %v801_v47, %s3808_s2  ;;  %v4126_v59 = vpop.permute.xlu0 %474  ;;  %v894_v47 = vstv %s3565_s12  ;;  %s3592_s12 = sld [smem:[#allocation4 + $0x5c]] }
  0xe6   :  { %6267 = vst [vmem:[#allocation28_spill] sm:$0xff] %v4126_v59  ;;  %v896_v55 = vmul.f32 %v894_v47, %v3863_v38  ;;  %v897_v57 = vmul.f32 %v894_v47, %v3857_v26  ;;  %v895_v21 = vmul.f32 %v894_v47, %v3861_v37  ;;  %v921_v47 = vmul.f32 %v919_v23, %v3863_v38 }
  0xe7   :  { %v4128_v0 = vpop.permute.xlu1 %476 }
  0xe8   :  { %6268 = vst [vmem:[#allocation29_spill] sm:$0xff] %v4128_v0  ;;  %v902_v5 = vrot.slane %v896_v55, 5  ;;  %v904_v10 = vrot.slane %v897_v57, 5  ;;  %v927_v57 = vrot.slane %v921_v47, 1 }
  0xe9   :  { %835 = vrot.lane.b32.xlu2 %v829_v53, %s3808_s2  ;;  %v877_v53 = vrot.slane %v871_v40, 4  ;;  %v922_v40 = vmul.f32 %v919_v23, %v3857_v26 }
  0xea   :  { %v905_v22 = vsel %vm215_vm0, %v902_v5, %v904_v10 }
  0xeb   :  { %v4136_v12 = vpop.permute.xlu2 %579  ;;  %831 = vrot.lane.b32.xlu0 %v828_v3, %s3808_s2  ;;  %v878_v3 = vsel %vm157_vm6, %v876_v51, %v877_v53 }
  0xed   :  { %833 = vrot.lane.b32.xlu1 %v830_v11, %s3808_s2  ;;  %v4140_v25 = vpop.permute.xlu0 %499  ;;  %v880_v11 = vsel %vm157_vm6, %v877_v53, %v879_v50  ;;  %v929_v53 = vrot.slane %v922_v40, 1 }
  0xee   :  { %6269 = vst [vmem:[#allocation30_spill] sm:$0xff] %v4140_v25 }
  0xef   :  { %v4142_v30 = vpop.permute.xlu1 %501 }
  0xf0   :  { %6270 = vst [vmem:[#allocation31_spill] sm:$0xff] %v4142_v30 }
  0xf1   :  { %860 = vrot.lane.b32.xlu2 %v854_v15, %s3808_s2 }
  0xf3   :  { %v4150_v46 = vpop.permute.xlu2 %604  ;;  %856 = vrot.lane.b32.xlu0 %v853_v35, %s3808_s2  ;;  %v901_v35 = vrot.slane %v895_v21, 5 }
  0xf4   :  { %6271 = vst [vmem:[#allocation32_spill] sm:$0xff] %v4150_v46 }
  0xf5   :  { %858 = vrot.lane.b32.xlu1 %v855_v45, %s3808_s2  ;;  %v4156_v58 = vpop.permute.xlu0 %524  ;;  %v920_v45 = vmul.f32 %v919_v23, %v3861_v37 }
  0xf6   :  { %6272 = vst [vmem:[#allocation33_spill] sm:$0xff] %v4156_v58  ;;  %v3708_v58 = vld [vmem:[#allocation10 + $0x8] sm:$0xff] }
  0xf7   :  { %v4158_v1 = vpop.permute.xlu1 %526  ;;  %v926_v55 = vrot.slane %v920_v45, 1 }
  0xf8   :  { %6273 = vst [vmem:[#allocation34_spill] sm:$0xff] %v4158_v1  ;;  %v3707_v1 = vld [vmem:[#allocation10 + $0x20] sm:$0xff] }
  0xf9   :  { %885 = vrot.lane.b32.xlu2 %v879_v50, %s3808_s2  ;;  %v903_v50 = vsel %vm215_vm0, %v901_v35, %v902_v5  ;;  %v928_v5 = vsel %vm241_vm1, %v926_v55, %v927_v57 }
  0xfb   :  { %v4163_v15 = vpop.permute.xlu2 %629  ;;  %881 = vrot.lane.b32.xlu0 %v878_v3, %s3808_s2  ;;  %v944_v3 = vstv %s3567_s14  ;;  %s3594_s14 = sld [smem:[#allocation4 + $0x3a]] }
  0xfc   :  { %6274 = vst [vmem:[#allocation35_spill] sm:$0xff] %v4163_v15  ;;  %v947_v21 = vmul.f32 %v944_v3, %v3857_v26  ;;  %v946_v23 = vmul.f32 %v944_v3, %v3863_v38  ;;  %v3706_v15 = vld [vmem:[#allocation10] sm:$0xff] }
  0xfd   :  { %883 = vrot.lane.b32.xlu1 %v880_v11, %s3808_s2  ;;  %v4169_v32 = vpop.permute.xlu0 %549 }
  0xfe   :  { %6275 = vst [vmem:[#allocation36_spill] sm:$0xff] %v4169_v32  ;;  %v954_v45 = vrot.slane %v947_v21, 1 }
  0xff   :  { %v4171_v39 = vpop.permute.xlu1 %551 }
 0x100   :  { %6276 = vst [vmem:[#allocation37_spill] sm:$0xff] %v4171_v39 }
 0x101   :  { %910 = vrot.lane.b32.xlu2 %v905_v22, %s3809_s15  ;;  %v945_v22 = vmul.f32 %v944_v3, %v3861_v37 }
 0x103   :  { %v4178_v51 = vpop.permute.xlu2 %655  ;;  %906 = vrot.lane.b32.xlu0 %v901_v35, %s3809_s15  ;;  %v930_v35 = vsel %vm241_vm1, %v927_v57, %v929_v53  ;;  %v951_v47 = vrot.slane %v945_v22, 1 }
 0x104   :  { %6277 = vst [vmem:[#allocation38_spill] sm:$0xff] %v4178_v51 }
 0x105   :  { %908 = vrot.lane.b32.xlu1 %v903_v50, %s3809_s15  ;;  %v4182_v10 = vpop.permute.xlu0 %575  ;;  %v952_v50 = vrot.slane %v946_v23, 1 }
 0x106   :  { %6278 = vst [vmem:[#allocation39_spill] sm:$0xff] %v4182_v10  ;;  %v969_v10 = vstv %s3568_s17  ;;  %s3595_s17 = sld [smem:[#allocation4 + $0x41]] }
 0x107   :  { %v4184_v11 = vpop.permute.xlu1 %577  ;;  %v972_v3 = vmul.f32 %v969_v10, %v3857_v26  ;;  %v970_v57 = vmul.f32 %v969_v10, %v3861_v37  ;;  %v971_v21 = vmul.f32 %v969_v10, %v3863_v38  ;;  %v997_v10 = vmul.f32 %v994_v18, %v3857_v26 }
 0x108   :  { %6279 = vst [vmem:[#allocation40_spill] sm:$0xff] %v4184_v11 }
 0x109   :  { %935 = vrot.lane.b32.xlu2 %v929_v53, %s3809_s15  ;;  %v953_v53 = vsel %vm241_vm1, %v951_v47, %v952_v50  ;;  %v979_v23 = vrot.slane %v972_v3, 1  ;;  %v977_v7 = vrot.slane %v971_v21, 1  ;;  %v996_v3 = vmul.f32 %v994_v18, %v3863_v38 }
 0x10a   :  { %v1004_v21 = vrot.slane %v997_v10, 1 }
 0x10b   :  { %v4192_v40 = vpop.permute.xlu2 %680  ;;  %931 = vrot.lane.b32.xlu0 %v928_v5, %s3809_s15  ;;  %v955_v5 = vsel %vm241_vm1, %v952_v50, %v954_v45  ;;  %v995_v50 = vmul.f32 %v994_v18, %v3861_v37 }
 0x10c   :  { %6280 = vst [vmem:[#allocation41_spill] sm:$0xff] %v4192_v40 }
 0x10d   :  { %933 = vrot.lane.b32.xlu1 %v930_v35, %s3809_s15  ;;  %v4196_v59 = vpop.permute.xlu0 %600  ;;  %v976_v35 = vrot.slane %v970_v57, 1 }
 0x10e   :  { %6281 = vst [vmem:[#allocation42_spill] sm:$0xff] %v4196_v59 }
 0x10f   :  { %v4198_v55 = vpop.permute.xlu1 %602 }
 0x110   :  { %6282 = vst [vmem:[#allocation43_spill] sm:$0xff] %v4198_v55 }
 0x111   :  { %960 = vrot.lane.b32.xlu2 %v954_v45, %s3809_s15  ;;  %v978_v45 = vsel %vm241_vm1, %v976_v35, %v977_v7 }
 0x113   :  { %v4206_v22 = vpop.permute.xlu2 %705  ;;  %956 = vrot.lane.b32.xlu0 %v953_v53, %s3809_s15  ;;  %v980_v53 = vsel %vm241_vm1, %v977_v7, %v979_v23 }
 0x114   :  { %6283 = vst [vmem:[#allocation44_spill] sm:$0xff] %v4206_v22 }
 0x115   :  { %958 = vrot.lane.b32.xlu1 %v955_v5, %s3809_s15  ;;  %v4210_v55 = vpop.permute.xlu0 %625  ;;  %v1001_v5 = vrot.slane %v995_v50, 1 }
 0x116   :  { %6284 = vst [vmem:[#allocation45_spill] sm:$0xff] %v4210_v55  ;;  %v1019_v55 = vstv %s3570_s19  ;;  %s3597_s19 = sld [smem:[#allocation4 + $0x4f]] }
 0x117   :  { %v4212_v47 = vpop.permute.xlu1 %627  ;;  %v1022_v18 = vmul.f32 %v1019_v55, %v3857_v26  ;;  %v1021_v10 = vmul.f32 %v1019_v55, %v3863_v38 }
 0x118   :  { %6285 = vst [vmem:[#allocation46_spill] sm:$0xff] %v4212_v47  ;;  %v1002_v47 = vrot.slane %v996_v3, 1 }
 0x119   :  { %985 = vrot.lane.b32.xlu2 %v979_v23, %s3809_s15  ;;  %v1020_v23 = vmul.f32 %v1019_v55, %v3861_v37  ;;  %v1029_v3 = vrot.slane %v1022_v18, 5 }
 0x11a   :  { %v1003_v7 = vsel %vm241_vm1, %v1001_v5, %v1002_v47 }
 0x11b   :  { %v4220_v57 = vpop.permute.xlu2 %730  ;;  %981 = vrot.lane.b32.xlu0 %v978_v45, %s3809_s15  ;;  %v1005_v45 = vsel %vm241_vm1, %v1002_v47, %v1004_v21 }
 0x11c   :  { %6286 = vst [vmem:[#allocation47_spill] sm:$0xff] %v4220_v57 }
 0x11d   :  { %983 = vrot.lane.b32.xlu1 %v980_v53, %s3809_s15  ;;  %v4224_v59 = vpop.permute.xlu0 %651  ;;  %v1026_v53 = vrot.slane %v1020_v23, 5  ;;  %v1069_v23 = vstv %s3572_s21  ;;  %s3599_s21 = sld [smem:[#allocation4 + $0x5d]] }
 0x11e   :  { %6287 = vst [vmem:[#allocation48_spill] sm:$0xff] %v4224_v59  ;;  %v1044_v59 = vstv %s3571_s20  ;;  %s3598_s20 = sld [smem:[#allocation4 + $0x56]] }
 0x11f   :  { %v4226_v35 = vpop.permute.xlu1 %653  ;;  %v1047_v55 = vmul.f32 %v1044_v59, %v3857_v26 }
 0x120   :  { %6288 = vst [vmem:[#allocation49_spill] sm:$0xff] %v4226_v35  ;;  %v1027_v35 = vrot.slane %v1021_v10, 5 }
 0x121   :  { %1010 = vrot.lane.b32.xlu2 %v1004_v21, %s3809_s15  ;;  %v1045_v21 = vmul.f32 %v1044_v59, %v3861_v37  ;;  %v1054_v10 = vrot.slane %v1047_v55, 5 }
 0x122   :  { %v1028_v47 = vsel %vm215_vm0, %v1026_v53, %v1027_v35  ;;  %v1030_v18 = vsel %vm215_vm0, %v1027_v35, %v1029_v3  ;;  %v1072_v53 = vmul.f32 %v1069_v23, %v3857_v26 }
 0x123   :  { %v4234_v50 = vpop.permute.xlu2 %750  ;;  %1006 = vrot.lane.b32.xlu0 %v1003_v7, %s3809_s15  ;;  %v1046_v7 = vmul.f32 %v1044_v59, %v3863_v38 }
 0x124   :  { %6289 = vst [vmem:[#allocation50_spill] sm:$0xff] %v4234_v50  ;;  %v1071_v50 = vmul.f32 %v1069_v23, %v3863_v38  ;;  %v1079_v51 = vrot.slane %v1072_v53, 6 }
 0x125   :  { %1008 = vrot.lane.b32.xlu1 %v1005_v45, %s3809_s15  ;;  %v4238_v57 = vpop.permute.xlu0 %676 }
 0x126   :  { %6290 = vst [vmem:[#allocation51_spill] sm:$0xff] %v4238_v57  ;;  %v1051_v57 = vrot.slane %v1045_v21, 5  ;;  %v1070_v21 = vmul.f32 %v1069_v23, %v3861_v37 }
 0x127   :  { %v4240_v5 = vpop.permute.xlu1 %678 }
 0x128   :  { %6291 = vst [vmem:[#allocation52_spill] sm:$0xff] %v4240_v5  ;;  %v1052_v5 = vrot.slane %v1046_v7, 5  ;;  %v1094_v7 = vstv %s3573_s22  ;;  %s3600_s22 = sld [smem:[#allocation4 + $0x34]] }
 0x129   :  { %1035 = vrot.lane.b32.xlu2 %v1029_v3, %s3809_s15  ;;  %v1077_v3 = vrot.slane %v1071_v50, 6  ;;  %v1076_v50 = vrot.slane %v1070_v21, 6  ;;  %v1119_v21 = vstv %s3574_s23  ;;  %s3601_s23 = sld [smem:[#allocation4 + $0x3b]] }
 0x12a   :  { %v1053_v35 = vsel %vm215_vm0, %v1051_v57, %v1052_v5  ;;  %v1055_v55 = vsel %vm215_vm0, %v1052_v5, %v1054_v10 }
 0x12b   :  { %v4248_v45 = vpop.permute.xlu2 %770  ;;  %1031 = vrot.lane.b32.xlu0 %v1028_v47, %s3809_s15  ;;  %v1078_v53 = vsel %vm392_vm2, %v1076_v50, %v1077_v3 }
 0x12c   :  { %6292 = vst [vmem:[#allocation53_spill] sm:$0xff] %v4248_v45 }
 0x12d   :  { %1033 = vrot.lane.b32.xlu1 %v1030_v18, %s3809_s15  ;;  %v4254_v11 = vpop.permute.xlu0 %701  ;;  %v1080_v18 = vsel %vm392_vm2, %v1077_v3, %v1079_v51  ;;  %v1095_v51 = vmul.f32 %v1094_v7, %v3861_v37  ;;  %v1121_v3 = vmul.f32 %v1119_v21, %v3863_v38 }
 0x12e   :  { %6293 = vst [vmem:[#allocation54_spill] sm:$0xff] %v4254_v11  ;;  %v1097_v11 = vmul.f32 %v1094_v7, %v3857_v26 }
 0x12f   :  { %v4256_v59 = vpop.permute.xlu1 %703 }
 0x130   :  { %6294 = vst [vmem:[#allocation55_spill] sm:$0xff] %v4256_v59  ;;  %v1096_v59 = vmul.f32 %v1094_v7, %v3863_v38 }
 0x131   :  { %1060 = vrot.lane.b32.xlu2 %v1054_v10, %s3809_s15  ;;  %v1104_v10 = vrot.slane %v1097_v11, 6  ;;  %v1122_v11 = vmul.f32 %v1119_v21, %v3857_v26 }
 0x132   :  { %v1102_v23 = vrot.slane %v1096_v59, 6  ;;  %v1120_v59 = vmul.f32 %v1119_v21, %v3861_v37 }
 0x133   :  { %v4261_v47 = vpop.permute.xlu2 %790  ;;  %1056 = vrot.lane.b32.xlu0 %v1053_v35, %s3809_s15 }
 0x134   :  { %6295 = vst [vmem:[#allocation56_spill] sm:$0xff] %v4261_v47  ;;  %v3705_v47 = vld [vmem:[#allocation10 + $0x18] sm:$0xff] }
 0x135   :  { %1058 = vrot.lane.b32.xlu1 %v1055_v55, %s3809_s15  ;;  %v4269_v57 = vpop.permute.xlu0 %726  ;;  %v1105_v55 = vsel %vm392_vm2, %v1102_v23, %v1104_v10  ;;  %v1129_v10 = vrot.slane %v1122_v11, 2  ;;  %v74_v22 = vadd.f32 %v3706_v15, %v3705_v47 }
 0x136   :  { %6296 = vst [vmem:[#allocation57_spill] sm:$0xff] %v4269_v57  ;;  %v1101_v57 = vrot.slane %v1095_v51, 6  ;;  %v1127_v51 = vrot.slane %v1121_v3, 2 }
 0x137   :  { %v4271_v5 = vpop.permute.xlu1 %728 }
 0x138   :  { %6297 = vst [vmem:[#allocation58_spill] sm:$0xff] %v4271_v5  ;;  %v1103_v7 = vsel %vm392_vm2, %v1101_v57, %v1102_v23  ;;  %v1130_v11 = vsel %vm443_vm3, %v1127_v51, %v1129_v10 }
 0x139   :  { %1085 = vrot.lane.b32.xlu2 %v1080_v18, %s3810_s25 }
 0x13b   :  { %v4275_v35 = vpop.permute.xlu2 %810  ;;  %1081 = vrot.lane.b32.xlu0 %v1076_v50, %s3810_s25 }
 0x13c   :  { %6298 = vst [vmem:[#allocation59_spill] sm:$0xff] %v4275_v35 }
 0x13d   :  { %1083 = vrot.lane.b32.xlu1 %v1078_v53, %s3810_s25  ;;  %v4281_v5 = vpop.permute.xlu0 %746  ;;  %v1126_v53 = vrot.slane %v1120_v59, 2 }
 0x13e   :  { %6299 = vst [vmem:[#allocation60_spill] sm:$0xff] %v4281_v5 }
 0x13f   :  { %v4283_v18 = vpop.permute.xlu1 %748  ;;  %v1128_v23 = vsel %vm443_vm3, %v1126_v53, %v1127_v51 }
 0x140   :  { %6300 = vst [vmem:[#allocation61_spill] sm:$0xff] %v4283_v18  ;;  %v1144_v18 = vstv %s3575_s26  ;;  %s3602_s26 = sld [smem:[#allocation4 + $0x42]] }
 0x141   :  { %1110 = vrot.lane.b32.xlu2 %v1105_v55, %s3810_s25  ;;  %v1147_v21 = vmul.f32 %v1144_v18, %v3857_v26 }
 0x143   :  { %v4290_v50 = vpop.permute.xlu2 %835  ;;  %1106 = vrot.lane.b32.xlu0 %v1101_v57, %s3810_s25  ;;  %v1146_v57 = vmul.f32 %v1144_v18, %v3863_v38  ;;  %v1154_v3 = vrot.slane %v1147_v21, 2 }
 0x144   :  { %6301 = vst [vmem:[#allocation62_spill] sm:$0xff] %v4290_v50  ;;  %v1145_v50 = vmul.f32 %v1144_v18, %v3861_v37 }
 0x145   :  { %1108 = vrot.lane.b32.xlu1 %v1103_v7, %s3810_s25  ;;  %v4294_v55 = vpop.permute.xlu0 %766 }
 0x146   :  { %6302 = vst [vmem:[#allocation63_spill] sm:$0xff] %v4294_v55  ;;  %v1151_v7 = vrot.slane %v1145_v50, 2  ;;  %v1152_v55 = vrot.slane %v1146_v57, 2 }
 0x147   :  { %v4296_v5 = vpop.permute.xlu1 %768 }
 0x148   :  { %6303 = vst [vmem:[#allocation64_spill] sm:$0xff] %v4296_v5  ;;  %v1169_v5 = vstv %s3576_s27  ;;  %s3603_s27 = sld [smem:[#allocation4 + $0x49]] }
 0x149   :  { %1135 = vrot.lane.b32.xlu2 %v1129_v10, %s3810_s25  ;;  %v1172_v18 = vmul.f32 %v1169_v5, %v3857_v26  ;;  %v1153_v10 = vsel %vm443_vm3, %v1151_v7, %v1152_v55  ;;  %v1170_v51 = vmul.f32 %v1169_v5, %v3861_v37  ;;  %v1171_v21 = vmul.f32 %v1169_v5, %v3863_v38 }
 0x14b   :  { %v4304_v59 = vpop.permute.xlu2 %860  ;;  %1131 = vrot.lane.b32.xlu0 %v1128_v23, %s3810_s25  ;;  %v1155_v23 = vsel %vm443_vm3, %v1152_v55, %v1154_v3  ;;  %v1179_v57 = vrot.slane %v1172_v18, 2  ;;  %v3702_v55 = vld [vmem:[#allocation10 + $0x10] sm:$0xff] }
 0x14c   :  { %6304 = vst [vmem:[#allocation65_spill] sm:$0xff] %v4304_v59 }
 0x14d   :  { %1133 = vrot.lane.b32.xlu1 %v1130_v11, %s3810_s25  ;;  %v4308_v35 = vpop.permute.xlu0 %786  ;;  %v1176_v11 = vrot.slane %v1170_v51, 2 }
 0x14e   :  { %6305 = vst [vmem:[#allocation66_spill] sm:$0xff] %v4308_v35  ;;  %v1194_v35 = vstv %s3577_s28  ;;  %s3604_s28 = sld [smem:[#allocation4 + $0x50]] }
 0x14f   :  { %v4310_v53 = vpop.permute.xlu1 %788  ;;  %v1197_v5 = vmul.f32 %v1194_v35, %v3857_v26  ;;  %v1195_v18 = vmul.f32 %v1194_v35, %v3861_v37  ;;  %v1196_v51 = vmul.f32 %v1194_v35, %v3863_v38  ;;  %v75_v35 = vadd.f32 %v3708_v58, %v3707_v1  ;;  %v3711_v58 = vld [vmem:[#allocation10 + $0x38] sm:$0xff] }
 0x150   :  { %6306 = vst [vmem:[#allocation67_spill] sm:$0xff] %v4310_v53  ;;  %v1177_v53 = vrot.slane %v1171_v21, 2 }
 0x151   :  { %1160 = vrot.lane.b32.xlu2 %v1154_v3, %s3810_s25  ;;  %v3703_v3 = vld [vmem:[#allocation10 + $0x28] sm:$0xff]  ;;  %v85_v1 = vadd.f32 %v3711_v58, %v75_v35 }
 0x152   :  { %v1180_v21 = vsel %vm443_vm3, %v1177_v53, %v1179_v57 }
 0x153   :  { %v4318_v50 = vpop.permute.xlu2 %885  ;;  %1156 = vrot.lane.b32.xlu0 %v1153_v10, %s3810_s25  ;;  %v1178_v10 = vsel %vm443_vm3, %v1176_v11, %v1177_v53  ;;  %v1202_v11 = vrot.slane %v1196_v51, 2 }
 0x154   :  { %6307 = vst [vmem:[#allocation68_spill] sm:$0xff] %v4318_v50  ;;  %v76_v50 = vadd.f32 %v3703_v3, %v3702_v55  ;;  %v1201_v55 = vrot.slane %v1195_v18, 2  ;;  %v1219_v3 = vstv %s3578_s29  ;;  %s3605_s29 = sld [smem:[#allocation4 + $0x57]] }
 0x155   :  { %1158 = vrot.lane.b32.xlu1 %v1155_v23, %s3810_s25  ;;  %v4322_v39 = vpop.permute.xlu0 %806  ;;  %v1221_v18 = vmul.f32 %v1219_v3, %v3863_v38 }
 0x156   :  { %6308 = vst [vmem:[#allocation69_spill] sm:$0xff] %v4322_v39  ;;  %v3704_v39 = vld [vmem:[#allocation10 + $0x40] sm:$0xff]  ;;  %v1203_v47 = vsel %vm443_vm3, %v1201_v55, %v1202_v11 }
 0x157   :  { %v4324_v7 = vpop.permute.xlu1 %808  ;;  %v86_v32 = vadd.f32 %v3704_v39, %v76_v50  ;;  %v3709_v39 = vld [vmem:[#allocation10 + $0x58] sm:$0xff] }
 0x158   :  { %6309 = vst [vmem:[#allocation70_spill] sm:$0xff] %v4324_v7  ;;  %v1204_v7 = vrot.slane %v1197_v5, 2  ;;  %v3710_v5 = vld [vmem:[#allocation10 + $0x30] sm:$0xff] }
 0x159   :  { %1185 = vrot.lane.b32.xlu2 %v1179_v57, %s3810_s25  ;;  %v1222_v57 = vmul.f32 %v1219_v3, %v3857_v26  ;;  %v96_v50 = vadd.f32 %v3709_v39, %v86_v32  ;;  %v84_v15 = vadd.f32 %v3710_v5, %v74_v22  ;;  %v3713_v39 = vld [vmem:[#allocation10 + $0x48] sm:$0xff]  ;;  %v1227_v5 = vrot.slane %v1221_v18, 6 }
 0x15a   :  { %v1205_v51 = vsel %vm443_vm3, %v1202_v11, %v1204_v7 }
 0x15b   :  { %v4332_v23 = vpop.permute.xlu2 %910  ;;  %1181 = vrot.lane.b32.xlu0 %v1178_v10, %s3810_s25  ;;  %v1220_v10 = vmul.f32 %v1219_v3, %v3861_v37  ;;  %v94_v22 = vadd.f32 %v3713_v39, %v84_v15  ;;  %v3717_v15 = vld [vmem:[#allocation10 + $0x68] sm:$0xff] }
 0x15c   :  { %6310 = vst [vmem:[#allocation71_spill] sm:$0xff] %v4332_v23  ;;  %v3714_v23 = vld [vmem:[#allocation10 + $0x50] sm:$0xff] }
 0x15d   :  { %1183 = vrot.lane.b32.xlu1 %v1180_v21, %s3810_s25  ;;  %v4336_v30 = vpop.permute.xlu0 %831  ;;  %v1226_v55 = vrot.slane %v1220_v10, 6  ;;  %v95_v3 = vadd.f32 %v3714_v23, %v85_v1  ;;  %v3718_v1 = vld [vmem:[#allocation10 + $0x78] sm:$0xff] }
 0x15e   :  { %6311 = vst [vmem:[#allocation72_spill] sm:$0xff] %v4336_v30  ;;  %v3712_v30 = vld [vmem:[#allocation10 + $0x70] sm:$0xff] }
 0x15f   :  { %v4338_v53 = vpop.permute.xlu1 %833  ;;  %v106_v32 = vadd.f32 %v3712_v30, %v96_v50  ;;  %v1228_v30 = vsel %vm392_vm2, %v1226_v55, %v1227_v5  ;;  %v1377_v50 = vstv %s3586_s30  ;;  %v105_v58 = vadd.f32 %v3717_v15, %v95_v3  ;;  %s3606_s30 = sld [smem:[#allocation4 + $0x5e]] }
 0x160   :  { %6312 = vst [vmem:[#allocation73_spill] sm:$0xff] %v4338_v53  ;;  %v1229_v53 = vrot.slane %v1222_v57, 6  ;;  %v3716_v57 = vld [vmem:[#allocation10 + $0x60] sm:$0xff]  ;;  %v1397_v3 = vstv %s3587_s4  ;;  %s3607_s4 = sld [smem:[#allocation4 + $0x35]] }
 0x161   :  { %1210 = vrot.lane.b32.xlu2 %v1204_v7, %s3810_s25  ;;  %v3715_v7 = vld [vmem:[#allocation10 + $0x88] sm:$0xff] }
 0x162   :  { %v4355_v11 = vadd.f32 %v3715_v7, %v106_v32  ;;  %v1230_v10 = vsel %vm392_vm2, %v1227_v5, %v1229_v53  ;;  %v3719_v32 = vld [vmem:[#allocation10 + $0x80] sm:$0xff] }
 0x163   :  { %v4346_v21 = vpop.permute.xlu2 %935  ;;  %1206 = vrot.lane.b32.xlu0 %v1203_v47, %s3810_s25  ;;  %v104_v47 = vadd.f32 %v3716_v57, %v94_v22  ;;  %v4366_v39 = vadd.f32 %v3719_v32, %v105_v58  ;;  %v1417_v58 = vstv %s3588_s7  ;;  %s3608_s7 = sld [smem:[#allocation4 + $0x3c]] }
 0x164   :  { %6313 = vst [vmem:[#allocation74_spill] sm:$0xff] %v4346_v21  ;;  %v1380_v18 = vmul.f32 %v1377_v50, %v4355_v11  ;;  %v1400_v57 = vmul.f32 %v1397_v3, %v4355_v11 }
 0x165   :  { %1208 = vrot.lane.b32.xlu1 %v1205_v51, %s3810_s25  ;;  %v4350_v25 = vpop.permute.xlu0 %856  ;;  %v4363_v51 = vadd.f32 %v3718_v1, %v104_v47  ;;  %v1379_v5 = vmul.f32 %v1377_v50, %v4366_v39 }
 0x166   :  { %6314 = vst [vmem:[#allocation75_spill] sm:$0xff] %v4350_v25 }
 0x167   :  { %v4352_v35 = vpop.permute.xlu1 %858  ;;  %v1398_v15 = vmul.f32 %v1397_v3, %v4363_v51 }
 0x168   :  { %6315 = vst [vmem:[#allocation76_spill] sm:$0xff] %v4352_v35 }
 0x169   :  { %1235 = vrot.lane.b32.xlu2 %v1229_v53, %s3810_s25  ;;  %v1378_v53 = vmul.f32 %v1377_v50, %v4363_v51  ;;  %v1399_v50 = vmul.f32 %v1397_v3, %v4366_v39  ;;  %v1437_v3 = vstv %s3589_s9  ;;  %s3609_s9 = sld [smem:[#allocation4 + $0x43]] }
 0x16b   :  { %v4359_v23 = vpop.permute.xlu2 %960  ;;  %1231 = vrot.lane.b32.xlu0 %v1228_v30, %s3810_s25 }
 0x16c   :  { %6316 = vst [vmem:[#allocation77_spill] sm:$0xff] %v4359_v23 }
 0x16d   :  { %1233 = vrot.lane.b32.xlu1 %v1230_v10, %s3810_s25  ;;  %v4368_v22 = vpop.permute.xlu0 %881 }
 0x16e   :  { %6317 = vst [vmem:[#allocation78_spill] sm:$0xff] %v4368_v22 }
 0x16f   :  { %v4370_v55 = vpop.permute.xlu1 %883 }
 0x170   :  { %6318 = vst [vmem:[#allocation79_spill] sm:$0xff] %v4370_v55 }
 0x171   :  { %1388 = vrot.lane.b32.xlu2 %v1380_v18, %s3805_s8  ;;  %v1420_v18 = vmul.f32 %v1417_v58, %v4355_v11 }
 0x173   :  { %v4375_v7 = vpop.permute.xlu2 %985  ;;  %1384 = vrot.lane.b32.xlu0 %v1378_v53, %s3805_s8  ;;  %v1418_v53 = vmul.f32 %v1417_v58, %v4363_v51 }
 0x174   :  { %6319 = vst [vmem:[#allocation80_spill] sm:$0xff] %v4375_v7 }
 0x175   :  { %1386 = vrot.lane.b32.xlu1 %v1379_v5, %s3805_s8  ;;  %v4380_v47 = vpop.permute.xlu0 %906  ;;  %v1419_v5 = vmul.f32 %v1417_v58, %v4366_v39 }
 0x176   :  { %6320 = vst [vmem:[#allocation81_spill] sm:$0xff] %v4380_v47 }
 0x177   :  { %v4382_v30 = vpop.permute.xlu1 %908 }
 0x178   :  { %6321 = vst [vmem:[#allocation82_spill] sm:$0xff] %v4382_v30 }
 0x179   :  { %1408 = vrot.lane.b32.xlu2 %v1400_v57, %s3805_s8 }
 0x17b   :  { %v4387_v10 = vpop.permute.xlu2 %1010  ;;  %1404 = vrot.lane.b32.xlu0 %v1398_v15, %s3805_s8  ;;  %v1440_v15 = vmul.f32 %v1437_v3, %v4355_v11 }
 0x17c   :  { %6322 = vst [vmem:[#allocation83_spill] sm:$0xff] %v4387_v10 }
 0x17d   :  { %1406 = vrot.lane.b32.xlu1 %v1399_v50, %s3805_s8  ;;  %v4392_v1 = vpop.permute.xlu0 %931  ;;  %v1457_v50 = vstv %s3590_s10  ;;  %s3610_s10 = sld [smem:[#allocation4 + $0x4a]] }
 0x17e   :  { %6323 = vst [vmem:[#allocation84_spill] sm:$0xff] %v4392_v1  ;;  %v1460_v58 = vmul.f32 %v1457_v50, %v4355_v11  ;;  %v1439_v1 = vmul.f32 %v1437_v3, %v4366_v39  ;;  %v1459_v30 = vmul.f32 %v1457_v50, %v4366_v39 }
 0x17f   :  { %v4394_v32 = vpop.permute.xlu1 %933 }
 0x180   :  { %6324 = vst [vmem:[#allocation85_spill] sm:$0xff] %v4394_v32  ;;  %v1465_v55 = vrot.slane %v1459_v30, 4 }
 0x181   :  { %1428 = vrot.lane.b32.xlu2 %v1420_v18, %s3805_s8  ;;  %v1438_v18 = vmul.f32 %v1437_v3, %v4363_v51 }
 0x183   :  { %v4399_v57 = vpop.permute.xlu2 %1035  ;;  %1424 = vrot.lane.b32.xlu0 %v1418_v53, %s3805_s8  ;;  %v1458_v53 = vmul.f32 %v1457_v50, %v4363_v51 }
 0x184   :  { %6325 = vst [vmem:[#allocation86_spill] sm:$0xff] %v4399_v57 }
 0x185   :  { %1426 = vrot.lane.b32.xlu1 %v1419_v5, %s3805_s8  ;;  %v4404_v25 = vpop.permute.xlu0 %956  ;;  %v1467_v5 = vrot.slane %v1460_v58, 4 }
 0x186   :  { %6326 = vst [vmem:[#allocation87_spill] sm:$0xff] %v4404_v25  ;;  %v1464_v25 = vrot.slane %v1458_v53, 4 }
 0x187   :  { %v4406_v32 = vpop.permute.xlu1 %958 }
 0x188   :  { %6327 = vst [vmem:[#allocation88_spill] sm:$0xff] %v4406_v32  ;;  %v1466_v50 = vsel %vm157_vm6, %v1464_v25, %v1465_v55 }
 0x189   :  { %1448 = vrot.lane.b32.xlu2 %v1440_v15, %s3805_s8  ;;  %v1482_v15 = vstv %s3591_s11  ;;  %s3611_s11 = sld [smem:[#allocation4 + $0x51]] }
 0x18a   :  { %v1485_v3 = vmul.f32 %v1482_v15, %v4355_v11  ;;  %v1483_v57 = vmul.f32 %v1482_v15, %v4363_v51 }
 0x18b   :  { %v4414_v47 = vpop.permute.xlu2 %1060  ;;  %1444 = vrot.lane.b32.xlu0 %v1438_v18, %s3805_s8  ;;  %v1484_v18 = vmul.f32 %v1482_v15, %v4366_v39 }
 0x18c   :  { %6328 = vst [vmem:[#allocation89_spill] sm:$0xff] %v4414_v47  ;;  %v1492_v30 = vrot.slane %v1485_v3, 4  ;;  %v1489_v53 = vrot.slane %v1483_v57, 4  ;;  %v1532_v57 = vstv %s3593_s13  ;;  %s3613_s13 = sld [smem:[#allocation4 + $0x5f]] }
 0x18d   :  { %1446 = vrot.lane.b32.xlu1 %v1439_v1, %s3805_s8  ;;  %v4418_v22 = vpop.permute.xlu0 %981  ;;  %v1468_v1 = vsel %vm157_vm6, %v1465_v55, %v1467_v5  ;;  %v1534_v21 = vmul.f32 %v1532_v57, %v4366_v39 }
 0x18e   :  { %6329 = vst [vmem:[#allocation90_spill] sm:$0xff] %v4418_v22  ;;  %v1507_v22 = vstv %s3592_s12  ;;  %s3612_s12 = sld [smem:[#allocation4 + $0x58]] }
 0x18f   :  { %v4420_v32 = vpop.permute.xlu1 %983  ;;  %v1510_v15 = vmul.f32 %v1507_v22, %v4355_v11 }
 0x190   :  { %6330 = vst [vmem:[#allocation91_spill] sm:$0xff] %v4420_v32  ;;  %v1490_v32 = vrot.slane %v1484_v18, 4 }
 0x191   :  { %1473 = vrot.lane.b32.xlu2 %v1467_v5, %s3805_s8  ;;  %v1508_v5 = vmul.f32 %v1507_v22, %v4363_v51  ;;  %v1517_v18 = vrot.slane %v1510_v15, 4 }
 0x192   :  { %v1491_v55 = vsel %vm157_vm6, %v1489_v53, %v1490_v32  ;;  %v1493_v3 = vsel %vm157_vm6, %v1490_v32, %v1492_v30  ;;  %v1535_v53 = vmul.f32 %v1532_v57, %v4355_v11 }
 0x193   :  { %v4428_v58 = vpop.permute.xlu2 %1085  ;;  %1469 = vrot.lane.b32.xlu0 %v1466_v50, %s3805_s8  ;;  %v1509_v50 = vmul.f32 %v1507_v22, %v4366_v39 }
 0x194   :  { %6331 = vst [vmem:[#allocation92_spill] sm:$0xff] %v4428_v58 }
 0x195   :  { %1471 = vrot.lane.b32.xlu1 %v1468_v1, %s3805_s8  ;;  %v4432_v35 = vpop.permute.xlu0 %1006 }
 0x196   :  { %6332 = vst [vmem:[#allocation93_spill] sm:$0xff] %v4432_v35  ;;  %v1515_v35 = vrot.slane %v1509_v50, 4 }
 0x197   :  { %v4434_v25 = vpop.permute.xlu1 %1008 }
 0x198   :  { %6333 = vst [vmem:[#allocation94_spill] sm:$0xff] %v4434_v25  ;;  %v1514_v25 = vrot.slane %v1508_v5, 4  ;;  %v1518_v15 = vsel %vm157_vm6, %v1515_v35, %v1517_v18  ;;  %v1533_v5 = vmul.f32 %v1532_v57, %v4363_v51 }
 0x199   :  { %1498 = vrot.lane.b32.xlu2 %v1492_v30, %s3805_s8  ;;  %v1540_v30 = vrot.slane %v1534_v21, 5 }
 0x19a   :  { %v1516_v32 = vsel %vm157_vm6, %v1514_v25, %v1515_v35 }
 0x19b   :  { %v4442_v1 = vpop.permute.xlu2 %1110  ;;  %1494 = vrot.lane.b32.xlu0 %v1491_v55, %s3805_s8  ;;  %v1542_v55 = vrot.slane %v1535_v53, 5 }
 0x19c   :  { %6334 = vst [vmem:[#allocation95_spill] sm:$0xff] %v4442_v1  ;;  %v1539_v1 = vrot.slane %v1533_v5, 5  ;;  %v1582_v5 = vstv %s3595_s17  ;;  %s3615_s17 = sld [smem:[#allocation4 + $0x3d]] }
 0x19d   :  { %1496 = vrot.lane.b32.xlu1 %v1493_v3, %s3805_s8  ;;  %v4448_v10 = vpop.permute.xlu0 %1031  ;;  %v1543_v50 = vsel %vm215_vm0, %v1540_v30, %v1542_v55 }
 0x19e   :  { %6335 = vst [vmem:[#allocation96_spill] sm:$0xff] %v4448_v10  ;;  %v1557_v10 = vstv %s3594_s14  ;;  %s3614_s14 = sld [smem:[#allocation4 + $0x36]] }
 0x19f   :  { %v4450_v22 = vpop.permute.xlu1 %1033  ;;  %v1560_v21 = vmul.f32 %v1557_v10, %v4355_v11  ;;  %v1558_v35 = vmul.f32 %v1557_v10, %v4363_v51  ;;  %v1559_v57 = vmul.f32 %v1557_v10, %v4366_v39  ;;  %v1585_v10 = vmul.f32 %v1582_v5, %v4355_v11 }
 0x1a0   :  { %6336 = vst [vmem:[#allocation97_spill] sm:$0xff] %v4450_v22 }
 0x1a1   :  { %1523 = vrot.lane.b32.xlu2 %v1517_v18, %s3805_s8  ;;  %v1541_v18 = vsel %vm215_vm0, %v1539_v1, %v1540_v30  ;;  %v1564_v55 = vrot.slane %v1558_v35, 1 }
 0x1a3   :  { %v4455_v3 = vpop.permute.xlu2 %1135  ;;  %1519 = vrot.lane.b32.xlu0 %v1516_v32, %s3805_s8  ;;  %v1567_v32 = vrot.slane %v1560_v21, 1 }
 0x1a4   :  { %6337 = vst [vmem:[#allocation98_spill] sm:$0xff] %v4455_v3 }
 0x1a5   :  { %1521 = vrot.lane.b32.xlu1 %v1518_v15, %s3805_s8  ;;  %v4461_v22 = vpop.permute.xlu0 %1056  ;;  %v1565_v15 = vrot.slane %v1559_v57, 1  ;;  %v1592_v57 = vrot.slane %v1585_v10, 1 }
 0x1a6   :  { %6338 = vst [vmem:[#allocation99_spill] sm:$0xff] %v4461_v22 }
 0x1a7   :  { %v4463_v25 = vpop.permute.xlu1 %1058  ;;  %v1566_v30 = vsel %vm241_vm1, %v1564_v55, %v1565_v15  ;;  %v1568_v21 = vsel %vm241_vm1, %v1565_v15, %v1567_v32 }
 0x1a8   :  { %6339 = vst [vmem:[#allocation100_spill] sm:$0xff] %v4463_v25  ;;  %v1583_v25 = vmul.f32 %v1582_v5, %v4363_v51 }
 0x1a9   :  { %1548 = vrot.lane.b32.xlu2 %v1543_v50, %s3806_s16 }
 0x1ab   :  { %v4470_v53 = vpop.permute.xlu2 %1160  ;;  %1544 = vrot.lane.b32.xlu0 %v1539_v1, %s3806_s16  ;;  %v1584_v1 = vmul.f32 %v1582_v5, %v4366_v39 }
 0x1ac   :  { %6340 = vst [vmem:[#allocation101_spill] sm:$0xff] %v4470_v53 }
 0x1ad   :  { %1546 = vrot.lane.b32.xlu1 %v1541_v18, %s3806_s16  ;;  %v4474_v50 = vpop.permute.xlu0 %1081  ;;  %v1589_v18 = vrot.slane %v1583_v25, 1 }
 0x1ae   :  { %6341 = vst [vmem:[#allocation102_spill] sm:$0xff] %v4474_v50  ;;  %v1607_v50 = vstv %s3596_s18  ;;  %s3616_s18 = sld [smem:[#allocation4 + $0x44]] }
 0x1af   :  { %v4476_v22 = vpop.permute.xlu1 %1083  ;;  %v1610_v5 = vmul.f32 %v1607_v50, %v4355_v11  ;;  %v1608_v15 = vmul.f32 %v1607_v50, %v4363_v51  ;;  %v1609_v10 = vmul.f32 %v1607_v50, %v4366_v39 }
 0x1b0   :  { %6342 = vst [vmem:[#allocation103_spill] sm:$0xff] %v4476_v22  ;;  %v1590_v22 = vrot.slane %v1584_v1, 1 }
 0x1b1   :  { %1573 = vrot.lane.b32.xlu2 %v1567_v32, %s3806_s16  ;;  %v1617_v1 = vrot.slane %v1610_v5, 1 }
 0x1b2   :  { %v1591_v32 = vsel %vm241_vm1, %v1589_v18, %v1590_v22 }
 0x1b3   :  { %v4484_v35 = vpop.permute.xlu2 %1185  ;;  %1569 = vrot.lane.b32.xlu0 %v1566_v30, %s3806_s16  ;;  %v1593_v30 = vsel %vm241_vm1, %v1590_v22, %v1592_v57 }
 0x1b4   :  { %6343 = vst [vmem:[#allocation104_spill] sm:$0xff] %v4484_v35 }
 0x1b5   :  { %1571 = vrot.lane.b32.xlu1 %v1568_v21, %s3806_s16  ;;  %v4488_v3 = vpop.permute.xlu0 %1106  ;;  %v1614_v21 = vrot.slane %v1608_v15, 1 }
 0x1b6   :  { %6344 = vst [vmem:[#allocation105_spill] sm:$0xff] %v4488_v3  ;;  %v1632_v3 = vstv %s3597_s19  ;;  %s3618_s19 = sld [smem:[#allocation4 + $0x52]] }
 0x1b7   :  { %v4490_v55 = vpop.permute.xlu1 %1108  ;;  %v1635_v50 = vmul.f32 %v1632_v3, %v4355_v11  ;;  %v1634_v5 = vmul.f32 %v1632_v3, %v4366_v39 }
 0x1b8   :  { %6345 = vst [vmem:[#allocation106_spill] sm:$0xff] %v4490_v55  ;;  %v1615_v55 = vrot.slane %v1609_v10, 1 }
 0x1b9   :  { %1598 = vrot.lane.b32.xlu2 %v1592_v57, %s3806_s16  ;;  %v1633_v57 = vmul.f32 %v1632_v3, %v4363_v51  ;;  %v1642_v10 = vrot.slane %v1635_v50, 1 }
 0x1ba   :  { %v1616_v22 = vsel %vm241_vm1, %v1614_v21, %v1615_v55 }
 0x1bb   :  { %v4498_v25 = vpop.permute.xlu2 %1210  ;;  %1594 = vrot.lane.b32.xlu0 %v1591_v32, %s3806_s16  ;;  %v1618_v32 = vsel %vm241_vm1, %v1615_v55, %v1617_v1 }
 0x1bc   :  { %6346 = vst [vmem:[#allocation107_spill] sm:$0xff] %v4498_v25 }
 0x1bd   :  { %1596 = vrot.lane.b32.xlu1 %v1593_v30, %s3806_s16  ;;  %v4502_v35 = vpop.permute.xlu0 %1131  ;;  %v1639_v30 = vrot.slane %v1633_v57, 1 }
 0x1be   :  { %6347 = vst [vmem:[#allocation108_spill] sm:$0xff] %v4502_v35  ;;  %v1657_v35 = vstv %s3598_s20  ;;  %s3619_s20 = sld [smem:[#allocation4 + $0x59]] }
 0x1bf   :  { %v4504_v18 = vpop.permute.xlu1 %1133  ;;  %v1660_v3 = vmul.f32 %v1657_v35, %v4355_v11  ;;  %v1659_v50 = vmul.f32 %v1657_v35, %v4366_v39 }
 0x1c0   :  { %6348 = vst [vmem:[#allocation109_spill] sm:$0xff] %v4504_v18  ;;  %v1640_v18 = vrot.slane %v1634_v5, 1 }
 0x1c1   :  { %1623 = vrot.lane.b32.xlu2 %v1617_v1, %s3806_s16  ;;  %v1658_v1 = vmul.f32 %v1657_v35, %v4363_v51  ;;  %v1667_v5 = vrot.slane %v1660_v3, 5 }
 0x1c2   :  { %v1641_v55 = vsel %vm241_vm1, %v1639_v30, %v1640_v18 }
 0x1c3   :  { %v4512_v15 = vpop.permute.xlu2 %1235  ;;  %1619 = vrot.lane.b32.xlu0 %v1616_v22, %s3806_s16  ;;  %v1643_v22 = vsel %vm241_vm1, %v1640_v18, %v1642_v10 }
 0x1c4   :  { %6349 = vst [vmem:[#allocation110_spill] sm:$0xff] %v4512_v15 }
 0x1c5   :  { %1621 = vrot.lane.b32.xlu1 %v1618_v32, %s3806_s16  ;;  %v4516_v25 = vpop.permute.xlu0 %1156  ;;  %v1664_v32 = vrot.slane %v1658_v1, 5  ;;  %v1707_v1 = vstv %s3600_s22  ;;  %s3535_s22 = sld [smem:[#allocation4 + $0x23]] }
 0x1c6   :  { %6350 = vst [vmem:[#allocation111_spill] sm:$0xff] %v4516_v25  ;;  %v1665_v25 = vrot.slane %v1659_v50, 5 }
 0x1c7   :  { %v4518_v21 = vpop.permute.xlu1 %1158 }
 0x1c8   :  { %6351 = vst [vmem:[#allocation112_spill] sm:$0xff] %v4518_v21  ;;  %v1682_v21 = vstv %s3599_s21  ;;  %v1666_v18 = vsel %vm215_vm0, %v1664_v32, %v1665_v25  ;;  %v1668_v3 = vsel %vm215_vm0, %v1665_v25, %v1667_v5  ;;  %v1710_v32 = vmul.f32 %v1707_v1, %v4355_v11  ;;  %s3534_s21 = sld [smem:[#allocation4 + $0x1c]] }
 0x1c9   :  { %1648 = vrot.lane.b32.xlu2 %v1642_v10, %s3806_s16  ;;  %v1685_v35 = vmul.f32 %v1682_v21, %v4355_v11  ;;  %v1683_v10 = vmul.f32 %v1682_v21, %v4363_v51 }
 0x1cb   :  { %v4526_v57 = vpop.permute.xlu2 %1388  ;;  %1644 = vrot.lane.b32.xlu0 %v1641_v55, %s3806_s16  ;;  %v1684_v55 = vmul.f32 %v1682_v21, %v4366_v39  ;;  %v1692_v50 = vrot.slane %v1685_v35, 5 }
 0x1cc   :  { %6352 = vst [vmem:[#allocation113_spill] sm:$0xff] %v4526_v57  ;;  %v1709_v57 = vmul.f32 %v1707_v1, %v4366_v39 }
 0x1cd   :  { %1646 = vrot.lane.b32.xlu1 %v1643_v22, %s3806_s16  ;;  %v4530_v15 = vpop.permute.xlu0 %1181 }
 0x1ce   :  { %6353 = vst [vmem:[#allocation114_spill] sm:$0xff] %v4530_v15  ;;  %v1690_v15 = vrot.slane %v1684_v55, 5  ;;  %v1732_v55 = vstv %s3601_s23  ;;  %s117_s23 = sld [smem:[#allocation4]] }
 0x1cf   :  { %v4532_v30 = vpop.permute.xlu1 %1183 }
 0x1d0   :  { %6354 = vst [vmem:[#allocation115_spill] sm:$0xff] %v4532_v30  ;;  %v1689_v30 = vrot.slane %v1683_v10, 5  ;;  %v1693_v35 = vsel %vm215_vm0, %v1690_v15, %v1692_v50  ;;  %v1708_v10 = vmul.f32 %v1707_v1, %v4363_v51 }
 0x1d1   :  { %1673 = vrot.lane.b32.xlu2 %v1667_v5, %s3806_s16  ;;  %v1715_v5 = vrot.slane %v1709_v57, 6 }
 0x1d2   :  { %v1691_v25 = vsel %vm215_vm0, %v1689_v30, %v1690_v15  ;;  %v1714_v30 = vrot.slane %v1708_v10, 6 }
 0x1d3   :  { %v4540_v22 = vpop.permute.xlu2 %1408  ;;  %1669 = vrot.lane.b32.xlu0 %v1666_v18, %s3806_s16 }
 0x1d4   :  { %6355 = vst [vmem:[#allocation116_spill] sm:$0xff] %v4540_v22  ;;  %v1717_v22 = vrot.slane %v1710_v32, 6  ;;  %v1716_v32 = vsel %vm392_vm2, %v1714_v30, %v1715_v5 }
 0x1d5   :  { %1671 = vrot.lane.b32.xlu1 %v1668_v3, %s3806_s16  ;;  %v4546_v58 = vpop.permute.xlu0 %1206 }
 0x1d6   :  { %6356 = vst [vmem:[#allocation117_spill] sm:$0xff] %v4546_v58  ;;  %v1718_v3 = vsel %vm392_vm2, %v1715_v5, %v1717_v22  ;;  %v1735_v58 = vmul.f32 %v1732_v55, %v4355_v11  ;;  %v1733_v22 = vmul.f32 %v1732_v55, %v4363_v51 }
 0x1d7   :  { %v4548_v21 = vpop.permute.xlu1 %1208 }
 0x1d8   :  { %6357 = vst [vmem:[#allocation118_spill] sm:$0xff] %v4548_v21  ;;  %v1734_v21 = vmul.f32 %v1732_v55, %v4366_v39 }
 0x1d9   :  { %1698 = vrot.lane.b32.xlu2 %v1692_v50, %s3806_s16  ;;  %v1742_v50 = vrot.slane %v1735_v58, 6 }
 0x1da   :  { %v1740_v1 = vrot.slane %v1734_v21, 6 }
 0x1db   :  { %v4553_v18 = vpop.permute.xlu2 %1428  ;;  %1694 = vrot.lane.b32.xlu0 %v1691_v25, %s3806_s16 }
 0x1dc   :  { %6358 = vst [vmem:[#allocation119_spill] sm:$0xff] %v4553_v18 }
 0x1dd   :  { %1696 = vrot.lane.b32.xlu1 %v1693_v35, %s3806_s16  ;;  %v4561_v57 = vpop.permute.xlu0 %1231  ;;  %v1743_v35 = vsel %vm392_vm2, %v1740_v1, %v1742_v50 }
 0x1de   :  { %6359 = vst [vmem:[#allocation120_spill] sm:$0xff] %v4561_v57  ;;  %v1757_v57 = vstv %s3602_s26  ;;  %s3620_s26 = sld [smem:[#allocation4 + $0x60]] }
 0x1df   :  { %v4563_v15 = vpop.permute.xlu1 %1233  ;;  %v1760_v58 = vmul.f32 %v1757_v57, %v4355_v11  ;;  %v1758_v21 = vmul.f32 %v1757_v57, %v4363_v51  ;;  %v1759_v5 = vmul.f32 %v1757_v57, %v4366_v39 }
 0x1e0   :  { %6360 = vst [vmem:[#allocation121_spill] sm:$0xff] %v4563_v15  ;;  %v1739_v15 = vrot.slane %v1733_v22, 6 }
 0x1e1   :  { %1723 = vrot.lane.b32.xlu2 %v1718_v3, %s3807_s24  ;;  %v1767_v50 = vrot.slane %v1760_v58, 2  ;;  %v1765_v22 = vrot.slane %v1759_v5, 2 }
 0x1e2   :  { %v1741_v55 = vsel %vm392_vm2, %v1739_v15, %v1740_v1 }
 0x1e3   :  { %v4567_v25 = vpop.permute.xlu2 %1448  ;;  %1719 = vrot.lane.b32.xlu0 %v1714_v30, %s3807_s24  ;;  %v1768_v58 = vsel %vm443_vm3, %v1765_v22, %v1767_v50 }
 0x1e4   :  { %6361 = vst [vmem:[#allocation122_spill] sm:$0xff] %v4567_v25 }
 0x1e5   :  { %1721 = vrot.lane.b32.xlu1 %v1716_v32, %s3807_s24  ;;  %v4573_v10 = vpop.permute.xlu0 %1384  ;;  %v1764_v32 = vrot.slane %v1758_v21, 2 }
 0x1e6   :  { %6362 = vst [vmem:[#allocation123_spill] sm:$0xff] %v4573_v10 }
 0x1e7   :  { %v4575_v3 = vpop.permute.xlu1 %1386  ;;  %v1766_v1 = vsel %vm443_vm3, %v1764_v32, %v1765_v22 }
 0x1e8   :  { %6363 = vst [vmem:[#allocation124_spill] sm:$0xff] %v4575_v3  ;;  %v1782_v3 = vstv %s3603_s27  ;;  %s3531_s27 = sld [smem:[#allocation4 + $0x7]] }
 0x1e9   :  { %1748 = vrot.lane.b32.xlu2 %v1743_v35, %s3807_s24  ;;  %v1785_v57 = vmul.f32 %v1782_v3, %v4355_v11 }
 0x1eb   :  { %v4582_v30 = vpop.permute.xlu2 %1473  ;;  %1744 = vrot.lane.b32.xlu0 %v1739_v15, %s3807_s24  ;;  %v1784_v15 = vmul.f32 %v1782_v3, %v4366_v39  ;;  %v1792_v5 = vrot.slane %v1785_v57, 2 }
 0x1ec   :  { %6364 = vst [vmem:[#allocation125_spill] sm:$0xff] %v4582_v30  ;;  %v1783_v30 = vmul.f32 %v1782_v3, %v4363_v51 }
 0x1ed   :  { %1746 = vrot.lane.b32.xlu1 %v1741_v55, %s3807_s24  ;;  %v4586_v35 = vpop.permute.xlu0 %1404 }
 0x1ee   :  { %6365 = vst [vmem:[#allocation126_spill] sm:$0xff] %v4586_v35  ;;  %v1789_v55 = vrot.slane %v1783_v30, 2  ;;  %v1790_v35 = vrot.slane %v1784_v15, 2 }
 0x1ef   :  { %v4588_v10 = vpop.permute.xlu1 %1406 }
 0x1f0   :  { %6366 = vst [vmem:[#allocation127_spill] sm:$0xff] %v4588_v10  ;;  %v1807_v10 = vstv %s3604_s28  ;;  %s3536_s28 = sld [smem:[#allocation4 + $0x2a]] }
 0x1f1   :  { %1773 = vrot.lane.b32.xlu2 %v1767_v50, %s3807_s24  ;;  %v1810_v3 = vmul.f32 %v1807_v10, %v4355_v11  ;;  %v1791_v50 = vsel %vm443_vm3, %v1789_v55, %v1790_v35  ;;  %v1808_v22 = vmul.f32 %v1807_v10, %v4363_v51  ;;  %v1809_v57 = vmul.f32 %v1807_v10, %v4366_v39 }
 0x1f3   :  { %v4596_v21 = vpop.permute.xlu2 %1498  ;;  %1769 = vrot.lane.b32.xlu0 %v1766_v1, %s3807_s24  ;;  %v1793_v1 = vsel %vm443_vm3, %v1790_v35, %v1792_v5  ;;  %v1817_v15 = vrot.slane %v1810_v3, 2 }
 0x1f4   :  { %6367 = vst [vmem:[#allocation128_spill] sm:$0xff] %v4596_v21 }
 0x1f5   :  { %1771 = vrot.lane.b32.xlu1 %v1768_v58, %s3807_s24  ;;  %v4600_v25 = vpop.permute.xlu0 %1424  ;;  %v1814_v58 = vrot.slane %v1808_v22, 2 }
 0x1f6   :  { %6368 = vst [vmem:[#allocation129_spill] sm:$0xff] %v4600_v25  ;;  %v1832_v25 = vstv %s3605_s29  ;;  %s3621_s29 = sld [smem:[#allocation4 + $0x37]] }
 0x1f7   :  { %v4602_v32 = vpop.permute.xlu1 %1426  ;;  %v1835_v10 = vmul.f32 %v1832_v25, %v4355_v11  ;;  %v1834_v3 = vmul.f32 %v1832_v25, %v4366_v39 }
 0x1f8   :  { %6369 = vst [vmem:[#allocation130_spill] sm:$0xff] %v4602_v32  ;;  %v1815_v32 = vrot.slane %v1809_v57, 2 }
 0x1f9   :  { %1798 = vrot.lane.b32.xlu2 %v1792_v5, %s3807_s24  ;;  %v1833_v5 = vmul.f32 %v1832_v25, %v4363_v51  ;;  %v1842_v57 = vrot.slane %v1835_v10, 2 }
 0x1fa   :  { %v1816_v35 = vsel %vm443_vm3, %v1814_v58, %v1815_v32 }
 0x1fb   :  { %v4610_v30 = vpop.permute.xlu2 %1523  ;;  %1794 = vrot.lane.b32.xlu0 %v1791_v50, %s3807_s24  ;;  %v1818_v50 = vsel %vm443_vm3, %v1815_v32, %v1817_v15 }
 0x1fc   :  { %6370 = vst [vmem:[#allocation131_spill] sm:$0xff] %v4610_v30  ;;  %v2212_v46 = vstv %s3621_s29  ;;  %s3638_s29 = sld [smem:[#allocation8 + $0xf]] }
 0x1fd   :  { %1796 = vrot.lane.b32.xlu1 %v1793_v1, %s3807_s24  ;;  %v4614_v18 = vpop.permute.xlu0 %1444  ;;  %v1839_v1 = vrot.slane %v1833_v5, 2  ;;  %v1882_v5 = vstv %s3607_s4  ;;  %s4830_s4 = sld [smem:[#allocation4 + $0x15]] }
 0x1fe   :  { %6371 = vst [vmem:[#allocation132_spill] sm:$0xff] %v4614_v18  ;;  %v1857_v18 = vstv %s3606_s30  ;;  %s3532_s30 = sld [smem:[#allocation4 + $0xe]] }
 0x1ff   :  { %v4616_v55 = vpop.permute.xlu1 %1446  ;;  %v1860_v25 = vmul.f32 %v1857_v18, %v4355_v11 }
 0x200   :  { %6372 = vst [vmem:[#allocation133_spill] sm:$0xff] %v4616_v55  ;;  %v1840_v55 = vrot.slane %v1834_v3, 2 }
 0x201   :  { %1823 = vrot.lane.b32.xlu2 %v1817_v15, %s3807_s24  ;;  %v1858_v15 = vmul.f32 %v1857_v18, %v4363_v51  ;;  %v1867_v3 = vrot.slane %v1860_v25, 6 }
 0x202   :  { %v1841_v32 = vsel %vm443_vm3, %v1839_v1, %v1840_v55  ;;  %v1843_v10 = vsel %vm443_vm3, %v1840_v55, %v1842_v57  ;;  %v1885_v1 = vmul.f32 %v1882_v5, %v4355_v11 }
 0x203   :  { %v4624_v22 = vpop.permute.xlu2 %1548  ;;  %1819 = vrot.lane.b32.xlu0 %v1816_v35, %s3807_s24  ;;  %v1859_v35 = vmul.f32 %v1857_v18, %v4366_v39 }
 0x204   :  { %6373 = vst [vmem:[#allocation134_spill] sm:$0xff] %v4624_v22  ;;  %v1884_v22 = vmul.f32 %v1882_v5, %v4366_v39  ;;  %v134_v52 = vstv %s3532_s30  ;;  %s3640_s30 = sld [smem:[#allocation8 + $0xd]] }
 0x205   :  { %1821 = vrot.lane.b32.xlu1 %v1818_v50, %s3807_s24  ;;  %v4628_v30 = vpop.permute.xlu0 %1469 }
 0x206   :  { %6374 = vst [vmem:[#allocation135_spill] sm:$0xff] %v4628_v30  ;;  %v1865_v30 = vrot.slane %v1859_v35, 6  ;;  %v1907_v35 = vstv %s3608_s7  ;;  %s4861_s7 = sld [smem:[#allocation4 + $0x3e]] }
 0x207   :  { %v4630_v58 = vpop.permute.xlu1 %1471 }
 0x208   :  { %6375 = vst [vmem:[#allocation136_spill] sm:$0xff] %v4630_v58  ;;  %v1864_v58 = vrot.slane %v1858_v15, 6  ;;  %v1868_v25 = vsel %vm392_vm2, %v1865_v30, %v1867_v3  ;;  %v1883_v15 = vmul.f32 %v1882_v5, %v4363_v51 }
 0x209   :  { %1848 = vrot.lane.b32.xlu2 %v1842_v57, %s3807_s24  ;;  %v1890_v57 = vrot.slane %v1884_v22, 7 }
 0x20a   :  { %v1866_v55 = vsel %vm392_vm2, %v1864_v58, %v1865_v30  ;;  %v1910_v58 = vmul.f32 %v1907_v35, %v4355_v11 }
 0x20b   :  { %v4638_v50 = vpop.permute.xlu2 %1573  ;;  %1844 = vrot.lane.b32.xlu0 %v1841_v32, %s3807_s24 }
 0x20c   :  { %6376 = vst [vmem:[#allocation137_spill] sm:$0xff] %v4638_v50  ;;  %v1892_v50 = vrot.slane %v1885_v1, 7  ;;  %v1889_v1 = vrot.slane %v1883_v15, 7 }
 0x20d   :  { %1846 = vrot.lane.b32.xlu1 %v1843_v10, %s3807_s24  ;;  %v4644_v21 = vpop.permute.xlu0 %1494 }
 0x20e   :  { %6377 = vst [vmem:[#allocation138_spill] sm:$0xff] %v4644_v21  ;;  %v1893_v10 = vsel %vm569_vm4, %v1890_v57, %v1892_v50  ;;  %v1909_v21 = vmul.f32 %v1907_v35, %v4366_v39  ;;  %v1932_v50 = vstv %s3609_s9  ;;  %s4898_s9 = sld [smem:[#allocation4 + $0x45]] }
 0x20f   :  { %v4646_v18 = vpop.permute.xlu1 %1496  ;;  %v1934_v15 = vmul.f32 %v1932_v50, %v4366_v39 }
 0x210   :  { %6378 = vst [vmem:[#allocation139_spill] sm:$0xff] %v4646_v18  ;;  %v1915_v5 = vrot.slane %v1909_v21, 7  ;;  %v1891_v18 = vsel %vm569_vm4, %v1889_v1, %v1890_v57 }
 0x211   :  { %1873 = vrot.lane.b32.xlu2 %v1867_v3, %s3807_s24  ;;  %v1917_v3 = vrot.slane %v1910_v58, 7 }
 0x213   :  { %v4651_v32 = vpop.permute.xlu2 %1598  ;;  %1869 = vrot.lane.b32.xlu0 %v1866_v55, %s3807_s24 }
 0x214   :  { %6379 = vst [vmem:[#allocation140_spill] sm:$0xff] %v4651_v32 }
 0x215   :  { %1871 = vrot.lane.b32.xlu1 %v1868_v25, %s3807_s24  ;;  %v4659_v22 = vpop.permute.xlu0 %1519  ;;  %v1908_v25 = vmul.f32 %v1907_v35, %v4363_v51  ;;  %v1940_v35 = vrot.slane %v1934_v15, 7 }
 0x216   :  { %6380 = vst [vmem:[#allocation141_spill] sm:$0xff] %v4659_v22  ;;  %v1918_v22 = vsel %vm569_vm4, %v1915_v5, %v1917_v3 }
 0x217   :  { %v4661_v30 = vpop.permute.xlu1 %1521 }
 0x218   :  { %6381 = vst [vmem:[#allocation142_spill] sm:$0xff] %v4661_v30  ;;  %v1935_v30 = vmul.f32 %v1932_v50, %v4355_v11 }
 0x219   :  { %1898 = vrot.lane.b32.xlu2 %v1893_v10, %s3808_s2  ;;  %v1914_v10 = vrot.slane %v1908_v25, 7 }
 0x21a   :  { %v1942_v58 = vrot.slane %v1935_v30, 7 }
 0x21b   :  { %v4665_v55 = vpop.permute.xlu2 %1623  ;;  %1894 = vrot.lane.b32.xlu0 %v1889_v1, %s3808_s2  ;;  %v1916_v1 = vsel %vm569_vm4, %v1914_v10, %v1915_v5 }
 0x21c   :  { %6382 = vst [vmem:[#allocation143_spill] sm:$0xff] %v4665_v55  ;;  %v1943_v3 = vsel %vm569_vm4, %v1940_v35, %v1942_v58 }
 0x21d   :  { %1896 = vrot.lane.b32.xlu1 %v1891_v18, %s3808_s2  ;;  %v4673_v21 = vpop.permute.xlu0 %1544  ;;  %v1933_v18 = vmul.f32 %v1932_v50, %v4363_v51 }
 0x21e   :  { %6383 = vst [vmem:[#allocation144_spill] sm:$0xff] %v4673_v21  ;;  %v1957_v21 = vstv %s3610_s10  ;;  %s4934_s10 = sld [smem:[#allocation4 + $0x4c]] }
 0x21f   :  { %v4675_v57 = vpop.permute.xlu1 %1546  ;;  %v1960_v30 = vmul.f32 %v1957_v21, %v4355_v11  ;;  %v1958_v5 = vmul.f32 %v1957_v21, %v4363_v51  ;;  %v1959_v50 = vmul.f32 %v1957_v21, %v4366_v39 }
 0x220   :  { %6384 = vst [vmem:[#allocation145_spill] sm:$0xff] %v4675_v57  ;;  %v1939_v57 = vrot.slane %v1933_v18, 7 }
 0x221   :  { %1923 = vrot.lane.b32.xlu2 %v1918_v22, %s3808_s2  ;;  %v1967_v58 = vrot.slane %v1960_v30, 3  ;;  %v1965_v18 = vrot.slane %v1959_v50, 3 }
 0x222   :  { %v1941_v15 = vsel %vm569_vm4, %v1939_v57, %v1940_v35 }
 0x223   :  { %v4679_v55 = vpop.permute.xlu2 %1648  ;;  %1919 = vrot.lane.b32.xlu0 %v1914_v10, %s3808_s2  ;;  %v1968_v30 = vsel %vm645_vm5, %v1965_v18, %v1967_v58 }
 0x224   :  { %6385 = vst [vmem:[#allocation146_spill] sm:$0xff] %v4679_v55 }
 0x225   :  { %1921 = vrot.lane.b32.xlu1 %v1916_v1, %s3808_s2  ;;  %v4685_v25 = vpop.permute.xlu0 %1569  ;;  %v1964_v1 = vrot.slane %v1958_v5, 3 }
 0x226   :  { %6386 = vst [vmem:[#allocation147_spill] sm:$0xff] %v4685_v25 }
 0x227   :  { %v4687_v22 = vpop.permute.xlu1 %1571  ;;  %v1966_v35 = vsel %vm645_vm5, %v1964_v1, %v1965_v18 }
 0x228   :  { %6387 = vst [vmem:[#allocation148_spill] sm:$0xff] %v4687_v22  ;;  %v1982_v22 = vstv %s3611_s11  ;;  %s4946_s11 = sld [smem:[#allocation4 + $0x4d]] }
 0x229   :  { %1948 = vrot.lane.b32.xlu2 %v1943_v3, %s3808_s2  ;;  %v1985_v21 = vmul.f32 %v1982_v22, %v4355_v11 }
 0x22b   :  { %v4694_v10 = vpop.permute.xlu2 %1673  ;;  %1944 = vrot.lane.b32.xlu0 %v1939_v57, %s3808_s2  ;;  %v1984_v57 = vmul.f32 %v1982_v22, %v4366_v39  ;;  %v1992_v50 = vrot.slane %v1985_v21, 3 }
 0x22c   :  { %6388 = vst [vmem:[#allocation149_spill] sm:$0xff] %v4694_v10  ;;  %v1983_v10 = vmul.f32 %v1982_v22, %v4363_v51 }
 0x22d   :  { %1946 = vrot.lane.b32.xlu1 %v1941_v15, %s3808_s2  ;;  %v4698_v3 = vpop.permute.xlu0 %1594 }
 0x22e   :  { %6389 = vst [vmem:[#allocation150_spill] sm:$0xff] %v4698_v3  ;;  %v1989_v15 = vrot.slane %v1983_v10, 3  ;;  %v1990_v3 = vrot.slane %v1984_v57, 3 }
 0x22f   :  { %v4700_v25 = vpop.permute.xlu1 %1596 }
 0x230   :  { %6390 = vst [vmem:[#allocation151_spill] sm:$0xff] %v4700_v25  ;;  %v2007_v25 = vstv %s3612_s12  ;;  %s4953_s12 = sld [smem:[#allocation4 + $0x38]] }
 0x231   :  { %1973 = vrot.lane.b32.xlu2 %v1967_v58, %s3808_s2  ;;  %v2010_v22 = vmul.f32 %v2007_v25, %v4355_v11  ;;  %v1991_v58 = vsel %vm645_vm5, %v1989_v15, %v1990_v3  ;;  %v2008_v18 = vmul.f32 %v2007_v25, %v4363_v51  ;;  %v2009_v21 = vmul.f32 %v2007_v25, %v4366_v39 }
 0x233   :  { %v4708_v5 = vpop.permute.xlu2 %1698  ;;  %1969 = vrot.lane.b32.xlu0 %v1966_v35, %s3808_s2  ;;  %v1993_v35 = vsel %vm645_vm5, %v1990_v3, %v1992_v50  ;;  %v2017_v57 = vrot.slane %v2010_v22, 3 }
 0x234   :  { %6391 = vst [vmem:[#allocation152_spill] sm:$0xff] %v4708_v5 }
 0x235   :  { %1971 = vrot.lane.b32.xlu1 %v1968_v30, %s3808_s2  ;;  %v4712_v55 = vpop.permute.xlu0 %1619  ;;  %v2014_v30 = vrot.slane %v2008_v18, 3 }
 0x236   :  { %6392 = vst [vmem:[#allocation153_spill] sm:$0xff] %v4712_v55  ;;  %v2032_v55 = vstv %s3613_s13  ;;  %s4984_s13 = sld [smem:[#allocation4 + $0x53]] }
 0x237   :  { %v4714_v1 = vpop.permute.xlu1 %1621  ;;  %v2035_v25 = vmul.f32 %v2032_v55, %v4355_v11  ;;  %v2034_v15 = vmul.f32 %v2032_v55, %v4366_v39 }
 0x238   :  { %6393 = vst [vmem:[#allocation154_spill] sm:$0xff] %v4714_v1  ;;  %v2015_v1 = vrot.slane %v2009_v21, 3 }
 0x239   :  { %1998 = vrot.lane.b32.xlu2 %v1992_v50, %s3808_s2  ;;  %v2033_v50 = vmul.f32 %v2032_v55, %v4363_v51  ;;  %v2042_v18 = vrot.slane %v2035_v25, 3 }
 0x23a   :  { %v2016_v3 = vsel %vm645_vm5, %v2014_v30, %v2015_v1  ;;  %v2018_v22 = vsel %vm645_vm5, %v2015_v1, %v2017_v57  ;;  %v2057_v30 = vstv %s3614_s14  ;;  %s5004_s14 = sld [smem:[#allocation4 + $0x54]] }
 0x23b   :  { %v4722_v10 = vpop.permute.xlu2 %1723  ;;  %1994 = vrot.lane.b32.xlu0 %v1991_v58, %s3808_s2  ;;  %v2039_v21 = vrot.slane %v2033_v50, 3  ;;  %v2060_v25 = vmul.f32 %v2057_v30, %v4355_v11 }
 0x23c   :  { %6394 = vst [vmem:[#allocation155_spill] sm:$0xff] %v4722_v10 }
 0x23d   :  { %1996 = vrot.lane.b32.xlu1 %v1993_v35, %s3808_s2  ;;  %v4726_v5 = vpop.permute.xlu0 %1644  ;;  %v2040_v35 = vrot.slane %v2034_v15, 3  ;;  %v2058_v15 = vmul.f32 %v2057_v30, %v4363_v51 }
 0x23e   :  { %6395 = vst [vmem:[#allocation156_spill] sm:$0xff] %v4726_v5 }
 0x23f   :  { %v4728_v32 = vpop.permute.xlu1 %1646  ;;  %v2041_v55 = vsel %vm645_vm5, %v2039_v21, %v2040_v35  ;;  %v2043_v1 = vsel %vm645_vm5, %v2040_v35, %v2042_v18  ;;  %v2077_v21 = vstv %s3615_s17  ;;  %s5015_s17 = sld [smem:[#allocation4 + $0x3f]] }
 0x240   :  { %6396 = vst [vmem:[#allocation157_spill] sm:$0xff] %v4728_v32  ;;  %v2080_v35 = vmul.f32 %v2077_v21, %v4355_v11 }
 0x241   :  { %2023 = vrot.lane.b32.xlu2 %v2017_v57, %s3808_s2 }
 0x243   :  { %v4736_v58 = vpop.permute.xlu2 %1748  ;;  %2019 = vrot.lane.b32.xlu0 %v2016_v3, %s3808_s2 }
 0x244   :  { %6397 = vst [vmem:[#allocation158_spill] sm:$0xff] %v4736_v58 }
 0x245   :  { %2021 = vrot.lane.b32.xlu1 %v2018_v22, %s3808_s2  ;;  %v4740_v32 = vpop.permute.xlu0 %1669  ;;  %v2059_v22 = vmul.f32 %v2057_v30, %v4366_v39  ;;  %v2079_v30 = vmul.f32 %v2077_v21, %v4366_v39 }
 0x246   :  { %6398 = vst [vmem:[#allocation159_spill] sm:$0xff] %v4740_v32 }
 0x247   :  { %v4742_v5 = vpop.permute.xlu1 %1671 }
 0x248   :  { %6399 = vst [vmem:[#allocation160_spill] sm:$0xff] %v4742_v5 }
 0x249   :  { %2048 = vrot.lane.b32.xlu2 %v2042_v18, %s3808_s2 }
 0x24b   :  { %v4747_v57 = vpop.permute.xlu2 %1773  ;;  %2044 = vrot.lane.b32.xlu0 %v2041_v55, %s3808_s2 }
 0x24c   :  { %6400 = vst [vmem:[#allocation161_spill] sm:$0xff] %v4747_v57 }
 0x24d   :  { %2046 = vrot.lane.b32.xlu1 %v2043_v1, %s3808_s2  ;;  %v4752_v3 = vpop.permute.xlu0 %1694  ;;  %s3617_s2 = sld [smem:[#allocation4 + $0x4b]] }
 0x24e   :  { %6401 = vst [vmem:[#allocation162_spill] sm:$0xff] %v4752_v3  ;;  %v2097_v3 = vstv %s3616_s18  ;;  %s5050_s18 = sld [smem:[#allocation4 + $0x5a]] }
 0x24f   :  { %v4754_v50 = vpop.permute.xlu1 %1696 }
 0x250   :  { %6402 = vst [vmem:[#allocation163_spill] sm:$0xff] %v4754_v50 }
 0x251   :  { %2068 = vrot.lane.b32.xlu2 %v2060_v25, %s3809_s15  ;;  %v2078_v25 = vmul.f32 %v2077_v21, %v4363_v51  ;;  %v2099_v21 = vmul.f32 %v2097_v3, %v4366_v39 }
 0x253   :  { %v4759_v18 = vpop.permute.xlu2 %1798  ;;  %2064 = vrot.lane.b32.xlu0 %v2058_v15, %s3809_s15  ;;  %v2100_v15 = vmul.f32 %v2097_v3, %v4355_v11 }
 0x254   :  { %6403 = vst [vmem:[#allocation164_spill] sm:$0xff] %v4759_v18  ;;  %v2187_v18 = vstv %s3620_s26  ;;  %s5487_s26 = sld [smem:[#allocation8 + $0x2]] }
 0x255   :  { %2066 = vrot.lane.b32.xlu1 %v2059_v22, %s3809_s15  ;;  %v4764_v55 = vpop.permute.xlu0 %1719  ;;  %v2189_v47 = vmul.f32 %v2187_v18, %v4366_v39 }
 0x256   :  { %6404 = vst [vmem:[#allocation165_spill] sm:$0xff] %v4764_v55 }
 0x257   :  { %v4766_v1 = vpop.permute.xlu1 %1721 }
 0x258   :  { %6405 = vst [vmem:[#allocation166_spill] sm:$0xff] %v4766_v1  ;;  %v2117_v1 = vstv %s3617_s2  ;;  %s5067_s2 = sld [smem:[#allocation4 + $0x5b]] }
 0x259   :  { %2088 = vrot.lane.b32.xlu2 %v2080_v35, %s3809_s15  ;;  %v2098_v35 = vmul.f32 %v2097_v3, %v4363_v51  ;;  %v2119_v50 = vmul.f32 %v2117_v1, %v4366_v39 }
 0x25b   :  { %v4771_v5 = vpop.permute.xlu2 %1823  ;;  %2084 = vrot.lane.b32.xlu0 %v2078_v25, %s3809_s15  ;;  %v2120_v25 = vmul.f32 %v2117_v1, %v4355_v11 }
 0x25c   :  { %6406 = vst [vmem:[#allocation167_spill] sm:$0xff] %v4771_v5 }
 0x25d   :  { %2086 = vrot.lane.b32.xlu1 %v2079_v30, %s3809_s15  ;;  %v4776_v22 = vpop.permute.xlu0 %1744  ;;  %v2137_v30 = vstv %s3618_s19  ;;  %s5101_s19 = sld [smem:[#allocation4 + $0x46]] }
 0x25e   :  { %6407 = vst [vmem:[#allocation168_spill] sm:$0xff] %v4776_v22  ;;  %v2140_v3 = vmul.f32 %v2137_v30, %v4355_v11  ;;  %v2139_v57 = vmul.f32 %v2137_v30, %v4366_v39 }
 0x25f   :  { %v4778_v32 = vpop.permute.xlu1 %1746 }
 0x260   :  { %6408 = vst [vmem:[#allocation169_spill] sm:$0xff] %v4778_v32 }
 0x261   :  { %2108 = vrot.lane.b32.xlu2 %v2100_v15, %s3809_s15  ;;  %v2118_v15 = vmul.f32 %v2117_v1, %v4363_v51 }
 0x263   :  { %v4783_v55 = vpop.permute.xlu2 %1848  ;;  %2104 = vrot.lane.b32.xlu0 %v2098_v35, %s3809_s15  ;;  %v2138_v35 = vmul.f32 %v2137_v30, %v4363_v51 }
 0x264   :  { %6409 = vst [vmem:[#allocation170_spill] sm:$0xff] %v4783_v55  ;;  %v2162_v55 = vstv %s3619_s20  ;;  %s5107_s20 = sld [smem:[#allocation4 + $0x61]] }
 0x265   :  { %2106 = vrot.lane.b32.xlu1 %v2099_v21, %s3809_s15  ;;  %v4788_v22 = vpop.permute.xlu0 %1769  ;;  %v2165_v30 = vmul.f32 %v2162_v55, %v4355_v11 }
 0x266   :  { %6410 = vst [vmem:[#allocation171_spill] sm:$0xff] %v4788_v22  ;;  %v2145_v22 = vrot.slane %v2139_v57, 4 }
 0x267   :  { %v4790_v32 = vpop.permute.xlu1 %1771  ;;  %v2172_v5 = vrot.slane %v2165_v30, 4 }
 0x268   :  { %6411 = vst [vmem:[#allocation172_spill] sm:$0xff] %v4790_v32  ;;  %v2147_v32 = vrot.slane %v2140_v3, 4  ;;  %v150_v3 = vstv %s3534_s21  ;;  %s3812_s21 = smov 1  }
 0x269   :  { %2128 = vrot.lane.b32.xlu2 %v2120_v25, %s3809_s15  ;;  %v2144_v25 = vrot.slane %v2138_v35, 4  ;;  %v152_v7 = vmul.f32 %v150_v3, %v3863_v38 }
 0x26a   :  { %v2148_v57 = vsel %vm157_vm6, %v2145_v22, %v2147_v32 }
 0x26b   :  { %v4798_v21 = vpop.permute.xlu2 %1873  ;;  %2124 = vrot.lane.b32.xlu0 %v2118_v15, %s3809_s15  ;;  %v2163_v15 = vmul.f32 %v2162_v55, %v4363_v51  ;;  %v159_v45 = vrot.slane %v152_v7, 4 }
 0x26c   :  { %6412 = vst [vmem:[#allocation173_spill] sm:$0xff] %v4798_v21  ;;  %v2146_v21 = vsel %vm157_vm6, %v2144_v25, %v2145_v22  ;;  %v153_v25 = vmul.f32 %v150_v3, %v3857_v26 }
 0x26d   :  { %2126 = vrot.lane.b32.xlu1 %v2119_v50, %s3809_s15  ;;  %v4802_v58 = vpop.permute.xlu0 %1794  ;;  %v2164_v50 = vmul.f32 %v2162_v55, %v4366_v39  ;;  %v2169_v10 = vrot.slane %v2163_v15, 4  ;;  %v189_v15 = vstv %s3536_s28  ;;  %s3635_s28 = sld [smem:[#allocation8 + $0x8]] }
 0x26e   :  { %6413 = vst [vmem:[#allocation174_spill] sm:$0xff] %v4802_v58  ;;  %v4814_v58 = vstv %s3535_s22  ;;  %s3631_s22 = sld [smem:[#allocation8 + $0x4]] }
 0x26f   :  { %v4804_v1 = vpop.permute.xlu1 %1796  ;;  %6416 = vst [vmem:[#allocation177_spill] sm:$0xff] %v4814_v58  ;;  %v2170_v55 = vrot.slane %v2164_v50, 4  ;;  %v2190_v50 = vmul.f32 %v2187_v18, %v4355_v11  ;;  %v4851_v43 = vmul.f32 %v4814_v58, %v3863_v38 }
 0x270   :  { %6414 = vst [vmem:[#allocation175_spill] sm:$0xff] %v4804_v1  ;;  %v4816_v1 = vstv %s117_s23  ;;  %s3632_s23 = sld [smem:[#allocation8 + $0x7]] }
 0x271   :  { %2153 = vrot.lane.b32.xlu2 %v2147_v32, %s3809_s15  ;;  %v4823_v32 = vmul.f32 %v4814_v58, %v3857_v26  ;;  %v121_v30 = vmul.f32 %v4816_v1, %v3857_v26  ;;  %v2171_v53 = vsel %vm157_vm6, %v2169_v10, %v2170_v55  ;;  %v2173_v0 = vsel %vm157_vm6, %v2170_v55, %v2172_v5 }
 0x272   :  { %v151_v10 = vmul.f32 %v150_v3, %v3861_v37  ;;  %6421 = vst [vmem:[#allocation182_spill] sm:$0xff] %v4851_v43  ;;  %v2195_v55 = vrot.slane %v2189_v47, 4  ;;  %v2215_v3 = vmul.f32 %v2212_v46, %v4355_v11  ;;  %v120_v41 = vmul.f32 %v4816_v1, %v3863_v38 }
 0x273   :  { %v4812_v35 = vpop.permute.xlu2 %1898  ;;  %2149 = vrot.lane.b32.xlu0 %v2146_v21, %s3809_s15  ;;  %v6232_v29 = vrot.slane %v4851_v43, 4 }
 0x274   :  { %6415 = vst [vmem:[#allocation176_spill] sm:$0xff] %v4812_v35  ;;  %v4827_v35 = vstv %s3531_s27  ;;  %s3634_s27 = sld [smem:[#allocation8 + $0x5]] }
 0x275   :  { %2151 = vrot.lane.b32.xlu1 %v2148_v57, %s3809_s15  ;;  %v4825_v22 = vpop.permute.xlu0 %1819  ;;  %6418 = vst [vmem:[#allocation179_spill] sm:$0xff] %v4827_v35  ;;  %v161_v57 = vrot.slane %v153_v25, 4  ;;  %v129_v23 = vmul.f32 %v4827_v35, %v3857_v26  ;;  %v192_v25 = vmul.f32 %v189_v15, %v3857_v26 }
 0x276   :  { %6417 = vst [vmem:[#allocation178_spill] sm:$0xff] %v4825_v22  ;;  %v2188_v22 = vmul.f32 %v2187_v18, %v4363_v51  ;;  %v191_v18 = vmul.f32 %v189_v15, %v3863_v38 }
 0x277   :  { %v4832_v21 = vpop.permute.xlu1 %1821  ;;  %v168_v58 = vadd.f32 %v161_v57, %v121_v30  ;;  %v199_v30 = vrot.slane %v192_v25, 4  ;;  %v119_v25 = vmul.f32 %v4816_v1, %v3861_v37 }
 0x278   :  { %6419 = vst [vmem:[#allocation180_spill] sm:$0xff] %v4832_v21  ;;  %v180_v21 = vrot.slane %v4823_v32, 4  ;;  %v190_v32 = vmul.f32 %v189_v15, %v3861_v37  ;;  %v2194_v7 = vrot.slane %v2188_v22, 4  ;;  %v142_v22 = vstv %s4830_s4  ;;  %s3641_s4 = sld [smem:[#allocation8 + $0x10]] }
 0x279   :  { %2178 = vrot.lane.b32.xlu2 %v2172_v5, %s3809_s15  ;;  %v2197_v5 = vrot.slane %v2190_v50, 4  ;;  %v158_v50 = vrot.slane %v151_v10, 4  ;;  %v197_v28 = vrot.slane %v191_v18, 4  ;;  %v2213_v10 = vmul.f32 %v2212_v46, %v4363_v51 }
 0x27a   :  { %v187_v15 = vadd.f32 %v180_v21, %v129_v23  ;;  %v196_v40 = vrot.slane %v190_v32, 4  ;;  %v2196_v24 = vsel %vm157_vm6, %v2194_v7, %v2195_v55  ;;  %v2222_v23 = vrot.slane %v2215_v3, 5 }
 0x27b   :  { %v4845_v59 = vpop.permute.xlu2 %1923  ;;  %2174 = vrot.lane.b32.xlu0 %v2171_v53, %s3809_s15  ;;  %v162_v53 = vsel %vm157_vm6, %v159_v45, %v161_v57  ;;  %v143_v57 = vmul.f32 %v142_v22, %v3861_v37  ;;  %v2198_v16 = vsel %vm157_vm6, %v2195_v55, %v2197_v5  ;;  %v145_v18 = vmul.f32 %v142_v22, %v3857_v26 }
 0x27c   :  { %6420 = vst [vmem:[#allocation181_spill] sm:$0xff] %v4845_v59  ;;  %v4858_v59 = vmul.f32 %v2212_v46, %v4366_v39  ;;  %v167_v17 = vadd.f32 %v162_v53, %v120_v41  ;;  %v128_v32 = vmul.f32 %v4827_v35, %v3863_v38  ;;  %v160_v41 = vsel %vm157_vm6, %v158_v50, %v159_v45  ;;  %v6483_v35 = vld [vmem:[#allocation76_spill] sm:$0xff] }
 0x27d   :  { %2176 = vrot.lane.b32.xlu1 %v2173_v0, %s3809_s15  ;;  %v4865_v36 = vpop.permute.xlu0 %1844  ;;  %v137_v0 = vmul.f32 %v134_v52, %v3857_v26  ;;  %v198_v7 = vsel %vm157_vm6, %v196_v40, %v197_v28  ;;  %v136_v46 = vmul.f32 %v134_v52, %v3863_v38  ;;  %v200_v1 = vsel %vm157_vm6, %v197_v28, %v199_v30 }
 0x27e   :  { %6422 = vst [vmem:[#allocation183_spill] sm:$0xff] %v4865_v36  ;;  %v2220_v36 = vrot.slane %v4858_v59, 5  ;;  %v135_v59 = vmul.f32 %v134_v52, %v3861_v37  ;;  %v2237_v3 = vstv %s4861_s7  ;;  %v258_v45 = vadd.f32 %v3960_v20, %v168_v58  ;;  %s5511_s7 = sld [smem:[#allocation8 + $0x9]] }
 0x27f   :  { %v4870_v47 = vpop.permute.xlu1 %1846  ;;  %v206_v26 = vadd.f32 %v199_v30, %v137_v0  ;;  %v2219_v40 = vrot.slane %v2213_v10, 5  ;;  %v283_v52 = vadd.f32 %v3970_v31, %v187_v15  ;;  %v232_v30 = vadd.f32 %v3999_v62, %v145_v18 }
 0x280   :  { %6423 = vst [vmem:[#allocation184_spill] sm:$0xff] %v4870_v47  ;;  %v2223_v55 = vsel %vm215_vm0, %v2220_v36, %v2222_v23  ;;  %v204_v50 = vadd.f32 %v198_v7, %v135_v59  ;;  %v205_v23 = vadd.f32 %v200_v1, %v136_v46  ;;  %v2240_v20 = vmul.f32 %v2237_v3, %v4355_v11  ;;  %v6428_v1 = vld [vmem:[#allocation41_spill] sm:$0xff] }
 0x281   :  { %2203 = vrot.lane.b32.xlu2 %v2197_v5, %s3809_s15  ;;  %v181_v5 = vsel %vm157_vm6, %v6232_v29, %v180_v21  ;;  %v144_v21 = vmul.f32 %v142_v22, %v3863_v38  ;;  %v308_v38 = vadd.f32 %v3989_v54, %v206_v26  ;;  %v230_v58 = vadd.f32 %v3997_v60, %v143_v57  ;;  %v6427_v26 = vld [vmem:[#allocation21_spill] sm:$0xff] }
 0x282   :  { %v186_v0 = vadd.f32 %v181_v5, %v128_v32  ;;  %v2238_v31 = vmul.f32 %v2237_v3, %v4363_v51  ;;  %v2239_v15 = vmul.f32 %v2237_v3, %v4366_v39  ;;  %v333_v22 = vadd.f32 %v4003_v2, %v232_v30  ;;  %v6425_v5 = vld [vmem:[#allocation19_spill] sm:$0xff]  ;;  %v6432_v30 = vld [vmem:[#allocation25_spill] sm:$0xff] }
 0x283   :  { %v4878_v47 = vpop.permute.xlu2 %1948  ;;  %2199 = vrot.lane.b32.xlu0 %v2196_v24, %s3809_s15  ;;  %v166_v24 = vadd.f32 %v160_v41, %v119_v25  ;;  %v383_v62 = vadd.f32 %v4032_v27, %v283_v52  ;;  %v358_v60 = vadd.f32 %v4018_v13, %v258_v45  ;;  %v306_v18 = vadd.f32 %v4036_v33, %v204_v50  ;;  %v6429_v45 = vld [vmem:[#allocation22_spill] sm:$0xff] }
 0x284   :  { %v282_v57 = vadd.f32 %v4024_v19, %v186_v0  ;;  %v307_v25 = vadd.f32 %v4038_v34, %v205_v23  ;;  %v409_v2 = vadd.f32 %v4046_v42, %v308_v38  ;;  %v2247_v27 = vrot.slane %v2240_v20, 1  ;;  %v6433_v20 = vld [vmem:[#allocation26_spill] sm:$0xff] }
 0x285   :  { %2201 = vrot.lane.b32.xlu1 %v2198_v16, %s3809_s15  ;;  %v4902_v53 = vpop.permute.xlu0 %1869  ;;  %v257_v16 = vadd.f32 %v3979_v44, %v167_v17  ;;  %s4913_s15 = sld [smem:[#allocation4 + $0x31]]  ;;  %v231_v44 = vadd.f32 %v4009_v6, %v144_v21  ;;  %v2221_v17 = vsel %vm215_vm0, %v2219_v40, %v2220_v36  ;;  %v256_v54 = vadd.f32 %v4011_v8, %v166_v24  ;;  %v6431_v24 = vld [vmem:[#allocation24_spill] sm:$0xff] }
 0x286   :  { %v485_v6 = vadd.f32 %v4083_v14, %v383_v62  ;;  %v331_v36 = vadd.f32 %v4050_v48, %v230_v58  ;;  %v2244_v8 = vrot.slane %v2238_v31, 1  ;;  %v2245_v32 = vrot.slane %v2239_v15, 1  ;;  %v6434_v58 = vld [vmem:[#allocation27_spill] sm:$0xff]  ;;  %v6435_v15 = vld [vmem:[#allocation53_spill] sm:$0xff] }
 0x287   :  { %v4905_v28 = vpop.permute.xlu1 %1871  ;;  %v2262_v13 = vstv %s4898_s9  ;;  %v332_v19 = vadd.f32 %v4052_v49, %v231_v44  ;;  %v434_v33 = vadd.f32 %v4060_v56, %v333_v22  ;;  %v356_v34 = vadd.f32 %v4064_v61, %v256_v54  ;;  %v6426_v56 = vld [vmem:[#allocation20_spill] sm:$0xff]  ;;  %s5521_s9 = sld [smem:[#allocation8 + $0xe]] }
 0x288   :  { %v586_v42 = vadd.f32 %v4136_v12, %v485_v6  ;;  %v357_v48 = vadd.f32 %v4066_v63, %v257_v16  ;;  %v460_v59 = vadd.f32 %v4071_v4, %v358_v60  ;;  %v382_v41 = vadd.f32 %v4078_v9, %v282_v57  ;;  %v6436_v44 = vld [vmem:[#allocation32_spill] sm:$0xff]  ;;  %v6437_v57 = vld [vmem:[#allocation65_spill] sm:$0xff] }
 0x289   :  { %2228 = vrot.lane.b32.xlu2 %v2223_v55, %s3810_s25  ;;  %v407_v7 = vadd.f32 %v6425_v5, %v306_v18  ;;  %v408_v46 = vadd.f32 %v6426_v56, %v307_v25  ;;  %v510_v61 = vadd.f32 %v6427_v26, %v409_v2  ;;  %v2265_v63 = vmul.f32 %v2262_v13, %v4355_v11  ;;  %v6443_v5 = vld [vmem:[#allocation44_spill] sm:$0xff]  ;;  %v6444_v26 = vld [vmem:[#allocation77_spill] sm:$0xff] }
 0x28a   :  { %v687_v12 = vadd.f32 %v6428_v1, %v586_v42  ;;  %v2246_v9 = vsel %vm241_vm1, %v2244_v8, %v2245_v32  ;;  %v2263_v55 = vmul.f32 %v2262_v13, %v4363_v51  ;;  %v2264_v3 = vmul.f32 %v2262_v13, %v4366_v39  ;;  %v6439_v8 = vld [vmem:[#allocation30_spill] sm:$0xff]  ;;  %v6440_v13 = vld [vmem:[#allocation31_spill] sm:$0xff] }
 0x28b   :  { %v4921_v10 = vpop.permute.xlu2 %1973  ;;  %2224 = vrot.lane.b32.xlu0 %v2219_v40, %s3810_s25  ;;  %v4958_v4 = vstv %s4913_s15  ;;  %v432_v21 = vadd.f32 %v6429_v45, %v331_v36  ;;  %v6430_v40 = vld [vmem:[#allocation23_spill] sm:$0xff]  ;;  %v535_v0 = vadd.f32 %v6431_v24, %v434_v33  ;;  %v2248_v50 = vsel %vm241_vm1, %v2245_v32, %v2247_v27  ;;  %v6441_v33 = vld [vmem:[#allocation33_spill] sm:$0xff]  ;;  %v6447_v24 = vld [vmem:[#allocation56_spill] sm:$0xff]  ;;  %s5524_s15 = sld [smem:[#allocation8 + $0xc]] }
 0x28c   :  { %v433_v52 = vadd.f32 %v6430_v40, %v332_v19  ;;  %v458_v23 = vadd.f32 %v6432_v30, %v356_v34  ;;  %v459_v38 = vadd.f32 %v6433_v20, %v357_v48  ;;  %v560_v31 = vadd.f32 %v6434_v58, %v460_v59  ;;  %v6442_v48 = vld [vmem:[#allocation34_spill] sm:$0xff]  ;;  %v6446_v40 = vld [vmem:[#allocation35_spill] sm:$0xff] }
 0x28d   :  { %2226 = vrot.lane.b32.xlu1 %v2221_v17, %s3810_s25  ;;  %v4940_v14 = vpop.permute.xlu0 %1894  ;;  %v777_v22 = vadd.f32 %v6435_v15, %v687_v12  ;;  %v611_v62 = vadd.f32 %v6436_v44, %v510_v61  ;;  %v4976_v17 = vmul.f32 %v4958_v4, %v4366_v39  ;;  %v1247_v54 = vmul.f32 %v4958_v4, %v4355_v11  ;;  %v6448_v15 = vld [vmem:[#allocation36_spill] sm:$0xff]  ;;  %v6449_v44 = vld [vmem:[#allocation101_spill] sm:$0xff] }
 0x28e   :  { %6424 = vst [vmem:[#allocation185_spill] sm:$0xff] %v4940_v14  ;;  %v2272_v60 = vrot.slane %v2265_v63, 1  ;;  %v2269_v25 = vrot.slane %v2263_v55, 1  ;;  %v2270_v2 = vrot.slane %v2264_v3, 1  ;;  %v2287_v6 = vstv %s4934_s10  ;;  %v6481_v14 = vld [vmem:[#allocation55_spill] sm:$0xff]  ;;  %s5526_s10 = sld [smem:[#allocation8 + $0x18]] }
 0x28f   :  { %v4948_v49 = vpop.permute.xlu1 %1896  ;;  %v867_v18 = vadd.f32 %v6437_v57, %v777_v22  ;;  %v508_v32 = vadd.f32 %v6439_v8, %v407_v7  ;;  %v4989_v19 = vadd.f32 %v6440_v13, %v408_v46  ;;  %v4992_v34 = vadd.f32 %v6441_v33, %v432_v21  ;;  %v6450_v57 = vld [vmem:[#allocation37_spill] sm:$0xff] }
 0x290   :  { %v4997_v59 = vadd.f32 %v6442_v48, %v433_v52  ;;  %v712_v56 = vadd.f32 %v6443_v5, %v611_v62  ;;  %v5002_v1 = vstv %s4946_s11  ;;  %v6235_v7 = vrot.slane %v4976_v17, 7  ;;  %v6454_v5 = vld [vmem:[#allocation47_spill] sm:$0xff]  ;;  %s5529_s11 = sld [smem:[#allocation8 + $0x28]] }
 0x291   :  { %2253 = vrot.lane.b32.xlu2 %v2247_v27, %s3810_s25  ;;  %v6438_v27 = vld [vmem:[#allocation29_spill] sm:$0xff]  ;;  %v967_v61 = vadd.f32 %v6444_v26, %v867_v18  ;;  %v1254_v46 = vrot.slane %v1247_v54, 7  ;;  %v5010_v12 = vstv %s4953_s12  ;;  %v2290_v63 = vmul.f32 %v2287_v6, %v4355_v11  ;;  %v6455_v26 = vld [vmem:[#allocation80_spill] sm:$0xff]  ;;  %s5542_s12 = sld [smem:[#allocation8 + $0x2c]] }
 0x292   :  { %v484_v36 = vadd.f32 %v6438_v27, %v382_v41  ;;  %v2271_v3 = vsel %vm241_vm1, %v2269_v25, %v2270_v2  ;;  %v2288_v45 = vmul.f32 %v2287_v6, %v4363_v51  ;;  %v2289_v21 = vmul.f32 %v2287_v6, %v4366_v39  ;;  %v6451_v25 = vld [vmem:[#allocation68_spill] sm:$0xff] }
 0x293   :  { %v4967_v16 = vpop.permute.xlu2 %1998  ;;  %2249 = vrot.lane.b32.xlu0 %v2246_v9, %s3810_s25  ;;  %v6445_v9 = vld [vmem:[#allocation89_spill] sm:$0xff]  ;;  %v636_v52 = vadd.f32 %v6446_v40, %v535_v0  ;;  %v5024_v30 = vmul.f32 %v5002_v1, %v4355_v11  ;;  %v2273_v20 = vsel %vm241_vm1, %v2270_v2, %v2272_v60  ;;  %v5030_v22 = vadd.f32 %v6448_v15, %v458_v23  ;;  %v6452_v2 = vld [vmem:[#allocation38_spill] sm:$0xff] }
 0x294   :  { %v1067_v55 = vadd.f32 %v6445_v9, %v967_v61  ;;  %v5035_v54 = vmul.f32 %v5010_v12, %v4366_v39  ;;  %v1266_v0 = vmul.f32 %v5010_v12, %v4355_v11  ;;  %v5040_v18 = vadd.f32 %v6450_v57, %v459_v38  ;;  %v6453_v38 = vld [vmem:[#allocation40_spill] sm:$0xff]  ;;  %v6459_v57 = vld [vmem:[#allocation71_spill] sm:$0xff] }
 0x295   :  { %2251 = vrot.lane.b32.xlu1 %v2248_v50, %s3810_s25  ;;  %v4994_v42 = vpop.permute.xlu0 %1919  ;;  %v797_v50 = vadd.f32 %v6447_v24, %v712_v56  ;;  %v2297_v23 = vrot.slane %v2290_v63, 1  ;;  %v662_v27 = vadd.f32 %v6452_v2, %v560_v31  ;;  %v2294_v8 = vrot.slane %v2288_v45, 1 }
 0x296   :  { %v1167_v62 = vadd.f32 %v6449_v44, %v1067_v55  ;;  %v2295_v13 = vrot.slane %v2289_v21, 1  ;;  %v2312_v33 = vstv %s4984_s13  ;;  %v585_v48 = vadd.f32 %v6453_v38, %v484_v36  ;;  %v6456_v21 = vld [vmem:[#allocation42_spill] sm:$0xff]  ;;  %v6457_v36 = vld [vmem:[#allocation59_spill] sm:$0xff]  ;;  %s5552_s13 = sld [smem:[#allocation8 + $0x35]] }
 0x297   :  { %v5006_v41 = vpop.permute.xlu1 %1921  ;;  %v892_v6 = vadd.f32 %v6451_v25, %v797_v50  ;;  %v737_v56 = vadd.f32 %v6454_v5, %v636_v52  ;;  %v6233_v31 = vrot.slane %v5035_v54, 7  ;;  %v1273_v55 = vrot.slane %v1266_v0, 7  ;;  %v6458_v50 = vld [vmem:[#allocation92_spill] sm:$0xff]  ;;  %v6461_v5 = vld [vmem:[#allocation43_spill] sm:$0xff] }
 0x298   :  { %v609_v40 = vadd.f32 %v6456_v21, %v508_v32  ;;  %v5072_v15 = vstv %s5015_s17  ;;  %v2296_v44 = vsel %vm241_vm1, %v2294_v8, %v2295_v13  ;;  %v2314_v0 = vmul.f32 %v2312_v33, %v4366_v39  ;;  %v6460_v25 = vld [vmem:[#allocation104_spill] sm:$0xff]  ;;  %v6463_v21 = vld [vmem:[#allocation83_spill] sm:$0xff]  ;;  %s5577_s17 = sld [smem:[#allocation8 + $0x1f]] }
 0x299   :  { %2278 = vrot.lane.b32.xlu2 %v2272_v60, %s3810_s25  ;;  %v1255_v60 = vsel %vm569_vm4, %v6235_v7, %v1254_v46  ;;  %v992_v61 = vadd.f32 %v6455_v26, %v892_v6  ;;  %v6234_v46 = vrot.slane %v5024_v30, 3  ;;  %v817_v24 = vadd.f32 %v6457_v36, %v737_v56  ;;  %v6462_v56 = vld [vmem:[#allocation50_spill] sm:$0xff] }
 0x29a   :  { %v1261_v63 = vadd.f32 %v1255_v60, %v1167_v62  ;;  %v2313_v62 = vmul.f32 %v2312_v33, %v4363_v51  ;;  %v2298_v2 = vsel %vm241_vm1, %v2295_v13, %v2297_v23  ;;  %v610_v8 = vadd.f32 %v6461_v5, %v4989_v19  ;;  %v6475_v7 = vld [vmem:[#allocation74_spill] sm:$0xff] }
 0x29b   :  { %v5027_v58 = vpop.permute.xlu2 %2023  ;;  %2274 = vrot.lane.b32.xlu0 %v2271_v3, %s3810_s25  ;;  %v5060_v3 = vstv %s5004_s14  ;;  %v1092_v52 = vadd.f32 %v6458_v50, %v992_v61  ;;  %v917_v32 = vadd.f32 %v6459_v57, %v817_v24  ;;  %v757_v26 = vadd.f32 %v6462_v56, %v662_v27  ;;  %v6464_v27 = vld [vmem:[#allocation116_spill] sm:$0xff]  ;;  %v6468_v56 = vld [vmem:[#allocation62_spill] sm:$0xff]  ;;  %s5562_s14 = sld [smem:[#allocation8 + $0x19]] }
 0x29c   :  { %v5081_v60 = vmul.f32 %v5060_v3, %v4355_v11  ;;  %v1337_v61 = vadd.f32 %v6234_v46, %v1261_v63  ;;  %v1285_v13 = vmul.f32 %v5072_v15, %v4355_v11  ;;  %v2320_v63 = vrot.slane %v2314_v0, 1 }
 0x29d   :  { %2276 = vrot.lane.b32.xlu1 %v2273_v20, %s3810_s25  ;;  %v5056_v9 = vpop.permute.xlu0 %1944  ;;  %v2315_v20 = vmul.f32 %v2312_v33, %v4355_v11  ;;  %v1192_v6 = vadd.f32 %v6460_v25, %v1092_v52  ;;  %v1274_v33 = vsel %vm569_vm4, %v6233_v31, %v1273_v55  ;;  %v1017_v36 = vadd.f32 %v6463_v21, %v917_v32  ;;  %v6465_v52 = vld [vmem:[#allocation45_spill] sm:$0xff]  ;;  %v6466_v32 = vld [vmem:[#allocation46_spill] sm:$0xff] }
 0x29e   :  { %v1415_v24 = vadd.f32 %v6464_v27, %v1337_v61  ;;  %v2319_v55 = vrot.slane %v2313_v62, 1  ;;  %v2337_v50 = vstv %s5050_s18  ;;  %v5111_v57 = vadd.f32 %v6465_v52, %v4992_v34  ;;  %v6469_v61 = vld [vmem:[#allocation95_spill] sm:$0xff]  ;;  %v6470_v27 = vld [vmem:[#allocation128_spill] sm:$0xff]  ;;  %s5582_s18 = sld [smem:[#allocation8 + $0xa]] }
 0x29f   :  { %v5062_v45 = vpop.permute.xlu1 %1946  ;;  %v2322_v19 = vrot.slane %v2315_v20, 1  ;;  %v5115_v25 = vadd.f32 %v6466_v32, %v4997_v59  ;;  %v6236_v20 = vrot.slane %v5081_v60, 3  ;;  %v842_v0 = vadd.f32 %v6468_v56, %v757_v26  ;;  %v6473_v32 = vld [vmem:[#allocation54_spill] sm:$0xff]  ;;  %v6474_v56 = vld [vmem:[#allocation64_spill] sm:$0xff] }
 0x2a0   :  { %v1117_v21 = vadd.f32 %v6469_v61, %v1017_v36  ;;  %v1505_v29 = vadd.f32 %v6470_v27, %v1415_v24  ;;  %v1292_v52 = vrot.slane %v1285_v13, 7  ;;  %v5128_v59 = vstv %s5067_s2  ;;  %s5594_s2 = sld [smem:[#allocation8 + $0x12]] }
 0x2a1   :  { %2303 = vrot.lane.b32.xlu2 %v2297_v23, %s3810_s25  ;;  %v5097_v23 = vmul.f32 %v5072_v15, %v4366_v39  ;;  %v2321_v26 = vsel %vm241_vm1, %v2319_v55, %v2320_v63  ;;  %v2338_v36 = vmul.f32 %v2337_v50, %v4363_v51  ;;  %v2339_v24 = vmul.f32 %v2337_v50, %v4366_v39 }
 0x2a2   :  { %v2323_v27 = vsel %vm241_vm1, %v2320_v63, %v2322_v19  ;;  %v5147_v34 = vmul.f32 %v5128_v59, %v4355_v11 }
 0x2a3   :  { %v5084_v38 = vpop.permute.xlu2 %2048  ;;  %2299 = vrot.lane.b32.xlu0 %v2296_v44, %s3810_s25  ;;  %v1280_v44 = vadd.f32 %v1274_v33, %v1192_v6  ;;  %v2340_v6 = vmul.f32 %v2337_v50, %v4355_v11  ;;  %v6472_v33 = vld [vmem:[#allocation140_spill] sm:$0xff] }
 0x2a4   :  { %v6477_v50 = vld [vmem:[#allocation152_spill] sm:$0xff] }
 0x2a5   :  { %2301 = vrot.lane.b32.xlu1 %v2298_v2, %s3810_s25  ;;  %v5118_v5 = vpop.permute.xlu0 %1969  ;;  %v6467_v2 = vld [vmem:[#allocation52_spill] sm:$0xff]  ;;  %v1356_v13 = vadd.f32 %v6236_v20, %v1280_v44  ;;  %v5154_v44 = vstv %s5101_s19  ;;  %v2347_v63 = vrot.slane %v2340_v6, 5  ;;  %v2362_v20 = vstv %s5107_s20  ;;  %s5604_s19 = sld [smem:[#allocation8 + $0x1e]] }
 0x2a6   :  { %v686_v62 = vadd.f32 %v6467_v2, %v585_v48  ;;  %v1605_v48 = vadd.f32 %v6472_v33, %v1505_v29  ;;  %v710_v2 = vadd.f32 %v6473_v32, %v609_v40  ;;  %v942_v29 = vadd.f32 %v6475_v7, %v842_v0  ;;  %v6476_v33 = vld [vmem:[#allocation107_spill] sm:$0xff]  ;;  %v6480_v7 = vld [vmem:[#allocation164_spill] sm:$0xff]  ;;  %s5613_s20 = sld [smem:[#allocation8 + $0x21]] }
 0x2a7   :  { %v5124_v31 = vpop.permute.xlu1 %1971  ;;  %v1217_v55 = vadd.f32 %v6476_v33, %v1117_v21  ;;  %v2344_v21 = vrot.slane %v2338_v36, 5  ;;  %v2345_v33 = vrot.slane %v2339_v24, 5 }
 0x2a8   :  { %6471 = vst [vmem:[#allocation19_spill] sm:$0xff] %v5124_v31  ;;  %v776_v61 = vadd.f32 %v6474_v56, %v686_v62  ;;  %v1705_v40 = vadd.f32 %v6477_v50, %v1605_v48  ;;  %v6478_v62 = vrot.slane %v5097_v23, 7  ;;  %v6479_v56 = vld [vmem:[#allocation119_spill] sm:$0xff]  ;;  %v711_v48 = vadd.f32 %v6481_v14, %v610_v8  ;;  %v6482_v50 = vld [vmem:[#allocation66_spill] sm:$0xff] }
 0x2a9   :  { %2328 = vrot.lane.b32.xlu2 %v2322_v19, %s3810_s25  ;;  %v1435_v19 = vadd.f32 %v6479_v56, %v1356_v13  ;;  %v795_v43 = vadd.f32 %v6482_v50, %v710_v2  ;;  %v6486_v13 = vld [vmem:[#allocation86_spill] sm:$0xff]  ;;  %v6487_v56 = vld [vmem:[#allocation176_spill] sm:$0xff]  ;;  %v5174_v14 = vmul.f32 %v4958_v4, %v4363_v51  ;;  %v6489_v8 = vld [vmem:[#allocation143_spill] sm:$0xff]  ;;  %v2365_v2 = vmul.f32 %v2362_v20, %v4355_v11 }
 0x2aa   :  { %v1293_v32 = vsel %vm569_vm4, %v6478_v62, %v1292_v52  ;;  %v1805_v0 = vadd.f32 %v6480_v7, %v1705_v40  ;;  %v866_v52 = vadd.f32 %v6483_v35, %v776_v61  ;;  %v6484_v62 = vld [vmem:[#allocation131_spill] sm:$0xff]  ;;  %v6241_v40 = vrot.slane %v5147_v34, 3  ;;  %v6491_v7 = vld [vmem:[#allocation88_spill] sm:$0xff]  ;;  %v6492_v50 = vld [vmem:[#allocation98_spill] sm:$0xff] }
 0x2ab   :  { %v5141_v46 = vpop.permute.xlu2 %2068  ;;  %2324 = vrot.lane.b32.xlu0 %v2321_v26, %s3810_s25  ;;  %v1530_v37 = vadd.f32 %v6484_v62, %v1435_v19  ;;  %v1042_v26 = vadd.f32 %v6486_v13, %v942_v29  ;;  %v1299_v6 = vadd.f32 %v1293_v32, %v1217_v55  ;;  %6488 = vst [vmem:[#allocation21_spill] sm:$0xff] %v5174_v14  ;;  %v6490_v4 = vld [vmem:[#allocation67_spill] sm:$0xff] }
 0x2ac   :  { %v5178_v35 = vmul.f32 %v5154_v44, %v4355_v11  ;;  %v2346_v29 = vsel %vm215_vm0, %v2344_v21, %v2345_v33  ;;  %v2363_v55 = vmul.f32 %v2362_v20, %v4363_v51  ;;  %v2364_v32 = vmul.f32 %v2362_v20, %v4366_v39  ;;  %v6493_v21 = vld [vmem:[#allocation155_spill] sm:$0xff]  ;;  %v6494_v20 = vld [vmem:[#allocation110_spill] sm:$0xff] }
 0x2ad   :  { %2326 = vrot.lane.b32.xlu1 %v2323_v27, %s3810_s25  ;;  %v5165_v31 = vpop.permute.xlu0 %1994  ;;  %v1905_v27 = vadd.f32 %v6487_v56, %v1805_v0  ;;  %v1630_v24 = vadd.f32 %v6489_v8, %v1530_v37  ;;  %v796_v19 = vadd.f32 %v6490_v4, %v711_v48  ;;  %v966_v0 = vadd.f32 %v6491_v7, %v866_v52 }
 0x2ae   :  { %6485 = vst [vmem:[#allocation20_spill] sm:$0xff] %v5165_v31  ;;  %v1142_v62 = vadd.f32 %v6492_v50, %v1042_v26  ;;  %v2348_v37 = vsel %vm215_vm0, %v2345_v33, %v2347_v63  ;;  %v1375_v11 = vadd.f32 %v6241_v40, %v1299_v6  ;;  %v6495_v33 = vld [vmem:[#allocation122_spill] sm:$0xff]  ;;  %v6496_v6 = vld [vmem:[#allocation167_spill] sm:$0xff]  ;;  %v2369_v7 = vrot.slane %v2363_v55, 5  ;;  %v6500_v40 = vld [vmem:[#allocation100_spill] sm:$0xff] }
 0x2af   :  { %v5170_v36 = vpop.permute.xlu1 %1996  ;;  %v2005_v61 = vadd.f32 %v4967_v16, %v1905_v27  ;;  %v5195_v16 = vmul.f32 %v5002_v1, %v4366_v39  ;;  %v1730_v56 = vadd.f32 %v6493_v21, %v1630_v24  ;;  %v2370_v50 = vrot.slane %v2364_v32, 5  ;;  %v6497_v24 = vld [vmem:[#allocation48_spill] sm:$0xff]  ;;  %v6499_v21 = vld [vmem:[#allocation58_spill] sm:$0xff]  ;;  %v6504_v32 = vld [vmem:[#allocation181_spill] sm:$0xff] }
 0x2b0   :  { %v1242_v48 = vadd.f32 %v6494_v20, %v1142_v62  ;;  %v1455_v8 = vadd.f32 %v6495_v33, %v1375_v11  ;;  %v6498_v62 = vld [vmem:[#allocation57_spill] sm:$0xff]  ;;  %v736_v20 = vadd.f32 %v6499_v21, %v5115_v25  ;;  %v6501_v11 = vld [vmem:[#allocation78_spill] sm:$0xff] }
 0x2b1   :  { %2353 = vrot.lane.b32.xlu2 %v2347_v63, %s3810_s25  ;;  %v2372_v63 = vrot.slane %v2365_v2, 5  ;;  %v1830_v4 = vadd.f32 %v6496_v6, %v1730_v56  ;;  %v890_v33 = vadd.f32 %v6501_v11, %v795_v43  ;;  %v6502_v56 = vld [vmem:[#allocation79_spill] sm:$0xff]  ;;  %v2371_v21 = vsel %vm215_vm0, %v2369_v7, %v2370_v50  ;;  %v6510_v11 = vld [vmem:[#allocation69_spill] sm:$0xff] }
 0x2b2   :  { %v891_v6 = vadd.f32 %v6502_v56, %v796_v19  ;;  %v6508_v19 = vrot.slane %v5178_v35, 3  ;;  %v6514_v31 = vld [vmem:[#allocation113_spill] sm:$0xff]  ;;  %v6517_v7 = vrot.slane %v5195_v16, 3 }
 0x2b3   :  { %v2089_v13 = vpop.permute.xlu2 %2088  ;;  %2349 = vrot.lane.b32.xlu0 %v2346_v29, %s3810_s25  ;;  %v1066_v29 = vadd.f32 %v6500_v40, %v966_v0  ;;  %v1930_v26 = vadd.f32 %v6504_v32, %v1830_v4  ;;  %v1264_v0 = vmul.f32 %v5010_v12, %v4363_v51  ;;  %v6509_v4 = vld [vmem:[#allocation146_spill] sm:$0xff]  ;;  %v2373_v12 = vsel %vm215_vm0, %v2370_v50, %v2372_v63 }
 0x2b4   :  { %v5198_v27 = vadd.f32 %v2089_v13, %v2005_v61  ;;  %v660_v61 = vadd.f32 %v6497_v24, %v5030_v22  ;;  %v735_v13 = vadd.f32 %v6498_v62, %v5111_v57  ;;  %v6505_v22 = vrot.slane %v4976_v17, 7  ;;  %v6507_v24 = vld [vmem:[#allocation112_spill] sm:$0xff]  ;;  %v6512_v32 = vld [vmem:[#allocation90_spill] sm:$0xff] }
 0x2b5   :  { %2351 = vrot.lane.b32.xlu1 %v2348_v37, %s3810_s25  ;;  %v5214_v2 = vpop.permute.xlu0 %2019  ;;  %v6503_v37 = vld [vmem:[#allocation134_spill] sm:$0xff]  ;;  %v6506_v57 = vrot.slane %v5174_v14, 7  ;;  %v1166_v40 = vadd.f32 %v6507_v24, %v1066_v29  ;;  %v2030_v17 = vadd.f32 %v5027_v58, %v1930_v26  ;;  %v6513_v24 = vld [vmem:[#allocation91_spill] sm:$0xff]  ;;  %v6516_v26 = vrot.slane %v5024_v30, 3  ;;  %v6521_v30 = vld [vmem:[#allocation49_spill] sm:$0xff] }
 0x2b6   :  { %v1555_v55 = vadd.f32 %v6503_v37, %v1455_v8  ;;  %v1318_v8 = vadd.f32 %v6508_v19, %v1242_v48  ;;  %v815_v56 = vadd.f32 %v6510_v11, %v735_v13  ;;  %v6511_v37 = vld [vmem:[#allocation70_spill] sm:$0xff]  ;;  %v991_v43 = vadd.f32 %v6513_v24, %v891_v6  ;;  %v6519_v6 = vld [vmem:[#allocation125_spill] sm:$0xff] }
 0x2b7   :  { %v5220_v52 = vpop.permute.xlu1 %2021  ;;  %v1253_v25 = vsel %vm569_vm4, %v6506_v57, %v6505_v22  ;;  %v816_v29 = vadd.f32 %v6511_v37, %v736_v20  ;;  %v990_v22 = vadd.f32 %v6512_v32, %v890_v33  ;;  %v6515_v48 = vld [vmem:[#allocation158_spill] sm:$0xff]  ;;  %v1331_v13 = vsel %vm645_vm5, %v6517_v7, %v6516_v26  ;;  %v6523_v11 = vld [vmem:[#allocation81_spill] sm:$0xff]  ;;  %v6524_v32 = vld [vmem:[#allocation103_spill] sm:$0xff] }
 0x2b8   :  { %v1655_v62 = vadd.f32 %v6509_v4, %v1555_v55  ;;  %v1395_v14 = vadd.f32 %v6514_v31, %v1318_v8  ;;  %v1260_v58 = vadd.f32 %v1253_v25, %v1166_v40  ;;  %v1340_v20 = vmul.f32 %v5060_v3, %v4363_v51  ;;  %v6518_v31 = vld [vmem:[#allocation102_spill] sm:$0xff]  ;;  %v6528_v26 = vld [vmem:[#allocation115_spill] sm:$0xff] }
 0x2b9   :  { %2378 = vrot.lane.b32.xlu2 %v2372_v63, %s3810_s25  ;;  %v1341_v63 = vmul.f32 %v5060_v3, %v4366_v39  ;;  %v1090_v50 = vadd.f32 %v6518_v31, %v990_v22  ;;  %v1270_v33 = vrot.slane %v1264_v0, 7  ;;  %v6520_v25 = vld [vmem:[#allocation170_spill] sm:$0xff]  ;;  %v661_v4 = vadd.f32 %v6521_v30, %v5040_v18 }
 0x2ba   :  { %v1755_v19 = vadd.f32 %v6515_v48, %v1655_v62  ;;  %v1480_v8 = vadd.f32 %v6519_v6, %v1395_v14  ;;  %v6522_v62 = vld [vmem:[#allocation60_spill] sm:$0xff]  ;;  %v915_v37 = vadd.f32 %v6523_v11, %v815_v56  ;;  %v1091_v3 = vadd.f32 %v6524_v32, %v991_v43  ;;  %v6526_v0 = vld [vmem:[#allocation114_spill] sm:$0xff]  ;;  %v6527_v14 = vld [vmem:[#allocation137_spill] sm:$0xff] }
 0x2bb   :  { %v2109_v57 = vpop.permute.xlu2 %2108  ;;  %2374 = vrot.lane.b32.xlu0 %v2371_v21, %s3810_s25  ;;  %v6525_v21 = vld [vmem:[#allocation82_spill] sm:$0xff]  ;;  %v1190_v24 = vadd.f32 %v6526_v0, %v1090_v50  ;;  %v1336_v7 = vadd.f32 %v1331_v13, %v1260_v58  ;;  %v1347_v31 = vrot.slane %v1341_v63, 3  ;;  %v6529_v56 = vrot.slane %v5035_v54, 7  ;;  %v6530_v6 = vld [vmem:[#allocation149_spill] sm:$0xff]  ;;  %v6534_v58 = vld [vmem:[#allocation127_spill] sm:$0xff] }
 0x2bc   :  { %v5244_v55 = vadd.f32 %v2109_v57, %v2030_v17  ;;  %v1855_v40 = vadd.f32 %v6520_v25, %v1755_v19  ;;  %v755_v17 = vadd.f32 %v6522_v62, %v660_v61  ;;  %v916_v22 = vadd.f32 %v6525_v21, %v816_v29  ;;  %v6531_v25 = vld [vmem:[#allocation61_spill] sm:$0xff]  ;;  %v6533_v62 = vld [vmem:[#allocation94_spill] sm:$0xff] }
 0x2bd   :  { %2376 = vrot.lane.b32.xlu1 %v2373_v12, %s3810_s25  ;;  %v5265_v57 = vpop.permute.xlu0 %2044  ;;  %v1580_v48 = vadd.f32 %v6527_v14, %v1480_v8  ;;  %v1191_v18 = vadd.f32 %v6528_v26, %v1091_v3  ;;  %v1346_v61 = vrot.slane %v1340_v20, 3  ;;  %v1272_v43 = vsel %vm569_vm4, %v1270_v33, %v6529_v56  ;;  %v6535_v32 = vld [vmem:[#allocation161_spill] sm:$0xff]  ;;  %s5626_s25 = sld [smem:[#allocation8 + $0x32]] }
 0x2be   :  { %v1955_v19 = vadd.f32 %v4878_v47, %v1855_v40  ;;  %v1283_v29 = vmul.f32 %v5072_v15, %v4363_v51  ;;  %v756_v47 = vadd.f32 %v6531_v25, %v661_v4  ;;  %v6532_v40 = vld [vmem:[#allocation93_spill] sm:$0xff]  ;;  %v1016_v11 = vadd.f32 %v6533_v62, %v916_v22 }
 0x2bf   :  { %v5271_v12 = vpop.permute.xlu1 %2046  ;;  %v1680_v50 = vadd.f32 %v6530_v6, %v1580_v48  ;;  %v1015_v30 = vadd.f32 %v6532_v40, %v915_v37  ;;  %v1414_v13 = vadd.f32 %v6534_v58, %v1336_v7  ;;  %v1278_v63 = vadd.f32 %v1270_v33, %v1190_v24  ;;  %v6536_v37 = vld [vmem:[#allocation139_spill] sm:$0xff]  ;;  %v6537_v22 = vld [vmem:[#allocation105_spill] sm:$0xff]  ;;  %v6540_v7 = vld [vmem:[#allocation72_spill] sm:$0xff] }
 0x2c0   :  { %v2055_v8 = vadd.f32 %v5084_v38, %v1955_v19  ;;  %v1359_v54 = vmul.f32 %v5128_v59, %v4363_v51  ;;  %v1279_v21 = vadd.f32 %v1272_v43, %v1191_v18  ;;  %v1348_v38 = vsel %vm645_vm5, %v1346_v61, %v1347_v31  ;;  %v6539_v19 = vld [vmem:[#allocation173_spill] sm:$0xff]  ;;  %v6542_v43 = vld [vmem:[#allocation106_spill] sm:$0xff] }
 0x2c1   :  { %v1780_v3 = vadd.f32 %v6535_v32, %v1680_v50  ;;  %v1360_v4 = vmul.f32 %v5128_v59, %v4366_v39  ;;  %v1504_v0 = vadd.f32 %v6536_v37, %v1414_v13  ;;  %v1115_v14 = vadd.f32 %v6537_v22, %v1015_v30  ;;  %v6541_v6 = vld [vmem:[#allocation73_spill] sm:$0xff]  ;;  %v6543_v50 = vld [vmem:[#allocation151_spill] sm:$0xff]  ;;  %v6547_v32 = vld [vmem:[#allocation84_spill] sm:$0xff] }
 0x2c2   :  { %v1289_v48 = vrot.slane %v1283_v29, 7  ;;  %v6538_v33 = vrot.slane %v5081_v60, 3  ;;  %v840_v56 = vadd.f32 %v6540_v7, %v755_v17  ;;  %v841_v18 = vadd.f32 %v6541_v6, %v756_v47  ;;  %v6544_v25 = vld [vmem:[#allocation117_spill] sm:$0xff] }
 0x2c3   :  { %v2129_v20 = vpop.permute.xlu2 %2128  ;;  %v1880_v26 = vadd.f32 %v6539_v19, %v1780_v3  ;;  %v1116_v61 = vadd.f32 %v6542_v43, %v1016_v11  ;;  %v1215_v40 = vadd.f32 %v6544_v25, %v1115_v14  ;;  %v1354_v30 = vadd.f32 %v1348_v38, %v1278_v63  ;;  %v6554_v43 = vld [vmem:[#allocation142_spill] sm:$0xff] }
 0x2c4   :  { %v5288_v15 = vadd.f32 %v2129_v20, %v2055_v8  ;;  %v1350_v24 = vsel %vm645_vm5, %v1347_v31, %v6538_v33  ;;  %v1604_v8 = vadd.f32 %v6543_v50, %v1504_v0  ;;  %v1365_v29 = vrot.slane %v1359_v54, 3  ;;  %v6545_v31 = vld [vmem:[#allocation118_spill] sm:$0xff]  ;;  %v6546_v20 = vld [vmem:[#allocation163_spill] sm:$0xff]  ;;  %v6549_v0 = vld [vmem:[#allocation129_spill] sm:$0xff] }
 0x2c5   :  { %v5303_v59 = vpop.permute.xlu0 %2064  ;;  %v1980_v60 = vadd.f32 %v4921_v10, %v1880_v26  ;;  %v1216_v58 = vadd.f32 %v6545_v31, %v1116_v61  ;;  %v1355_v13 = vadd.f32 %v1350_v24, %v1279_v21  ;;  %v1366_v17 = vrot.slane %v1360_v4, 3  ;;  %v6550_v21 = vld [vmem:[#allocation130_spill] sm:$0xff]  ;;  %v6551_v4 = vld [vmem:[#allocation175_spill] sm:$0xff]  ;;  %v6552_v24 = vld [vmem:[#allocation85_spill] sm:$0xff] }
 0x2c6   :  { %v1704_v47 = vadd.f32 %v6546_v20, %v1604_v8  ;;  %v940_v11 = vadd.f32 %v6547_v32, %v840_v56  ;;  %v6548_v3 = vrot.slane %v5097_v23, 7  ;;  %v1433_v22 = vadd.f32 %v6549_v0, %v1354_v30  ;;  %v6553_v26 = vld [vmem:[#allocation141_spill] sm:$0xff] }
 0x2c7   :  { %v5307_v62 = vpop.permute.xlu1 %2066  ;;  %v2075_v63 = vadd.f32 %v5141_v46, %v1980_v60  ;;  %v1302_v10 = vmul.f32 %v5154_v44, %v4363_v51  ;;  %v1303_v54 = vmul.f32 %v5154_v44, %v4366_v39  ;;  %v1434_v38 = vadd.f32 %v6550_v21, %v1355_v13  ;;  %v6555_v39 = vld [vmem:[#allocation96_spill] sm:$0xff]  ;;  %v6556_v8 = vld [vmem:[#allocation97_spill] sm:$0xff]  ;;  %v6559_v13 = vld [vmem:[#allocation154_spill] sm:$0xff] }
 0x2c8   :  { %v1291_v37 = vsel %vm569_vm4, %v1289_v48, %v6548_v3  ;;  %v1804_v14 = vadd.f32 %v6551_v4, %v1704_v47  ;;  %v941_v19 = vadd.f32 %v6552_v24, %v841_v18  ;;  %v1297_v23 = vadd.f32 %v1289_v48, %v1215_v40  ;;  %v6558_v48 = vld [vmem:[#allocation153_spill] sm:$0xff]  ;;  %v6560_v47 = vld [vmem:[#allocation108_spill] sm:$0xff] }
 0x2c9   :  { %v1528_v7 = vadd.f32 %v6553_v26, %v1433_v22  ;;  %v1298_v6 = vadd.f32 %v1291_v37, %v1216_v58  ;;  %v1367_v46 = vsel %vm645_vm5, %v1365_v29, %v1366_v17  ;;  %v1529_v61 = vadd.f32 %v6554_v43, %v1434_v38  ;;  %v6562_v0 = vld [vmem:[#allocation109_spill] sm:$0xff]  ;;  %v6565_v38 = vld [vmem:[#allocation132_spill] sm:$0xff] }
 0x2ca   :  { %v1904_v50 = vadd.f32 %v4948_v49, %v1804_v14  ;;  %v1040_v44 = vadd.f32 %v6555_v39, %v940_v11  ;;  %v1041_v25 = vadd.f32 %v6556_v8, %v941_v19  ;;  %v6557_v30 = vrot.slane %v5147_v34, 3  ;;  %v6561_v11 = vld [vmem:[#allocation165_spill] sm:$0xff] }
 0x2cb   :  { %v2154_v33 = vpop.permute.xlu2 %2153  ;;  %v1628_v40 = vadd.f32 %v6558_v48, %v1528_v7  ;;  %v1308_v60 = vrot.slane %v1302_v10, 3  ;;  %v1309_v31 = vrot.slane %v1303_v54, 3  ;;  %v1629_v58 = vadd.f32 %v6559_v13, %v1529_v61  ;;  %v6564_v10 = vld [vmem:[#allocation120_spill] sm:$0xff]  ;;  %v6572_v8 = vld [vmem:[#allocation145_spill] sm:$0xff] }
 0x2cc   :  { %v5325_v56 = vadd.f32 %v2154_v33, %v2075_v63  ;;  %v1369_v18 = vsel %vm645_vm5, %v1366_v17, %v6557_v30  ;;  %v2004_v29 = vadd.f32 %v5170_v36, %v1904_v50  ;;  %v1140_v49 = vadd.f32 %v6560_v47, %v1040_v44  ;;  %v6563_v17 = vld [vmem:[#allocation166_spill] sm:$0xff]  ;;  %v6567_v33 = vld [vmem:[#allocation121_spill] sm:$0xff]  ;;  %v6569_v7 = vld [vmem:[#allocation180_spill] sm:$0xff] }
 0x2cd   :  { %v5338_v20 = vpop.permute.xlu0 %2084  ;;  %v1373_v32 = vadd.f32 %v1367_v46, %v1297_v23  ;;  %v1728_v3 = vadd.f32 %v6561_v11, %v1628_v40  ;;  %v1141_v34 = vadd.f32 %v6562_v0, %v1041_v25  ;;  %v1374_v22 = vadd.f32 %v1369_v18, %v1298_v6  ;;  %v6566_v36 = vld [vmem:[#allocation178_spill] sm:$0xff]  ;;  %v6568_v23 = vld [vmem:[#allocation133_spill] sm:$0xff]  ;;  %v6571_v50 = vld [vmem:[#allocation144_spill] sm:$0xff] }
 0x2ce   :  { %v1729_v63 = vadd.f32 %v6563_v17, %v1629_v58  ;;  %v1240_v54 = vadd.f32 %v6564_v10, %v1140_v49  ;;  %v1310_v19 = vsel %vm645_vm5, %v1308_v60, %v1309_v31  ;;  %v6570_v6 = vrot.slane %v5178_v35, 3  ;;  %v6573_v48 = vld [vmem:[#allocation156_spill] sm:$0xff]  ;;  %v6574_v58 = vld [vmem:[#allocation157_spill] sm:$0xff] }
 0x2cf   :  { %v2087_v37 = vpop.permute.xlu1 %2086  ;;  %v1453_v4 = vadd.f32 %v6565_v38, %v1373_v32  ;;  %v1828_v14 = vadd.f32 %v6566_v36, %v1728_v3  ;;  %v1241_v24 = vadd.f32 %v6567_v33, %v1141_v34  ;;  %v1454_v26 = vadd.f32 %v6568_v23, %v1374_v22  ;;  %v6576_v32 = vld [vmem:[#allocation168_spill] sm:$0xff]  ;;  %v6578_v0 = vld [vmem:[#allocation169_spill] sm:$0xff] }
 0x2d0   :  { %v5344_v21 = vadd.f32 %v2087_v37, %v2004_v29  ;;  %v1829_v46 = vadd.f32 %v6569_v7, %v1729_v63  ;;  %v1312_v61 = vsel %vm645_vm5, %v1309_v31, %v6570_v6  ;;  %v1316_v18 = vadd.f32 %v1310_v19, %v1240_v54  ;;  %v6575_v31 = vld [vmem:[#allocation123_spill] sm:$0xff]  ;;  %v6577_v37 = vld [vmem:[#allocation124_spill] sm:$0xff] }
 0x2d1   :  { %v1553_v39 = vadd.f32 %v6571_v50, %v1453_v4  ;;  %v1928_v44 = vadd.f32 %v4994_v42, %v1828_v14  ;;  %v1554_v25 = vadd.f32 %v6572_v8, %v1454_v26  ;;  %v1317_v13 = vadd.f32 %v1312_v61, %v1241_v24  ;;  %v6580_v63 = vld [vmem:[#allocation183_spill] sm:$0xff]  ;;  %v6581_v54 = vld [vmem:[#allocation136_spill] sm:$0xff] }
 0x2d2   :  { %v1929_v30 = vadd.f32 %v5006_v41, %v1829_v46  ;;  %v1393_v49 = vadd.f32 %v6575_v31, %v1316_v18  ;;  %v6582_v38 = vld [vmem:[#allocation184_spill] sm:$0xff]  ;;  %v6583_v14 = vld [vmem:[#allocation147_spill] sm:$0xff] }
 0x2d3   :  { %v5353_v43 = vpop.permute.xlu2 %2178  ;;  %v1653_v40 = vadd.f32 %v6573_v48, %v1553_v39  ;;  %v2028_v60 = vadd.f32 %v5214_v2, %v1928_v44  ;;  %v1654_v29 = vadd.f32 %v6574_v58, %v1554_v25  ;;  %v1394_v41 = vadd.f32 %v6577_v37, %v1317_v13  ;;  %v6579_v2 = vld [vmem:[#allocation135_spill] sm:$0xff]  ;;  %v6584_v19 = vld [vmem:[#allocation148_spill] sm:$0xff]  ;;  %v6591_v37 = vld [vmem:[#allocation177_spill] sm:$0xff] }
 0x2d4   :  { %v2029_v35 = vadd.f32 %v5220_v52, %v1929_v30  ;;  %v1478_v17 = vadd.f32 %v6579_v2, %v1393_v49  ;;  %v6585_v7 = vld [vmem:[#allocation159_spill] sm:$0xff]  ;;  %v6586_v61 = vld [vmem:[#allocation160_spill] sm:$0xff] }
 0x2d5   :  { %v2105_v47 = vpop.permute.xlu0 %2104  ;;  %v1753_v11 = vadd.f32 %v6576_v32, %v1653_v40  ;;  %v1754_v34 = vadd.f32 %v6578_v0, %v1654_v29  ;;  %v1479_v52 = vadd.f32 %v6581_v54, %v1394_v41  ;;  %v6587_v8 = vld [vmem:[#allocation171_spill] sm:$0xff]  ;;  %v6588_v48 = vld [vmem:[#allocation172_spill] sm:$0xff] }
 0x2d6   :  { %v5368_v42 = vadd.f32 %v2105_v47, %v2028_v60  ;;  %v1578_v33 = vadd.f32 %v6583_v14, %v1478_v17  ;;  %v6589_v58 = vld [vmem:[#allocation19_spill] sm:$0xff]  ;;  %v6593_v17 = vld [vmem:[#allocation182_spill] sm:$0xff] }
 0x2d7   :  { %v2107_v3 = vpop.permute.xlu1 %2106  ;;  %v1853_v10 = vadd.f32 %v6580_v63, %v1753_v11  ;;  %v1854_v4 = vadd.f32 %v6582_v38, %v1754_v34  ;;  %v1579_v23 = vadd.f32 %v6584_v19, %v1479_v52  ;;  %v6594_v63 = vrot.slane %v6593_v17, 4 }
 0x2d8   :  { %v5372_v22 = vadd.f32 %v2107_v3, %v2029_v35  ;;  %v1678_v46 = vadd.f32 %v6585_v7, %v1578_v33  ;;  %v6597_v7 = vld [vmem:[#allocation28_spill] sm:$0xff] }
 0x2d9   :  { %v1953_v24 = vadd.f32 %v5056_v9, %v1853_v10  ;;  %v1954_v26 = vadd.f32 %v5062_v45, %v1854_v4  ;;  %v1679_v50 = vadd.f32 %v6586_v61, %v1579_v23  ;;  %v6595_v4 = vld [vmem:[#allocation17_spill] sm:$0xff] }
 0x2da   :  { %v1778_v25 = vadd.f32 %v6587_v8, %v1678_v46 }
 0x2db   :  { %v2204_v36 = vpop.permute.xlu2 %2203  ;;  %v2053_v6 = vadd.f32 %v5265_v57, %v1953_v24  ;;  %v2054_v39 = vadd.f32 %v5271_v12, %v1954_v26  ;;  %v1779_v9 = vadd.f32 %v6588_v48, %v1679_v50  ;;  %v6596_v24 = vld [vmem:[#allocation18_spill] sm:$0xff]  ;;  %v6598_v50 = vld [vmem:[#allocation39_spill] sm:$0xff] }
 0x2dc   :  { %v1878_v45 = vadd.f32 %v4902_v53, %v1778_v25 }
 0x2dd   :  { %v2125_v44 = vpop.permute.xlu0 %2124  ;;  %v1879_v60 = vadd.f32 %v4905_v28, %v1779_v9  ;;  %v6590_v28 = vld [vmem:[#allocation16_spill] sm:$0xff] }
 0x2de   :  { %v5387_v30 = vadd.f32 %v2125_v44, %v2053_v6  ;;  %v1978_v57 = vadd.f32 %v5118_v5, %v1878_v45  ;;  %v171_v5 = vmul.f32 %v6591_v37, %v6590_v28  ;;  %v2210_v6 = vadd.f32 %v2204_v36, %v5244_v55  ;;  %v6604_v37 = vld [vmem:[#allocation111_spill] sm:$0xff] }
 0x2df   :  { %v2127_v18 = vpop.permute.xlu1 %2126  ;;  %v1979_v29 = vadd.f32 %v6589_v58, %v1879_v60  ;;  %v6600_v60 = vld [vmem:[#allocation63_spill] sm:$0xff]  ;;  %v1321_v36 = vmul.f32 %v5002_v1, %v4363_v51 }
 0x2e0   :  { %v5390_v40 = vadd.f32 %v2127_v18, %v2054_v39  ;;  %v2073_v12 = vadd.f32 %v5303_v59, %v1978_v57  ;;  %v177_v0 = vrot.slane %v171_v5, 4  ;;  %v6592_v59 = vld [vmem:[#allocation179_spill] sm:$0xff] }
 0x2e1   :  { %v2074_v35 = vadd.f32 %v5307_v62, %v1979_v29  ;;  %v127_v62 = vmul.f32 %v6592_v59, %v6590_v28  ;;  %v6599_v18 = vld [vmem:[#allocation51_spill] sm:$0xff]  ;;  %v1327_v59 = vrot.slane %v1321_v36, 3  ;;  %v6612_v36 = vld [vmem:[#allocation174_spill] sm:$0xff] }
 0x2e2   :  { %v179_v10 = vsel %vm157_vm6, %v177_v0, %v6594_v63  ;;  %v6601_v57 = vld [vmem:[#allocation75_spill] sm:$0xff] }
 0x2e3   :  { %v2229_v13 = vpop.permute.xlu2 %2228  ;;  %v185_v52 = vadd.f32 %v179_v10, %v127_v62  ;;  %v6602_v29 = vld [vmem:[#allocation87_spill] sm:$0xff]  ;;  %v6605_v10 = vld [vmem:[#allocation21_spill] sm:$0xff] }
 0x2e4   :  { %v2235_v23 = vadd.f32 %v2229_v13, %v5288_v15 }
 0x2e5   :  { %v2150_v47 = vpop.permute.xlu0 %2149  ;;  %v281_v14 = vadd.f32 %v6595_v4, %v185_v52  ;;  %v6607_v4 = vrot.slane %v5195_v16, 3 }
 0x2e6   :  { %v5398_v31 = vadd.f32 %v2150_v47, %v2073_v12 }
 0x2e7   :  { %v2152_v49 = vpop.permute.xlu1 %2151  ;;  %v381_v19 = vadd.f32 %v6596_v24, %v281_v14 }
 0x2e8   :  { %v5400_v32 = vadd.f32 %v2152_v49, %v2074_v35  ;;  %v6603_v35 = vld [vmem:[#allocation99_spill] sm:$0xff]  ;;  %v2185_v49 = vadd.f32 %v5353_v43, %v5198_v27  ;;  %v1329_v27 = vsel %vm645_vm5, %v1327_v59, %v6607_v4 }
 0x2e9   :  { %v483_v46 = vadd.f32 %v6597_v7, %v381_v19 }
 0x2eb   :  { %v2254_v11 = vpop.permute.xlu2 %2253  ;;  %v584_v39 = vadd.f32 %v6598_v50, %v483_v46  ;;  %v6609_v46 = vld [vmem:[#allocation138_spill] sm:$0xff] }
 0x2ec   :  { %v2260_v17 = vadd.f32 %v2254_v11, %v5325_v56  ;;  %v2429_v56 = vstv %s6226_s1  ;;  %s3811_s1 = smov 3  }
 0x2ed   :  { %v5402_v3 = vpop.permute.xlu0 %2174  ;;  %v685_v48 = vadd.f32 %v6599_v18, %v584_v39 }
 0x2ef   :  { %v5404_v53 = vpop.permute.xlu1 %2176  ;;  %v775_v15 = vadd.f32 %v6600_v60, %v685_v48 }
 0x2f0   :  { %v2184_v4 = vadd.f32 %v5404_v53, %v5344_v21 }
 0x2f1   :  { %v865_v58 = vadd.f32 %v6601_v57, %v775_v15  ;;  %v6611_v15 = vld [vmem:[#allocation162_spill] sm:$0xff] }
 0x2f3   :  { %v2279_v41 = vpop.permute.xlu2 %2278  ;;  %v965_v55 = vadd.f32 %v6602_v29, %v865_v58 }
 0x2f4   :  { %v2285_v0 = vadd.f32 %v2279_v41, %v2185_v49  ;;  %v6613_v49 = vld [vmem:[#allocation185_spill] sm:$0xff] }
 0x2f5   :  { %v2200_v34 = vpop.permute.xlu0 %2199  ;;  %v1065_v47 = vadd.f32 %v6603_v35, %v965_v55 }
 0x2f6   :  { %v2208_v57 = vadd.f32 %v2200_v34, %v5368_v42  ;;  %v6614_v42 = vld [vmem:[#allocation20_spill] sm:$0xff] }
 0x2f7   :  { %v2202_v2 = vpop.permute.xlu1 %2201  ;;  %v1165_v5 = vadd.f32 %v6604_v37, %v1065_v47 }
 0x2f8   :  { %v2209_v58 = vadd.f32 %v2202_v2, %v5372_v22 }
 0x2fb   :  { %v2304_v54 = vpop.permute.xlu2 %2303 }
 0x2fc   :  { %v2310_v44 = vadd.f32 %v2304_v54, %v2210_v6  ;;  %v6606_v54 = vrot.slane %v6605_v10, 7 }
 0x2fd   :  { %v2225_v38 = vpop.permute.xlu0 %2224 }
 0x2fe   :  { %v1259_v52 = vadd.f32 %v6606_v54, %v1165_v5  ;;  %v2233_v6 = vadd.f32 %v2225_v38, %v5387_v30 }
 0x2ff   :  { %v2227_v33 = vpop.permute.xlu1 %2226 }
 0x300   :  { %v1335_v11 = vadd.f32 %v1329_v27, %v1259_v52  ;;  %v2234_v50 = vadd.f32 %v2227_v33, %v5390_v40 }
 0x303   :  { %v2329_v26 = vpop.permute.xlu2 %2328 }
 0x304   :  { %v2335_v61 = vadd.f32 %v2329_v26, %v2235_v23  ;;  %v6608_v23 = vld [vmem:[#allocation126_spill] sm:$0xff] }
 0x305   :  { %v5419_v25 = vpop.permute.xlu0 %2249  ;;  %v1413_v26 = vadd.f32 %v6608_v23, %v1335_v11 }
 0x306   :  { %v2406_v8 = vrot.slane %v2335_v61, 1 }
 0x307   :  { %v5424_v45 = vpop.permute.xlu1 %2251  ;;  %v1503_v16 = vadd.f32 %v6609_v46, %v1413_v26 }
 0x308   :  { %v5422_v9 = vadd.f32 %v2406_v8, %v2310_v44  ;;  %v6610_v44 = vld [vmem:[#allocation150_spill] sm:$0xff] }
 0x309   :  { %v1603_v18 = vadd.f32 %v6610_v44, %v1503_v16 }
 0x30a   :  { %v2420_v14 = vrot.slane %v5422_v9, 2 }
 0x30b   :  { %v2354_v13 = vpop.permute.xlu2 %2353 }
 0x30c   :  { %v2360_v51 = vadd.f32 %v2354_v13, %v2260_v17  ;;  %v1703_v13 = vadd.f32 %v6611_v15, %v1603_v18 }
 0x30d   :  { %v2275_v12 = vpop.permute.xlu0 %2274 }
 0x30e   :  { %v1803_v30 = vadd.f32 %v6612_v36, %v1703_v13 }
 0x30f   :  { %v2277_v28 = vpop.permute.xlu1 %2276 }
 0x310   :  { %v1903_v37 = vadd.f32 %v6613_v49, %v1803_v30 }
 0x312   :  { %v2003_v34 = vadd.f32 %v6614_v42, %v1903_v37 }
 0x313   :  { %v2379_v62 = vpop.permute.xlu2 %2378 }
 0x314   :  { %v5436_v63 = vadd.f32 %v2379_v62, %v2285_v0  ;;  %v2093_v54 = vadd.f32 %v5338_v20, %v2003_v34  ;;  %v2258_v20 = vadd.f32 %v5419_v25, %v5398_v31 }
 0x315   :  { %v2300_v43 = vpop.permute.xlu0 %2299 }
 0x316   :  { %v2392_v1 = vrot.slane %v5436_v63, 1  ;;  %v2308_v38 = vadd.f32 %v2300_v43, %v2208_v57  ;;  %v2284_v43 = vadd.f32 %v2277_v28, %v2184_v4  ;;  %v2447_v63 = vld [vmem:[#allocation10 + $0x13] sm:$0x3]  ;;  %v2601_v4 = vld [vmem:[#allocation10 + $0x23] sm:$0xff] }
 0x317   :  { %v2302_v24 = vpop.permute.xlu1 %2301 }
 0x318   :  { %v2399_v41 = vadd.f32 %v2392_v1, %v2360_v51  ;;  %v2309_v35 = vadd.f32 %v2302_v24, %v2209_v58 }
 0x31a   :  { %v2427_v19 = vadd.f32 %v2420_v14, %v2399_v41 }
 0x31c   :  { %v2432_v7 = vadd.f32 %v2429_v56, %v2427_v19 }
 0x31d   :  { %v2325_v39 = vpop.permute.xlu0 %2324 }
 0x31e   :  { %v2435_v61 = vmul.f32 0.5, %v2432_v7  ;;  %v2333_v48 = vadd.f32 %v2325_v39, %v2233_v6 }
 0x31f   :  { %v2327_v9 = vpop.permute.xlu1 %2326 }
 0x320   :  { %3696 = vtanh.f32 %v2435_v61  ;;  %v2334_v60 = vadd.f32 %v2327_v9, %v2234_v50  ;;  %v2403_v29 = vrot.slane %v2333_v48, 1  ;;  %v2446_v48 = vld [vmem:[#allocation10 + $0xb] sm:$0xff]  ;;  %v2492_v9 = vstv %s3631_s22  ;;  %s5797_s22 = sld [smem:[#allocation8 + $0xb]] }
 0x322   :  { %v2404_v55 = vrot.slane %v2334_v60, 1  ;;  %v2445_v60 = vld [vmem:[#allocation10 + $0x3] sm:$0xff] }
 0x324   :  { %v2405_v40 = vsel %vm241_vm1, %v2403_v29, %v2404_v55  ;;  %v2407_v33 = vsel %vm241_vm1, %v2404_v55, %v2406_v8  ;;  %v2183_v8 = vadd.f32 %v5402_v3, %v2093_v54  ;;  %v2513_v55 = vstv %s3632_s23  ;;  %s5817_s23 = sld [smem:[#allocation8 + $0x2d]] }
 0x325   :  { %v2411_v5 = vadd.f32 %v2405_v40, %v2308_v38  ;;  %v2412_v0 = vadd.f32 %v2407_v33, %v2309_v35  ;;  %v2350_v59 = vpop.permute.xlu0 %2349 }
 0x326   :  { %v3697_v47 = vpop.eup %3696  ;;  %v2283_v27 = vadd.f32 %v2275_v12, %v2183_v8  ;;  %v2358_v7 = vadd.f32 %v2350_v59, %v2258_v20  ;;  %v2602_v8 = vld [vmem:[#allocation10 + $0x2b] sm:$0x3]  ;;  %v2580_v20 = vstv %s3635_s28  ;;  %s3648_s28 = sld [smem:[#allocation8 + $0x13]] }
 0x327   :  { %v2441_v62 = vmul.f32 0.5, %v3697_v47  ;;  %v2417_v22 = vrot.slane %v2411_v5, 2  ;;  %v2418_v2 = vrot.slane %v2412_v0, 2  ;;  %v2352_v17 = vpop.permute.xlu1 %2351 }
 0x329   :  { %v2444_v10 = vadd.f32 0.5, %v2441_v62  ;;  %v2419_v52 = vsel %vm443_vm3, %v2417_v22, %v2418_v2  ;;  %v2421_v51 = vsel %vm443_vm3, %v2418_v2, %v2420_v14  ;;  %v2259_v14 = vadd.f32 %v5424_v45, %v5400_v32 }
 0x32a   :  { %v2538_v62 = vstv %s5487_s26  ;;  %s5819_s26 = sld [smem:[#allocation8 + $0x11]] }
 0x32b   :  { %2455 = vrot.lane.b32.xlu2 %v2444_v10, %s3811_s1  ;;  %v2359_v46 = vadd.f32 %v2352_v17, %v2259_v14  ;;  %v2559_v17 = vstv %s3634_s27  ;;  %v2641_v14 = vstv %s3638_s29  ;;  %s3646_s27 = sld [smem:[#allocation8 + $0x15]] }
 0x32c   :  { %s3649_s29 = sld [smem:[#allocation8 + $0x16]] }
 0x32d   :  { %v2375_v41 = vpop.permute.xlu0 %2374 }
 0x32e   :  { %v2383_v24 = vadd.f32 %v2375_v41, %v2283_v27  ;;  %v2600_v41 = vld [vmem:[#allocation10 + $0x1b] sm:$0xff] }
 0x32f   :  { %v2377_v11 = vpop.permute.xlu1 %2376 }
 0x330   :  { %v2384_v19 = vadd.f32 %v2377_v11, %v2284_v43  ;;  %v2389_v23 = vrot.slane %v2383_v24, 1  ;;  %v2777_v11 = vld [vmem:[#allocation10 + $0x43] sm:$0x3] }
 0x332   :  { %v2390_v26 = vrot.slane %v2384_v19, 1 }
 0x334   :  { %v2391_v3 = vsel %vm241_vm1, %v2389_v23, %v2390_v26  ;;  %v2393_v21 = vsel %vm241_vm1, %v2390_v26, %v2392_v1  ;;  %v2953_v23 = vld [vmem:[#allocation10 + $0x5b] sm:$0x3]  ;;  %v3135_v26 = vld [vmem:[#allocation10 + $0x73] sm:$0x3] }
 0x335   :  { %v2397_v53 = vadd.f32 %v2391_v3, %v2358_v7  ;;  %v2398_v12 = vadd.f32 %v2393_v21, %v2359_v46  ;;  %v5537_v46 = vstv %s3640_s30  ;;  %v5539_v3 = vstv %s3641_s4  ;;  %s3628_s30 = sld [smem:[#allocation8 + $0x3]] }
 0x336   :  { %v2607_v21 = vstv %s5511_s7  ;;  %s3651_s4 = sld [smem:[#allocation8 + $0x14]] }
 0x337   :  { %v2425_v28 = vadd.f32 %v2419_v52, %v2397_v53  ;;  %v2426_v16 = vadd.f32 %v2421_v51, %v2398_v12  ;;  %v3278_v53 = vld [vmem:[#allocation10 + $0x8b] sm:$0x3]  ;;  %s3629_s7 = sld [smem:[#allocation8 + $0x6]] }
 0x339   :  { %v2430_v6 = vadd.f32 %v2429_v56, %v2425_v28  ;;  %v2431_v61 = vadd.f32 %v2429_v56, %v2426_v16 }
 0x33b   :  { %v2434_v31 = vmul.f32 0.5, %v2431_v61  ;;  %v2433_v25 = vmul.f32 0.5, %v2430_v6 }
 0x33d   :  { %3698 = vtanh.f32 %v2434_v31 }
 0x33e   :  { %3700 = vtanh.f32 %v2433_v25 }
 0x343   :  { %v3699_v32 = vpop.eup %3698 }
 0x344   :  { %v3701_v45 = vpop.eup %3700  ;;  %v2440_v50 = vmul.f32 0.5, %v3699_v32  ;;  %v5560_v32 = vstv %s5521_s9  ;;  %s3652_s9 = sld [smem:[#allocation8 + $0x17]] }
 0x345   :  { %v2439_v39 = vmul.f32 0.5, %v3701_v45 }
 0x346   :  { %v2443_v44 = vadd.f32 0.5, %v2440_v50 }
 0x347   :  { %v2442_v18 = vadd.f32 0.5, %v2439_v39 }
 0x348   :  { %2453 = vrot.lane.b32.xlu1 %v2443_v44, %s3811_s1 }
 0x349   :  { %2451 = vrot.lane.b32.xlu0 %v2442_v18, %s3811_s1  ;;  %s5762_s1 = sld [smem:[#allocation8 + $0x30]] }
 0x385   :  { %v5480_v1 = vpop.permute.xlu2 %2455 }
 0x386   :  { %v5483_v56 = vmul.f32 %v5480_v1, %v2447_v63  ;;  %v5532_v19 = vmul.f32 %v2602_v8, %v5480_v1  ;;  %v5565_v45 = vmul.f32 %v2777_v11, %v5480_v1  ;;  %v5568_v50 = vmul.f32 %v2953_v23, %v5480_v1 }
 0x387   :  { %v5571_v39 = vmul.f32 %v3135_v26, %v5480_v1  ;;  %v5580_v18 = vmul.f32 %v3278_v53, %v5480_v1  ;;  %v2782_v53 = vstv %s5594_s2  ;;  %s6019_s2 = sld [smem:[#allocation8 + $0x1c]] }
 0x388   :  { %v2495_v58 = vmul.f32 %v2492_v9, %v5483_v56  ;;  %v2516_v42 = vmul.f32 %v2513_v55, %v5483_v56  ;;  %v2583_v31 = vmul.f32 %v2580_v20, %v5483_v56  ;;  %v2562_v25 = vmul.f32 %v2559_v17, %v5483_v56 }
 0x389   :  { %v5575_v44 = vmul.f32 %v2641_v14, %v5532_v19 }
 0x38a   :  { %v2502_v40 = vrot.slane %v2495_v58, 1  ;;  %v2523_v22 = vrot.slane %v2516_v42, 1  ;;  %v2590_v1 = vrot.slane %v2583_v31, 2 }
 0x3ba   :  { %v5485_v15 = vpop.permute.xlu1 %2453 }
 0x3bb   :  { %v5490_v13 = vmul.f32 %v5485_v15, %v2446_v48  ;;  %v5492_v57 = vpop.permute.xlu0 %2451  ;;  %v5535_v7 = vmul.f32 %v2601_v4, %v5485_v15  ;;  %v2622_v48 = vstv %s5524_s15  ;;  %s5961_s15 = sld [smem:[#allocation8 + $0x1]] }
 0x3bc   :  { %v5496_v29 = vmul.f32 %v5492_v57, %v2445_v60  ;;  %v5545_v12 = vmul.f32 %v2600_v41, %v5492_v57  ;;  %v5651_v41 = vstv %s5552_s13  ;;  %s3654_s13 = sld [smem:[#allocation8 + $0x1b]] }
 0x3bd   :  { %v2494_v36 = vmul.f32 %v2492_v9, %v5490_v13  ;;  %v2515_v38 = vmul.f32 %v2513_v55, %v5490_v13  ;;  %v5515_v54 = vmul.f32 %v2559_v17, %v5490_v13  ;;  %v2540_v51 = vmul.f32 %v2538_v62, %v5490_v13 }
 0x3be   :  { %v2514_v30 = vmul.f32 %v2513_v55, %v5496_v29  ;;  %v2493_v35 = vmul.f32 %v2492_v9, %v5496_v29  ;;  %v2539_v34 = vmul.f32 %v2538_v62, %v5496_v29  ;;  %v2560_v10 = vmul.f32 %v2559_v17, %v5496_v29  ;;  %v2775_v62 = vld [vmem:[#allocation10 + $0x33] sm:$0xff]  ;;  %v2776_v17 = vld [vmem:[#allocation10 + $0x3b] sm:$0xff] }
 0x3bf   :  { %v2500_v33 = vrot.slane %v2494_v36, 1  ;;  %v2521_v49 = vrot.slane %v2515_v38, 1  ;;  %v2567_v43 = vrot.slane %v5515_v54, 1  ;;  %v2544_v24 = vrot.slane %v2540_v51, 6 }
 0x3c0   :  { %v2520_v47 = vrot.slane %v2514_v30, 1  ;;  %v2499_v37 = vrot.slane %v2493_v35, 1  ;;  %v2543_v2 = vrot.slane %v2539_v34, 6  ;;  %v2566_v27 = vrot.slane %v2560_v10, 1 }
 0x3c1   :  { %v2503_v5 = vsel %vm241_vm1, %v2500_v33, %v2502_v40  ;;  %v2524_v52 = vsel %vm241_vm1, %v2521_v49, %v2523_v22  ;;  %v2581_v16 = vmul.f32 %v2580_v20, %v5496_v29  ;;  %v2582_v6 = vmul.f32 %v2580_v20, %v5490_v13 }
 0x3c2   :  { %v2522_v0 = vsel %vm241_vm1, %v2520_v47, %v2521_v49  ;;  %v2501_v59 = vsel %vm241_vm1, %v2499_v37, %v2500_v33  ;;  %2506 = vrot.lane.b32.xlu1 %v2503_v5, %s3805_s8  ;;  %v2568_v28 = vsel %vm241_vm1, %v2566_v27, %v2567_v43  ;;  %v2545_v61 = vsel %vm392_vm2, %v2543_v2, %v2544_v24 }
 0x3c3   :  { %2525 = vrot.lane.b32.xlu2 %v2522_v0, %s3805_s8  ;;  %2504 = vrot.lane.b32.xlu0 %v2501_v59, %s3805_s8  ;;  %v5585_v63 = vmul.f32 %v2607_v21, %v5535_v7  ;;  %v5589_v9 = vstv %s5526_s10  ;;  %v2587_v60 = vrot.slane %v2581_v16, 2  ;;  %v2588_v58 = vrot.slane %v2582_v6, 2  ;;  %s3653_s10 = sld [smem:[#allocation8 + $0x1a]] }
 0x3c4   :  { %v5592_v55 = vmul.f32 %v2607_v21, %v5545_v12  ;;  %v5597_v36 = vstv %s5529_s11  ;;  %v2569_v30 = vrot.slane %v2562_v25, 1  ;;  %v5601_v38 = vmul.f32 %v5537_v46, %v5532_v19  ;;  %s3662_s11 = sld [smem:[#allocation8 + $0x23]] }
 0x3c5   :  { %v6243_v35 = vrot.slane %v5585_v63, 7  ;;  %v2651_v40 = vrot.slane %v5575_v44, 2  ;;  %v2625_v47 = vmul.f32 %v2622_v48, %v5532_v19  ;;  %v5611_v49 = vmul.f32 %v5589_v9, %v5565_v45 }
 0x3c6   :  { %v6247_v33 = vrot.slane %v5592_v55, 7  ;;  %v2624_v37 = vmul.f32 %v2622_v48, %v5535_v7  ;;  %v5617_v5 = vmul.f32 %v2622_v48, %v5545_v12  ;;  %v5621_v0 = vmul.f32 %v5597_v36, %v5571_v39 }
 0x3c7   :  { %v5624_v59 = vstv %s5542_s12  ;;  %v2589_v42 = vsel %vm443_vm3, %v2587_v60, %v2588_v58  ;;  %v2591_v34 = vsel %vm443_vm3, %v2588_v58, %v2590_v1  ;;  %v2570_v10 = vsel %vm241_vm1, %v2567_v43, %v2569_v30  ;;  %s2463_s12 = sld [smem:[#allocation8]] }
 0x3c8   :  { %v2630_v51 = vrot.slane %v2624_v37, 7  ;;  %v6246_v8 = vrot.slane %v5617_v5, 7  ;;  %v2632_v4 = vrot.slane %v2625_v47, 7  ;;  %v5648_v27 = vmul.f32 %v5624_v59, %v5571_v39 }
 0x3c9   :  { %v5657_v54 = vmul.f32 %v2775_v62, %v5492_v57  ;;  %v2828_v11 = vrot.slane %v5611_v49, 2  ;;  %v3178_v20 = vrot.slane %v5621_v0, 1  ;;  %v5667_v23 = vmul.f32 %v2776_v17, %v5485_v15  ;;  %v2952_v49 = vld [vmem:[#allocation10 + $0x53] sm:$0xff] }
 0x3ca   :  { %2529 = vrot.lane.b32.xlu1 %v2523_v22, %s3805_s8  ;;  %v2643_v22 = vmul.f32 %v2641_v14, %v5535_v7  ;;  %v5662_v43 = vsel %vm569_vm4, %v6246_v8, %v2630_v51  ;;  %v2662_v21 = vstv %s5582_s18  ;;  %v5672_v6 = vsel %vm569_vm4, %v2630_v51, %v2632_v4  ;;  %s6017_s18 = sld [smem:[#allocation8 + $0x2f]] }
 0x3cb   :  { %2546 = vrot.lane.b32.xlu2 %v2543_v2, %s3806_s16  ;;  %2527 = vrot.lane.b32.xlu0 %v2524_v52, %s3805_s8  ;;  %v5636_v2 = vsel %vm569_vm4, %v6247_v33, %v6243_v35  ;;  %v2642_v52 = vmul.f32 %v2641_v14, %v5545_v12  ;;  %v3134_v14 = vld [vmem:[#allocation10 + $0x6b] sm:$0xff]  ;;  %v3266_v25 = vrot.slane %v5648_v27, 2  ;;  %v5684_v44 = vstv %s5577_s17  ;;  %s3674_s17 = sld [smem:[#allocation8 + $0x33]] }
 0x3cc   :  { %v2649_v26 = vrot.slane %v2643_v22, 2  ;;  %v5687_v48 = vstv %s5604_s19  ;;  %v5690_v60 = vstv %s5613_s20  ;;  %v5693_v58 = vmul.f32 %v3134_v14, %v5485_v15  ;;  %v3276_v22 = vld [vmem:[#allocation10 + $0x7b] sm:$0xff]  ;;  %s3659_s19 = sld [smem:[#allocation8 + $0x22]] }
 0x3cd   :  { %v2648_v16 = vrot.slane %v2642_v52, 2  ;;  %v2663_v1 = vmul.f32 %v2662_v21, %v5545_v12  ;;  %v5697_v30 = vmul.f32 %v2782_v53, %v5657_v54  ;;  %v5700_v47 = vstv %s5626_s25  ;;  %s3660_s20 = sld [smem:[#allocation8 + $0x1d]] }
 0x3ce   :  { %v2652_v0 = vsel %vm443_vm3, %v2649_v26, %v2651_v40  ;;  %v5707_v62 = vmul.f32 %v2782_v53, %v5667_v23  ;;  %v5721_v4 = vmul.f32 %v5687_v48, %v5568_v50  ;;  %v5725_v27 = vmul.f32 %v5684_v44, %v5568_v50  ;;  %v2951_v53 = vld [vmem:[#allocation10 + $0x4b] sm:$0xff]  ;;  %s3661_s25 = sld [smem:[#allocation8 + $0x20]] }
 0x3cf   :  { %v2650_v17 = vsel %vm443_vm3, %v2648_v16, %v2649_v26  ;;  %v5729_v14 = vmul.f32 %v5690_v60, %v5568_v50  ;;  %v5732_v26 = vmul.f32 %v2952_v49, %v5485_v15  ;;  %v3170_v16 = vmul.f32 %v5597_v36, %v5693_v58 }
 0x3d0   :  { %v6244_v51 = vrot.slane %v5707_v62, 6 }
 0x3d1   :  { %v3176_v35 = vrot.slane %v3170_v16, 1  ;;  %v2664_v16 = vmul.f32 %v2662_v21, %v5535_v7 }
 0x3d2   :  { %2550 = vrot.lane.b32.xlu1 %v2544_v24, %s3806_s16  ;;  %v5654_v24 = vstv %s5562_s14  ;;  %s3670_s14 = sld [smem:[#allocation8 + $0x29]] }
 0x3d3   :  { %2571 = vrot.lane.b32.xlu2 %v2568_v28, %s3805_s8  ;;  %2548 = vrot.lane.b32.xlu0 %v2545_v61, %s3806_s16  ;;  %v3133_v28 = vld [vmem:[#allocation10 + $0x63] sm:$0xff]  ;;  %v5676_v61 = vmul.f32 %v5651_v41, %v5580_v18  ;;  %v5680_v31 = vmul.f32 %v5654_v24, %v5565_v45 }
 0x3d4   :  { %v5703_v37 = vmul.f32 %v3133_v28, %v5492_v57 }
 0x3d5   :  { %v6248_v52 = vrot.slane %v5676_v61, 1  ;;  %v2891_v40 = vrot.slane %v5680_v31, 2  ;;  %v5738_v31 = vmul.f32 %v5700_v47, %v5580_v18 }
 0x3da   :  { %2592 = vrot.lane.b32.xlu1 %v2589_v42, %s3806_s16  ;;  %v2820_v42 = vmul.f32 %v5589_v9, %v5667_v23 }
 0x3db   :  { %2594 = vrot.lane.b32.xlu2 %v2591_v34, %s3806_s16  ;;  %2573 = vrot.lane.b32.xlu0 %v2570_v10, %s3805_s8  ;;  %v3277_v34 = vld [vmem:[#allocation10 + $0x83] sm:$0xff]  ;;  %v6245_v10 = vrot.slane %v5697_v30, 6 }
 0x3dc   :  { %v2826_v28 = vrot.slane %v2820_v42, 2  ;;  %v3169_v42 = vmul.f32 %v5597_v36, %v5703_v37  ;;  %v2678_v36 = vmul.f32 %v5537_v46, %v5535_v7 }
 0x3dd   :  { %v5751_v49 = vsel %vm392_vm2, %v6245_v10, %v6244_v51  ;;  %v2677_v51 = vmul.f32 %v5537_v46, %v5545_v12  ;;  %v5773_v10 = vsel %vm241_vm1, %v3176_v35, %v3178_v20 }
 0x3e2   :  { %2655 = vrot.lane.b32.xlu1 %v2652_v0, %s3812_s21  ;;  %v5744_v0 = vmul.f32 %v3276_v22, %v5492_v57  ;;  %v5765_v22 = vmul.f32 %v2951_v53, %v5492_v57  ;;  %v2819_v57 = vmul.f32 %v5589_v9, %v5657_v54  ;;  %v2982_v9 = vrot.slane %v5721_v4, 1 }
 0x3e3   :  { %2667 = vrot.lane.b32.xlu2 %v2663_v1, %s3805_s8  ;;  %2653 = vrot.lane.b32.xlu0 %v2650_v17, %s3812_s21  ;;  %v5741_v1 = vmul.f32 %v3277_v34, %v5485_v15  ;;  %v5756_v17 = vsel %vm443_vm3, %v2826_v28, %v2828_v11  ;;  %v3257_v15 = vmul.f32 %v5624_v59, %v5703_v37  ;;  %v3175_v11 = vrot.slane %v3169_v42, 1 }
 0x3e4   :  { %v3258_v34 = vmul.f32 %v5624_v59, %v5693_v58  ;;  %v3428_v53 = vmul.f32 %v5651_v41, %v5744_v0  ;;  %v2825_v42 = vrot.slane %v2819_v57, 2  ;;  %v2697_v57 = vmul.f32 %v5539_v3, %v5545_v12 }
 0x3e5   :  { %v3263_v8 = vrot.slane %v3257_v15, 2  ;;  %v5776_v59 = vsel %vm241_vm1, %v3175_v11, %v3176_v35  ;;  %v3429_v46 = vmul.f32 %v5651_v41, %v5741_v1  ;;  %v2883_v35 = vmul.f32 %v5654_v24, %v5667_v23 }
 0x3e6   :  { %v3264_v33 = vrot.slane %v3258_v34, 2  ;;  %v3434_v15 = vrot.slane %v3428_v53, 1  ;;  %v3416_v34 = vrot.slane %v5738_v31, 1  ;;  %v5805_v4 = vsel %vm443_vm3, %v2825_v42, %v2826_v28 }
 0x3e7   :  { %v3435_v41 = vrot.slane %v3429_v46, 1  ;;  %v3031_v11 = vmul.f32 %v5684_v44, %v5732_v26  ;;  %v2698_v53 = vmul.f32 %v5539_v3, %v5535_v7  ;;  %v3408_v42 = vmul.f32 %v5700_v47, %v5741_v1 }
 0x3e8   :  { %v5787_v20 = vsel %vm443_vm3, %v3263_v8, %v3264_v33  ;;  %v5790_v21 = vsel %vm443_vm3, %v3264_v33, %v3266_v25  ;;  %v2889_v8 = vrot.slane %v2883_v35, 2  ;;  %v2882_v33 = vmul.f32 %v5654_v24, %v5657_v54 }
 0x3e9   :  { %v3030_v25 = vmul.f32 %v5684_v44, %v5765_v22  ;;  %v3037_v46 = vrot.slane %v3031_v11, 1  ;;  %v2974_v44 = vmul.f32 %v5687_v48, %v5732_v26  ;;  %v3414_v11 = vrot.slane %v3408_v42, 1 }
 0x3ea   :  { %2683 = vrot.lane.b32.xlu1 %v2677_v51, %s3805_s8  ;;  %v3039_v51 = vrot.slane %v5725_v27, 1  ;;  %v5813_v27 = vsel %vm241_vm1, %v3435_v41, %v6248_v52  ;;  %v5822_v24 = vsel %vm443_vm3, %v2889_v8, %v2891_v40  ;;  %v2888_v28 = vrot.slane %v2882_v33, 2 }
 0x3eb   :  { %2685 = vrot.lane.b32.xlu2 %v2678_v36, %s3805_s8  ;;  %2669 = vrot.lane.b32.xlu0 %v2664_v16, %s3805_s8  ;;  %v5808_v36 = vsel %vm241_vm1, %v3434_v15, %v3435_v41  ;;  %v3036_v31 = vrot.slane %v3030_v25, 1  ;;  %v3298_v16 = vstv %s5762_s1  ;;  %v3407_v40 = vmul.f32 %v5700_v47, %v5744_v0  ;;  %s3669_s1 = sld [smem:[#allocation8 + $0x26]] }
 0x3ec   :  { %v5832_v35 = vsel %vm443_vm3, %v2888_v28, %v2889_v8  ;;  %v2973_v15 = vmul.f32 %v5687_v48, %v5765_v22  ;;  %v2980_v33 = vrot.slane %v2974_v44, 1  ;;  %v5844_v25 = vsel %vm241_vm1, %v3037_v46, %v3039_v51 }
 0x3ed   :  { %v5841_v41 = vsel %vm241_vm1, %v3036_v31, %v3037_v46  ;;  %v2991_v8 = vmul.f32 %v5690_v60, %v5732_v26  ;;  %v3413_v47 = vrot.slane %v3407_v40, 1  ;;  %v2990_v28 = vmul.f32 %v5690_v60, %v5765_v22 }
 0x3ee   :  { %v2979_v48 = vrot.slane %v2973_v15, 1  ;;  %v5855_v51 = vsel %vm241_vm1, %v2980_v33, %v2982_v9  ;;  %v6249_v31 = vrot.slane %v5729_v14, 1  ;;  %v5866_v40 = vsel %vm241_vm1, %v3414_v11, %v3416_v34 }
 0x3ef   :  { %v2997_v46 = vrot.slane %v2991_v8, 1  ;;  %6616 = vst [vmem:[#allocation22_spill] sm:$0xff] %v5866_v40  ;;  %v2996_v60 = vrot.slane %v2990_v28, 1  ;;  %v2716_v42 = vstv %s5797_s22  ;;  %v3283_v9 = vstv %s5817_s23  ;;  %s3676_s22 = sld [smem:[#allocation8 + $0x31]] }
 0x3f0   :  { %v5863_v44 = vsel %vm241_vm1, %v2979_v48, %v2980_v33  ;;  %v5876_v15 = vmul.f32 %v3298_v16, %v5744_v0  ;;  %v2751_v8 = vstv %s5819_s26  ;;  %v5883_v33 = vmul.f32 %v3283_v9, %v5744_v0  ;;  %s3677_s23 = sld [smem:[#allocation8 + $0x34]] }
 0x3f1   :  { %v3300_v34 = vmul.f32 %v3298_v16, %v5741_v1  ;;  %v5890_v28 = vmul.f32 %v3283_v9, %v5741_v1  ;;  %v2718_v40 = vmul.f32 %v2716_v42, %v5535_v7  ;;  %s3675_s26 = sld [smem:[#allocation8 + $0x2e]] }
 0x3f2   :  { %2703 = vrot.lane.b32.xlu1 %v2697_v57, %s3805_s8  ;;  %v3301_v57 = vmul.f32 %v3298_v16, %v5580_v18  ;;  %6617 = vst [vmem:[#allocation23_spill] sm:$0xff] %v5876_v15  ;;  %v2732_v16 = vmul.f32 %v5560_v32, %v5535_v7 }
 0x3f3   :  { %2705 = vrot.lane.b32.xlu2 %v2698_v53, %s3805_s8  ;;  %2687 = vrot.lane.b32.xlu0 %v5601_v38, %s3805_s8  ;;  %v5860_v53 = vsel %vm241_vm1, %v3413_v47, %v3414_v11  ;;  %v5872_v38 = vsel %vm241_vm1, %v2997_v46, %v6249_v31  ;;  %v5880_v47 = vsel %vm241_vm1, %v2996_v60, %v2997_v46  ;;  %v6251_v46 = vrot.slane %v5883_v33, 7 }
 0x3f4   :  { %6615 = vst [vmem:[#allocation41_spill] sm:$0xff] %v5860_v53  ;;  %v2699_v11 = vmul.f32 %v5539_v3, %v5532_v19  ;;  %v3308_v52 = vrot.slane %v3301_v57, 7  ;;  %v2717_v31 = vmul.f32 %v2716_v42, %v5545_v12  ;;  %v3306_v60 = vrot.slane %v3300_v34, 7 }
 0x3f5   :  { %6618 = vst [vmem:[#allocation24_spill] sm:$0xff] %v5883_v33  ;;  %v2752_v53 = vmul.f32 %v2751_v8, %v5545_v12  ;;  %v2753_v3 = vmul.f32 %v2751_v8, %v5535_v7  ;;  %v6252_v48 = vrot.slane %v5890_v28, 7  ;;  %v2731_v57 = vmul.f32 %v5560_v32, %v5545_v12 }
 0x3f6   :  { %v6619_v42 = vrot.slane %v5876_v15, 7  ;;  %v5910_v34 = vsel %vm569_vm4, %v3306_v60, %v3308_v52  ;;  %v2733_v7 = vmul.f32 %v5560_v32, %v5532_v19  ;;  %v2738_v12 = vrot.slane %v2732_v16, 1 }
 0x3f7   :  { %6621 = vst [vmem:[#allocation26_spill] sm:$0xff] %v5910_v34  ;;  %v2759_v15 = vrot.slane %v2753_v3, 1  ;;  %v2797_v52 = vstv %s3646_s27  ;;  %s3666_s27 = sld [smem:[#allocation8 + $0x25]] }
 0x3f8   :  { %v5907_v9 = vsel %vm569_vm4, %v6619_v42, %v3306_v60  ;;  %v2737_v42 = vrot.slane %v2731_v57, 1  ;;  %v2798_v32 = vmul.f32 %v2797_v52, %v5657_v54  ;;  %v2799_v34 = vmul.f32 %v2797_v52, %v5667_v23 }
 0x3f9   :  { %6620 = vst [vmem:[#allocation25_spill] sm:$0xff] %v5907_v9  ;;  %v2740_v9 = vrot.slane %v2733_v7, 1  ;;  %v2835_v7 = vstv %s3648_s28  ;;  %s3664_s28 = sld [smem:[#allocation8 + $0x27]] }
 0x3fa   :  { %2721 = vrot.lane.b32.xlu1 %v2717_v31, %s3805_s8  ;;  %v5920_v31 = vsel %vm569_vm4, %v6251_v46, %v6252_v48  ;;  %v2739_v16 = vsel %vm241_vm1, %v2737_v42, %v2738_v12  ;;  %v2804_v3 = vrot.slane %v2798_v32, 1  ;;  %v2805_v57 = vrot.slane %v2799_v34, 1 }
 0x3fb   :  { %2723 = vrot.lane.b32.xlu2 %v2718_v40, %s3805_s8  ;;  %2707 = vrot.lane.b32.xlu0 %v2699_v11, %s3805_s8  ;;  %6622 = vst [vmem:[#allocation27_spill] sm:$0xff] %v5920_v31  ;;  %v2758_v40 = vrot.slane %v2752_v53, 1  ;;  %v2741_v60 = vsel %vm241_vm1, %v2738_v12, %v2740_v9  ;;  %v2754_v53 = vmul.f32 %v2751_v8, %v5532_v19  ;;  %v3317_v31 = vstv %s3674_s17 }
 0x3fc   :  { %v2836_v46 = vmul.f32 %v2835_v7, %v5657_v54  ;;  %v2837_v48 = vmul.f32 %v2835_v7, %v5667_v23  ;;  %v2800_v19 = vmul.f32 %v2797_v52, %v5565_v45 }
 0x3fd   :  { %v2760_v11 = vsel %vm241_vm1, %v2758_v40, %v2759_v15  ;;  %v2761_v9 = vrot.slane %v2754_v53, 1  ;;  %v2806_v40 = vsel %vm241_vm1, %v2804_v3, %v2805_v57  ;;  %v5949_v53 = vstv %s3628_s30  ;;  %s3663_s30 = sld [smem:[#allocation8 + $0x24]] }
 0x3fe   :  { %v2840_v8 = vrot.slane %v2836_v46, 7  ;;  %v2841_v34 = vrot.slane %v2837_v48, 7  ;;  %v2807_v42 = vrot.slane %v2800_v19, 1  ;;  %v2471_v3 = vmul.f32 %v5949_v53, %v5496_v29 }
 0x3ff   :  { %v2762_v12 = vsel %vm241_vm1, %v2759_v15, %v2761_v9 }
 0x400   :  { %v2808_v15 = vsel %vm241_vm1, %v2805_v57, %v2807_v42 }
 0x402   :  { %2744 = vrot.lane.b32.xlu1 %v2741_v60, %s3806_s16  ;;  %v2856_v60 = vstv %s3649_s29  ;;  %s3665_s29 = sld [smem:[#allocation8 + $0x2a]] }
 0x403   :  { %2763 = vrot.lane.b32.xlu2 %v2760_v11, %s3806_s16  ;;  %2742 = vrot.lane.b32.xlu0 %v2739_v16, %s3806_s16  ;;  %v2842_v11 = vsel %vm569_vm4, %v2840_v8, %v2841_v34  ;;  %v2857_v32 = vmul.f32 %v2856_v60, %v5657_v54  ;;  %v2858_v16 = vmul.f32 %v2856_v60, %v5667_v23 }
 0x404   :  { %v2859_v7 = vmul.f32 %v2856_v60, %v5565_v45  ;;  %v5966_v60 = vstv %s3629_s7 }
 0x405   :  { %v2863_v52 = vrot.slane %v2857_v32, 7  ;;  %v2864_v46 = vrot.slane %v2858_v16, 7 }
 0x407   :  { %v2865_v48 = vsel %vm569_vm4, %v2863_v52, %v2864_v46 }
 0x40a   :  { %2767 = vrot.lane.b32.xlu1 %v2761_v9, %s3806_s16 }
 0x40b   :  { %2809 = vrot.lane.b32.xlu2 %v2806_v40, %s3812_s21  ;;  %2765 = vrot.lane.b32.xlu0 %v2762_v12, %s3806_s16  ;;  %v2898_v40 = vstv %s3651_s4  ;;  %v6623_v12 = vrot.slane %v5592_v55, 7  ;;  %v2479_v55 = vmul.f32 %v5966_v60, %v5496_v29 }
 0x40c   :  { %v2900_v42 = vmul.f32 %v2898_v40, %v5667_v23 }
 0x412   :  { %2843 = vrot.lane.b32.xlu1 %v2840_v8, %s3805_s8  ;;  %v2899_v8 = vmul.f32 %v2898_v40, %v5657_v54 }
 0x413   :  { %2845 = vrot.lane.b32.xlu2 %v2842_v11, %s3805_s8  ;;  %2811 = vrot.lane.b32.xlu0 %v2808_v15, %s3812_s21  ;;  %v2866_v11 = vrot.slane %v2859_v7, 7  ;;  %v2912_v15 = vstv %s3652_s9 }
 0x414   :  { %v2913_v7 = vmul.f32 %v2912_v15, %v5657_v54 }
 0x41a   :  { %2868 = vrot.lane.b32.xlu1 %v2863_v52, %s3805_s8  ;;  %v6624_v52 = vrot.slane %v5617_v5, 7 }
 0x41b   :  { %2870 = vrot.lane.b32.xlu2 %v2865_v48, %s3805_s8  ;;  %2847 = vrot.lane.b32.xlu0 %v2841_v34, %s3805_s8  ;;  %v2867_v34 = vsel %vm569_vm4, %v2864_v46, %v2866_v11  ;;  %v2915_v46 = vmul.f32 %v2912_v15, %v5565_v45  ;;  %v2464_v11 = vstv %s2463_s12 }
 0x41d   :  { %v2526_v57 = vpop.permute.xlu2 %2525 }
 0x41e   :  { %v2534_v9 = vadd.f32 %v2526_v57, %v2471_v3  ;;  %v2914_v3 = vmul.f32 %v2912_v15, %v5667_v23  ;;  %v6253_v57 = vstv %s5961_s15  ;;  %v2466_v15 = vmul.f32 %v2464_v11, %v5490_v13 }
 0x420   :  { %v5957_v19 = vadd.f32 %v6623_v12, %v2534_v9  ;;  %v2487_v9 = vmul.f32 %v6253_v57, %v5496_v29  ;;  %v2932_v12 = vstv %s3653_s10 }
 0x422   :  { %2903 = vrot.lane.b32.xlu1 %v2899_v8, %s3806_s16  ;;  %v2934_v8 = vmul.f32 %v2932_v12, %v5667_v23 }
 0x423   :  { %2905 = vrot.lane.b32.xlu2 %v2900_v42, %s3806_s16  ;;  %2872 = vrot.lane.b32.xlu0 %v2867_v34, %s3805_s8  ;;  %v2935_v42 = vmul.f32 %v2932_v12, %v5565_v45  ;;  %v3113_v34 = vstv %s3662_s11  ;;  %v2465_v45 = vmul.f32 %v2464_v11, %v5496_v29  ;;  %v2473_v11 = vmul.f32 %v5949_v53, %v5483_v56 }
 0x425   :  { %v2547_v32 = vpop.permute.xlu2 %2546 }
 0x426   :  { %v2555_v16 = vadd.f32 %v2547_v32, %v2479_v55  ;;  %v2933_v55 = vmul.f32 %v2932_v12, %v5657_v54  ;;  %v3114_v32 = vmul.f32 %v3113_v34, %v5765_v22 }
 0x428   :  { %v5973_v48 = vadd.f32 %v6624_v52, %v2555_v16  ;;  %v3115_v16 = vmul.f32 %v3113_v34, %v5732_v26  ;;  %v3120_v54 = vrot.slane %v3114_v32, 2 }
 0x42a   :  { %2921 = vrot.lane.b32.xlu1 %v2914_v3, %s3806_s16 }
 0x42b   :  { %2923 = vrot.lane.b32.xlu2 %v2915_v46, %s3806_s16  ;;  %2919 = vrot.lane.b32.xlu0 %v2913_v7, %s3806_s16  ;;  %v2958_v7 = vstv %s3654_s13 }
 0x42c   :  { %v2959_v57 = vmul.f32 %v2958_v7, %v5765_v22 }
 0x42d   :  { %v2572_v5 = vpop.permute.xlu2 %2571 }
 0x42e   :  { %v5985_v40 = vadd.f32 %v2572_v5, %v2487_v9  ;;  %v3121_v9 = vrot.slane %v3115_v16, 2 }
 0x432   :  { %2941 = vrot.lane.b32.xlu1 %v2934_v8, %s3806_s16  ;;  %v2960_v8 = vmul.f32 %v2958_v7, %v5732_v26 }
 0x433   :  { %2943 = vrot.lane.b32.xlu2 %v2935_v42, %s3806_s16  ;;  %2939 = vrot.lane.b32.xlu0 %v2933_v55, %s3806_s16  ;;  %v3235_v42 = vstv %s3670_s14  ;;  %v3122_v55 = vsel %vm443_vm3, %v3120_v54, %v3121_v9 }
 0x434   :  { %v2507_v23 = vpop.permute.xlu1 %2506  ;;  %v3236_v33 = vmul.f32 %v3235_v42, %v5703_v37  ;;  %v3237_v29 = vmul.f32 %v3235_v42, %v5693_v58  ;;  %v3238_v32 = vmul.f32 %v3235_v42, %v5571_v39 }
 0x435   :  { %v2595_v52 = vpop.permute.xlu2 %2594  ;;  %v2511_v3 = vadd.f32 %v2507_v23, %v2466_v15  ;;  %v2505_v46 = vpop.permute.xlu0 %2504  ;;  %v2472_v15 = vmul.f32 %v5949_v53, %v5490_v13 }
 0x436   :  { %v5997_v5 = vadd.f32 %v2505_v46, %v2465_v45  ;;  %v3242_v46 = vrot.slane %v3236_v33, 1  ;;  %v3243_v7 = vrot.slane %v3237_v29, 1  ;;  %v3245_v54 = vrot.slane %v3238_v32, 1 }
 0x437   :  { %v5999_v12 = vadd.f32 %v2595_v52, %v2511_v3  ;;  %v3116_v52 = vmul.f32 %v3113_v34, %v5568_v50  ;;  %v3319_v33 = vmul.f32 %v3317_v31, %v5741_v1  ;;  %v3318_v29 = vmul.f32 %v3317_v31, %v5744_v0 }
 0x438   :  { %v3244_v34 = vsel %vm241_vm1, %v3242_v46, %v3243_v7  ;;  %v3320_v32 = vmul.f32 %v3317_v31, %v5580_v18 }
 0x43a   :  { %2965 = vrot.lane.b32.xlu1 %v2960_v8, %s3812_s21  ;;  %v6625_v8 = vrot.slane %v5585_v63, 7 }
 0x43b   :  { %3125 = vrot.lane.b32.xlu2 %v3122_v55, %s3805_s8  ;;  %2963 = vrot.lane.b32.xlu0 %v2959_v57, %s3812_s21  ;;  %v3123_v55 = vrot.slane %v3116_v52, 2 }
 0x43c   :  { %v2530_v16 = vpop.permute.xlu1 %2529 }
 0x43d   :  { %v6014_v23 = vpop.permute.xlu2 %2667  ;;  %v2536_v45 = vadd.f32 %v2530_v16, %v2473_v11  ;;  %v2528_v3 = vpop.permute.xlu0 %2527  ;;  %v3246_v11 = vsel %vm241_vm1, %v3243_v7, %v3245_v54  ;;  %v3124_v63 = vsel %vm443_vm3, %v3121_v9, %v3123_v55  ;;  %v3325_v7 = vrot.slane %v3319_v33, 2 }
 0x43e   :  { %v2535_v57 = vadd.f32 %v2528_v3, %v2472_v15  ;;  %v2480_v15 = vmul.f32 %v5966_v60, %v5490_v13  ;;  %v3392_v9 = vstv %s6017_s18  ;;  %v3324_v54 = vrot.slane %v3318_v29, 2 }
 0x43f   :  { %v6023_v42 = vadd.f32 %v6625_v8, %v2536_v45  ;;  %v3008_v8 = vstv %s6019_s2  ;;  %v3327_v55 = vrot.slane %v3320_v32, 2 }
 0x440   :  { %v2619_v53 = vadd.f32 %v5636_v2, %v2535_v57  ;;  %v2481_v2 = vmul.f32 %v5966_v60, %v5483_v56  ;;  %v3393_v56 = vmul.f32 %v3392_v9, %v5744_v0  ;;  %v3326_v33 = vsel %vm443_vm3, %v3324_v54, %v3325_v7 }
 0x441   :  { %v3328_v60 = vsel %vm443_vm3, %v3325_v7, %v3327_v55  ;;  %v3394_v7 = vmul.f32 %v3392_v9, %v5741_v1 }
 0x442   :  { %3247 = vrot.lane.b32.xlu1 %v3244_v34, %s3805_s8 }
 0x443   :  { %3249 = vrot.lane.b32.xlu2 %v3246_v11, %s3805_s8  ;;  %3127 = vrot.lane.b32.xlu0 %v3124_v63, %s3805_s8  ;;  %v3010_v11 = vmul.f32 %v3008_v8, %v5732_v26 }
 0x444   :  { %v2551_v16 = vpop.permute.xlu1 %2550 }
 0x445   :  { %v2686_v52 = vpop.permute.xlu2 %2685  ;;  %v2557_v45 = vadd.f32 %v2551_v16, %v2481_v2  ;;  %v2549_v3 = vpop.permute.xlu0 %2548 }
 0x446   :  { %v6039_v46 = vadd.f32 %v2686_v52, %v2619_v53  ;;  %v2556_v57 = vadd.f32 %v2549_v3, %v2480_v15  ;;  %v3009_v53 = vmul.f32 %v3008_v8, %v5765_v22  ;;  %v3014_v52 = vrot.slane %v3010_v11, 6 }
 0x447   :  { %v6046_v34 = vadd.f32 %v5672_v6, %v2557_v45  ;;  %v3046_v3 = vstv %s3659_s19 }
 0x448   :  { %v2638_v31 = vadd.f32 %v5662_v43, %v2556_v57  ;;  %v6626_v43 = vstv %s5961_s15  ;;  %v3013_v15 = vrot.slane %v3009_v53, 6  ;;  %v3047_v54 = vmul.f32 %v3046_v3, %v5765_v22  ;;  %s3516_s15 = sshll.u32 %s6230_s5, 4  ;;  %s3517_s15 = int_to_ptr.hbm [resolvable:$true] %s3516_s15 }
 0x449   :  { %v2488_v29 = vmul.f32 %v6626_v43, %v5490_v13  ;;  %v3048_v8 = vmul.f32 %v3046_v3, %v5732_v26  ;;  %v3049_v13 = vmul.f32 %v3046_v3, %v5568_v50 }
 0x44a   :  { %3331 = vrot.lane.b32.xlu1 %v3328_v60, %s3812_s21  ;;  %v3015_v57 = vsel %vm392_vm2, %v3013_v15, %v3014_v52  ;;  %v3053_v53 = vrot.slane %v3047_v54, 2  ;;  %v3088_v54 = vstv %s3661_s25 }
 0x44b   :  { %3397 = vrot.lane.b32.xlu2 %v3393_v56, %s3805_s8  ;;  %3329 = vrot.lane.b32.xlu0 %v3326_v33, %s3812_s21  ;;  %v3054_v11 = vrot.slane %v3048_v8, 2  ;;  %s3668_s21 = sld [smem:[#allocation8 + $0x2b]] }
 0x44c   :  { %v2593_v63 = vpop.permute.xlu1 %2592 }
 0x44d   :  { %v2706_v6 = vpop.permute.xlu2 %2705  ;;  %v2598_v2 = vadd.f32 %v2593_v63, %v5997_v5  ;;  %v2574_v32 = vpop.permute.xlu0 %2573  ;;  %v3067_v63 = vstv %s3660_s20 }
 0x44e   :  { %v2713_v16 = vadd.f32 %v2706_v6, %v2638_v31  ;;  %v2578_v45 = vadd.f32 %v2574_v32, %v2488_v29  ;;  %v3056_v29 = vrot.slane %v3049_v13, 2  ;;  %v3089_v13 = vmul.f32 %v3088_v54, %v5765_v22 }
 0x44f   :  { %v6071_v55 = vadd.f32 %v6014_v23, %v2598_v2  ;;  %v3068_v23 = vmul.f32 %v3067_v63, %v5765_v22  ;;  %v3069_v2 = vmul.f32 %v3067_v63, %v5732_v26 }
 0x450   :  { %v6068_v5 = vadd.f32 %v5751_v49, %v2713_v16  ;;  %v3055_v49 = vsel %vm443_vm3, %v3053_v53, %v3054_v11  ;;  %v3057_v6 = vsel %vm443_vm3, %v3054_v11, %v3056_v29 }
 0x451   :  { %v3073_v3 = vrot.slane %v3069_v2, 7 }
 0x452   :  { %3016 = vrot.lane.b32.xlu1 %v3013_v15, %s3805_s8 }
 0x453   :  { %3018 = vrot.lane.b32.xlu2 %v3015_v57, %s3805_s8  ;;  %3399 = vrot.lane.b32.xlu0 %v3394_v7, %s3805_s8 }
 0x454   :  { %v2656_v56 = vpop.permute.xlu1 %2655 }
 0x455   :  { %v2724_v9 = vpop.permute.xlu2 %2723  ;;  %v2660_v31 = vadd.f32 %v2656_v56, %v2578_v45  ;;  %v2654_v60 = vpop.permute.xlu0 %2653  ;;  %v3072_v45 = vrot.slane %v3068_v23, 7  ;;  %v3090_v56 = vmul.f32 %v3088_v54, %v5732_v26  ;;  %v3189_v26 = vstv %s3668_s21 }
 0x456   :  { %v6074_v33 = vadd.f32 %v2654_v60, %v5985_v40  ;;  %v3095_v60 = vrot.slane %v3089_v13, 7  ;;  %v6627_v23 = vrot.slane %v5697_v30, 6 }
 0x457   :  { %v6076_v43 = vadd.f32 %v2724_v9, %v2660_v31  ;;  %v3074_v8 = vsel %vm569_vm4, %v3072_v45, %v3073_v3  ;;  %v3096_v53 = vrot.slane %v3090_v56, 7 }
 0x459   :  { %v3097_v63 = vsel %vm569_vm4, %v3095_v60, %v3096_v53 }
 0x45a   :  { %3058 = vrot.lane.b32.xlu1 %v3055_v49, %s3805_s8  ;;  %v3191_v49 = vmul.f32 %v3189_v26, %v5693_v58 }
 0x45b   :  { %3060 = vrot.lane.b32.xlu2 %v3057_v6, %s3805_s8  ;;  %3020 = vrot.lane.b32.xlu0 %v3014_v52, %s3805_s8 }
 0x45c   :  { %v2684_v40 = vpop.permute.xlu1 %2683 }
 0x45d   :  { %v2764_v32 = vpop.permute.xlu2 %2763  ;;  %v2692_v16 = vadd.f32 %v2684_v40, %v5957_v19  ;;  %v2670_v15 = vpop.permute.xlu0 %2669  ;;  %v3091_v19 = vmul.f32 %v3088_v54, %v5568_v50  ;;  %v3190_v50 = vmul.f32 %v3189_v26, %v5703_v37 }
 0x45e   :  { %v2674_v57 = vadd.f32 %v2670_v15, %v5999_v12 }
 0x45f   :  { %v6087_v7 = vadd.f32 %v2764_v32, %v2692_v16  ;;  %v3098_v11 = vrot.slane %v3091_v19, 7  ;;  %v3197_v32 = vrot.slane %v3191_v49, 1  ;;  %v3214_v16 = vstv %s3669_s1 }
 0x460   :  { %v3215_v54 = vmul.f32 %v3214_v16, %v5703_v37  ;;  %v3216_v13 = vmul.f32 %v3214_v16, %v5693_v58 }
 0x461   :  { %v3099_v29 = vsel %vm569_vm4, %v3096_v53, %v3098_v11  ;;  %v6628_v53 = vrot.slane %v5707_v62, 6 }
 0x462   :  { %3077 = vrot.lane.b32.xlu1 %v3074_v8, %s3806_s16 }
 0x463   :  { %3079 = vrot.lane.b32.xlu2 %v3073_v3, %s3806_s16  ;;  %3075 = vrot.lane.b32.xlu0 %v3072_v45, %s3806_s16  ;;  %v3196_v45 = vrot.slane %v3190_v50, 1 }
 0x464   :  { %v2704_v52 = vpop.permute.xlu1 %2703 }
 0x465   :  { %v2810_v12 = vpop.permute.xlu2 %2809  ;;  %v2712_v9 = vadd.f32 %v2704_v52, %v5973_v48  ;;  %v2688_v31 = vpop.permute.xlu0 %2687  ;;  %v3192_v48 = vmul.f32 %v3189_v26, %v5571_v39  ;;  %v3198_v30 = vsel %vm241_vm1, %v3196_v45, %v3197_v32  ;;  %v3219_v52 = vrot.slane %v3215_v54, 6 }
 0x466   :  { %v2694_v22 = vadd.f32 %v2688_v31, %v6023_v42  ;;  %v3372_v54 = vstv %s3677_s23 }
 0x467   :  { %v2793_v2 = vadd.f32 %v6627_v23, %v2712_v9  ;;  %v3199_v3 = vrot.slane %v3192_v48, 1 }
 0x469   :  { %v3200_v8 = vsel %vm241_vm1, %v3197_v32, %v3199_v3 }
 0x46a   :  { %3102 = vrot.lane.b32.xlu1 %v3097_v63, %s3806_s16 }
 0x46b   :  { %3104 = vrot.lane.b32.xlu2 %v3099_v29, %s3806_s16  ;;  %3100 = vrot.lane.b32.xlu0 %v3095_v60, %s3806_s16  ;;  %v3220_v60 = vrot.slane %v3216_v13, 6  ;;  %v3374_v13 = vmul.f32 %v3372_v54, %v5741_v1 }
 0x46c   :  { %v2722_v6 = vpop.permute.xlu1 %2721 }
 0x46d   :  { %v2846_v42 = vpop.permute.xlu2 %2845  ;;  %v2708_v40 = vpop.permute.xlu0 %2707  ;;  %v2727_v29 = vadd.f32 %v2722_v6, %v6074_v33  ;;  %v3221_v50 = vsel %vm392_vm2, %v3219_v52, %v3220_v60 }
 0x46e   :  { %v2714_v15 = vadd.f32 %v2708_v40, %v6046_v34  ;;  %v3352_v40 = vstv %s3676_s22 }
 0x46f   :  { %v3353_v33 = vmul.f32 %v3352_v40, %v5744_v0 }
 0x470   :  { %v2795_v11 = vadd.f32 %v6628_v53, %v2714_v15  ;;  %v6629_v53 = vrot.slane %v5729_v14, 1 }
 0x472   :  { %3203 = vrot.lane.b32.xlu1 %v3200_v8, %s3805_s8  ;;  %v3373_v8 = vmul.f32 %v3372_v54, %v5744_v0 }
 0x473   :  { %3205 = vrot.lane.b32.xlu2 %v3199_v3, %s3805_s8  ;;  %3201 = vrot.lane.b32.xlu0 %v3198_v30, %s3805_s8 }
 0x474   :  { %v2745_v56 = vpop.permute.xlu1 %2744 }
 0x475   :  { %v2871_v19 = vpop.permute.xlu2 %2870  ;;  %v2749_v34 = vadd.f32 %v2745_v56, %v2674_v57  ;;  %v2743_v31 = vpop.permute.xlu0 %2742 }
 0x476   :  { %v6117_v9 = vadd.f32 %v2871_v19, %v6068_v5  ;;  %v2748_v26 = vadd.f32 %v2743_v31, %v6071_v55  ;;  %v2815_v5 = vadd.f32 %v2810_v12, %v2727_v29 }
 0x477   :  { %v2833_v63 = vadd.f32 %v5756_v17, %v2749_v34 }
 0x478   :  { %v2832_v49 = vadd.f32 %v5805_v4, %v2748_v26  ;;  %v6132_v6 = vadd.f32 %v5832_v35, %v2815_v5  ;;  %v3354_v35 = vmul.f32 %v3352_v40, %v5741_v1 }
 0x47a   :  { %3224 = vrot.lane.b32.xlu1 %v3221_v50, %s3806_s16 }
 0x47b   :  { %3226 = vrot.lane.b32.xlu2 %v3220_v60, %s3806_s16  ;;  %3222 = vrot.lane.b32.xlu0 %v3219_v52, %s3806_s16  ;;  %v3375_v52 = vmul.f32 %v3372_v54, %v5580_v18  ;;  %v3338_v60 = vstv %s3675_s26 }
 0x47c   :  { %v2768_v62 = vpop.permute.xlu1 %2767 }
 0x47d   :  { %v2906_v57 = vpop.permute.xlu2 %2905  ;;  %v2774_v48 = vadd.f32 %v2768_v62, %v2694_v22  ;;  %v2766_v23 = vpop.permute.xlu0 %2765 }
 0x47e   :  { %v2910_v55 = vadd.f32 %v2906_v57, %v2833_v63  ;;  %v2773_v17 = vadd.f32 %v2766_v23, %v6039_v46 }
 0x480   :  { %v2853_v4 = vadd.f32 %v2846_v42, %v2773_v17  ;;  %v3355_v42 = vmul.f32 %v3352_v40, %v5580_v18  ;;  %v2987_v30 = vadd.f32 %v5855_v51, %v2910_v55  ;;  %v3340_v18 = vmul.f32 %v3338_v60, %v5741_v1 }
 0x482   :  { %3182 = vrot.lane.b32.xlu1 %v5773_v10, %s3805_s8 }
 0x483   :  { %3359 = vrot.lane.b32.xlu2 %v3353_v33, %s3805_s8  ;;  %3180 = vrot.lane.b32.xlu0 %v5776_v59, %s3805_s8 }
 0x484   :  { %v2844_v12 = vpop.permute.xlu1 %2843 }
 0x485   :  { %v2924_v22 = vpop.permute.xlu2 %2923  ;;  %v2852_v32 = vadd.f32 %v2844_v12, %v6087_v7  ;;  %v2812_v46 = vpop.permute.xlu0 %2811 }
 0x486   :  { %v2816_v16 = vadd.f32 %v2812_v46, %v6076_v43 }
 0x488   :  { %v2896_v15 = vadd.f32 %v5822_v24, %v2816_v16 }
 0x48a   :  { %3363 = vrot.lane.b32.xlu1 %v3355_v42, %s3805_s8 }
 0x48b   :  { %3268 = vrot.lane.b32.xlu2 %v5787_v20, %s3806_s16  ;;  %3361 = vrot.lane.b32.xlu0 %v3354_v35, %s3805_s8 }
 0x48c   :  { %v2869_v10 = vpop.permute.xlu1 %2868 }
 0x48d   :  { %v2944_v59 = vpop.permute.xlu2 %2943  ;;  %v2877_v7 = vadd.f32 %v2869_v10, %v2793_v2  ;;  %v2848_v45 = vpop.permute.xlu0 %2847 }
 0x48e   :  { %v2854_v3 = vadd.f32 %v2848_v45, %v2774_v48 }
 0x490   :  { %v2930_v43 = vadd.f32 %v2924_v22, %v2854_v3 }
 0x492   :  { %3379 = vrot.lane.b32.xlu1 %v3373_v8, %s3805_s8  ;;  %v3006_v26 = vadd.f32 %v6629_v53, %v2930_v43 }
 0x493   :  { %3381 = vrot.lane.b32.xlu2 %v3374_v13, %s3805_s8  ;;  %3270 = vrot.lane.b32.xlu0 %v5790_v21, %s3806_s16 }
 0x494   :  { %v2904_v20 = vpop.permute.xlu1 %2903 }
 0x495   :  { %v3126_v24 = vpop.permute.xlu2 %3125  ;;  %v2909_v2 = vadd.f32 %v2904_v20, %v2832_v49  ;;  %v2873_v56 = vpop.permute.xlu0 %2872 }
 0x496   :  { %v2879_v19 = vadd.f32 %v2873_v56, %v2795_v11  ;;  %v3339_v11 = vmul.f32 %v3338_v60, %v5744_v0  ;;  %v3140_v60 = vstv %s3663_s30 }
 0x497   :  { %v2986_v5 = vadd.f32 %v5863_v44, %v2909_v2 }
 0x498   :  { %v2950_v0 = vadd.f32 %v2944_v59, %v2879_v19 }
 0x49a   :  { %3439 = vrot.lane.b32.xlu1 %v5808_v36, %s3806_s16  ;;  %v6630_v36 = vrot.slane %v5676_v61, 1  ;;  %v3162_v61 = vstv %s3666_s27 }
 0x49b   :  { %3441 = vrot.lane.b32.xlu2 %v5813_v27, %s3806_s16  ;;  %3383 = vrot.lane.b32.xlu0 %v3375_v52, %s3805_s8  ;;  %v6631_v52 = vld [vmem:[#allocation41_spill] sm:$0xff] }
 0x49c   :  { %v2922_v51 = vpop.permute.xlu1 %2921 }
 0x49d   :  { %v3250_v34 = vpop.permute.xlu2 %3249  ;;  %v2929_v31 = vadd.f32 %v2922_v51, %v2853_v4  ;;  %v2920_v21 = vpop.permute.xlu0 %2919 }
 0x49e   :  { %v2928_v63 = vadd.f32 %v2920_v21, %v2852_v32  ;;  %v3154_v21 = vstv %s3665_s29 }
 0x49f   :  { %v3005_v44 = vadd.f32 %v5872_v38, %v2929_v31 }
 0x4a0   :  { %v3004_v32 = vadd.f32 %v5880_v47, %v2928_v63  ;;  %v3157_v63 = vmul.f32 %v3154_v21, %v5571_v39 }
 0x4a2   :  { %3343 = vrot.lane.b32.xlu1 %v3339_v11, %s3805_s8  ;;  %v3142_v11 = vmul.f32 %v3140_v60, %v5693_v58 }
 0x4a3   :  { %3345 = vrot.lane.b32.xlu2 %v3340_v18, %s3805_s8  ;;  %3443 = vrot.lane.b32.xlu0 %v6630_v36, %s3806_s16 }
 0x4a4   :  { %v2942_v27 = vpop.permute.xlu1 %2941 }
 0x4a5   :  { %v3398_v29 = vpop.permute.xlu2 %3397  ;;  %v2949_v49 = vadd.f32 %v2942_v27, %v6117_v9  ;;  %v2940_v50 = vpop.permute.xlu0 %2939  ;;  %v3163_v9 = vmul.f32 %v3162_v61, %v5703_v37  ;;  %v6632_v27 = vld [vmem:[#allocation22_spill] sm:$0xff] }
 0x4a6   :  { %v2948_v14 = vadd.f32 %v2940_v50, %v2877_v7 }
 0x4ac   :  { %v2966_v62 = vpop.permute.xlu1 %2965 }
 0x4ad   :  { %v3019_v1 = vpop.permute.xlu2 %3018  ;;  %v2970_v57 = vadd.f32 %v2966_v62, %v2896_v15  ;;  %v2964_v55 = vpop.permute.xlu0 %2963 }
 0x4ae   :  { %v6172_v48 = vadd.f32 %v3019_v1, %v2949_v49  ;;  %v2969_v23 = vadd.f32 %v2964_v55, %v6132_v6  ;;  %v3164_v6 = vmul.f32 %v3162_v61, %v5693_v58 }
 0x4af   :  { %v3044_v17 = vadd.f32 %v5844_v25, %v2970_v57  ;;  %v3146_v25 = vstv %s3664_s28 }
 0x4b0   :  { %v3043_v40 = vadd.f32 %v5841_v41, %v2969_v23  ;;  %v3149_v45 = vmul.f32 %v3146_v25, %v5571_v39  ;;  %v3148_v62 = vmul.f32 %v3146_v25, %v5693_v58  ;;  %v3147_v39 = vmul.f32 %v3146_v25, %v5703_v37 }
 0x4b2   :  { %v3131_v33 = vadd.f32 %v3126_v24, %v3043_v40 }
 0x4b4   :  { %v3248_v4 = vpop.permute.xlu1 %3247  ;;  %v3165_v12 = vadd.f32 %v3163_v9, %v3131_v33 }
 0x4b5   :  { %v3061_v22 = vpop.permute.xlu2 %3060  ;;  %v3128_v16 = vpop.permute.xlu0 %3127 }
 0x4b6   :  { %v3065_v46 = vadd.f32 %v3061_v22, %v2987_v30  ;;  %v3132_v42 = vadd.f32 %v3128_v16, %v3044_v17  ;;  %v3253_v10 = vadd.f32 %v3248_v4, %v3165_v12  ;;  %v6633_v17 = vrot.slane %v5890_v28, 7 }
 0x4b7   :  { %v3156_v4 = vmul.f32 %v3154_v21, %v5693_v58  ;;  %v3155_v12 = vmul.f32 %v3154_v21, %v5703_v37 }
 0x4b8   :  { %v3166_v35 = vadd.f32 %v3164_v6, %v3132_v42  ;;  %v6190_v36 = vadd.f32 %v3142_v11, %v3065_v46 }
 0x4ba   :  { %v3254_v43 = vadd.f32 %v3250_v34, %v3166_v35  ;;  %v6634_v35 = vld [vmem:[#allocation27_spill] sm:$0xff] }
 0x4bc   :  { %v3332_v41 = vpop.permute.xlu1 %3331 }
 0x4bd   :  { %v3080_v59 = vpop.permute.xlu2 %3079  ;;  %v3330_v7 = vpop.permute.xlu0 %3329  ;;  %v3336_v47 = vadd.f32 %v3332_v41, %v3254_v43  ;;  %v6635_v41 = vld [vmem:[#allocation24_spill] sm:$0xff]  ;;  %v6639_v43 = vld [vmem:[#allocation23_spill] sm:$0xff] }
 0x4be   :  { %v3086_v15 = vadd.f32 %v3080_v59, %v3006_v26  ;;  %v3335_v38 = vadd.f32 %v3330_v7, %v3253_v10  ;;  %v6636_v28 = vrot.slane %v6635_v41, 7 }
 0x4c0   :  { %v3152_v3 = vadd.f32 %v3149_v45, %v3086_v15  ;;  %v3403_v54 = vadd.f32 %v3398_v29, %v3335_v38  ;;  %v3141_v29 = vmul.f32 %v3140_v60, %v5703_v37  ;;  %v6637_v38 = vld [vmem:[#allocation25_spill] sm:$0xff]  ;;  %v6638_v37 = vld [vmem:[#allocation26_spill] sm:$0xff] }
 0x4c2   :  { %v3465_v8 = vrot.slane %v3403_v54, 6 }
 0x4c4   :  { %3468 = vrot.lane.b32.xlu0 %v3465_v8, %s3805_s8  ;;  %v3017_v13 = vpop.permute.xlu1 %3016 }
 0x4c5   :  { %v3025_v30 = vadd.f32 %v3017_v13, %v2948_v14  ;;  %v3400_v20 = vpop.permute.xlu0 %3399  ;;  %v3105_v19 = vpop.permute.xlu2 %3104 }
 0x4c6   :  { %v3404_v24 = vadd.f32 %v3400_v20, %v3336_v47 }
 0x4c8   :  { %v3466_v2 = vrot.slane %v3404_v24, 6 }
 0x4ca   :  { %3472 = vrot.lane.b32.xlu2 %v3466_v2, %s3805_s8  ;;  %v3467_v56 = vsel %vm392_vm2, %v3465_v8, %v3466_v2  ;;  %v6640_v8 = vrot.slane %v6639_v43, 7 }
 0x4cb   :  { %3470 = vrot.lane.b32.xlu1 %v3467_v56, %s3805_s8 }
 0x4cc   :  { %3418 = vrot.lane.b32.xlu0 %v6631_v52, %s3806_s16  ;;  %v3059_v51 = vpop.permute.xlu1 %3058 }
 0x4cd   :  { %v3064_v34 = vadd.f32 %v3059_v51, %v2986_v5  ;;  %v3021_v31 = vpop.permute.xlu0 %3020  ;;  %v3206_v50 = vpop.permute.xlu2 %3205 }
 0x4ce   :  { %v3027_v53 = vadd.f32 %v3021_v31, %v2950_v0  ;;  %v3212_v55 = vadd.f32 %v3206_v50, %v3152_v3 }
 0x4cf   :  { %v3143_v0 = vadd.f32 %v3141_v29, %v3064_v34 }
 0x4d0   :  { %v3111_v26 = vadd.f32 %v3105_v19, %v3027_v53  ;;  %v3296_v40 = vadd.f32 %v6633_v17, %v3212_v55 }
 0x4d2   :  { %v3160_v18 = vadd.f32 %v3157_v63, %v3111_v26 }
 0x4d3   :  { %3420 = vrot.lane.b32.xlu1 %v6632_v27, %s3806_s16 }
 0x4d4   :  { %v3078_v49 = vpop.permute.xlu1 %3077 }
 0x4d5   :  { %v3085_v14 = vadd.f32 %v3078_v49, %v3005_v44  ;;  %v3076_v5 = vpop.permute.xlu0 %3075  ;;  %v3227_v10 = vpop.permute.xlu2 %3226 }
 0x4d6   :  { %v3084_v1 = vadd.f32 %v3076_v5, %v3004_v32  ;;  %v3233_v15 = vadd.f32 %v3227_v10, %v3160_v18 }
 0x4d7   :  { %v3151_v57 = vadd.f32 %v3148_v62, %v3085_v14 }
 0x4d8   :  { %v3150_v23 = vadd.f32 %v3147_v39, %v3084_v1  ;;  %v3315_v54 = vadd.f32 %v6638_v37, %v3233_v15 }
 0x4dc   :  { %v3103_v61 = vpop.permute.xlu1 %3102 }
 0x4dd   :  { %v3110_v9 = vadd.f32 %v3103_v61, %v6172_v48  ;;  %v3101_v33 = vpop.permute.xlu0 %3100  ;;  %v3360_v20 = vpop.permute.xlu2 %3359 }
 0x4de   :  { %v3109_v44 = vadd.f32 %v3101_v33, %v3025_v30 }
 0x4df   :  { %v3159_v22 = vadd.f32 %v3156_v4, %v3110_v9 }
 0x4e0   :  { %v3158_v46 = vadd.f32 %v3155_v12, %v3109_v44 }
 0x4e4   :  { %v3204_v32 = vpop.permute.xlu1 %3203 }
 0x4e5   :  { %v3211_v16 = vadd.f32 %v3204_v32, %v3151_v57  ;;  %v3202_v6 = vpop.permute.xlu0 %3201  ;;  %v3269_v56 = vpop.permute.xlu2 %3268 }
 0x4e6   :  { %v3210_v42 = vadd.f32 %v3202_v6, %v3150_v23 }
 0x4e7   :  { %v3295_v25 = vadd.f32 %v6634_v35, %v3211_v16 }
 0x4e8   :  { %v3294_v59 = vadd.f32 %v6636_v28, %v3210_v42 }
 0x4ea   :  { %v3368_v60 = vadd.f32 %v3360_v20, %v3294_v59 }
 0x4ec   :  { %v3225_v48 = vpop.permute.xlu1 %3224 }
 0x4ed   :  { %v3232_v7 = vadd.f32 %v3225_v48, %v3159_v22  ;;  %v3223_v45 = vpop.permute.xlu0 %3222  ;;  %v3382_v51 = vpop.permute.xlu2 %3381 }
 0x4ee   :  { %v3231_v58 = vadd.f32 %v3223_v45, %v3158_v46 }
 0x4ef   :  { %v3314_v3 = vadd.f32 %v6637_v38, %v3232_v7 }
 0x4f0   :  { %v3313_v47 = vadd.f32 %v6640_v8, %v3231_v58 }
 0x4f1   :  { %v3389_v9 = vadd.f32 %v3382_v51, %v3314_v3  ;;  %v3813_v3 = vmov 0.0  }
 0x4f4   :  { %v3183_v30 = vpop.permute.xlu1 %3182 }
 0x4f5   :  { %v3181_v13 = vpop.permute.xlu0 %3180  ;;  %v3442_v26 = vpop.permute.xlu2 %3441  ;;  %v3187_v12 = vadd.f32 %v3183_v30, %v6190_v36 }
 0x4f6   :  { %v3186_v57 = vadd.f32 %v3181_v13, %v3143_v0  ;;  %v3493_v0 = vstv %s6228_s3  ;;  %s3814_s3 = smov [#allocation11]  }
 0x4f7   :  { %s3514_s4 = sshll.u32 %s3814_s3, 4  ;;  %s3515_s4 = int_to_ptr.vmem [resolvable:$true] %s3514_s4 }
 0x4f8   :  { %v3274_v17 = vadd.f32 %v3269_v56, %v3186_v57 }
 0x4fc   :  { %v3364_v2 = vpop.permute.xlu1 %3363 }
 0x4fd   :  { %v3362_v24 = vpop.permute.xlu0 %3361  ;;  %v3370_v18 = vadd.f32 %v3364_v2, %v3296_v40  ;;  %v3346_v62 = vpop.permute.xlu2 %3345 }
 0x4fe   :  { %v3369_v21 = vadd.f32 %v3362_v24, %v3295_v25 }
 0x500   :  { %v3449_v63 = vadd.f32 %v3442_v26, %v3369_v21 }
 0x502   :  { %v3455_v29 = vrot.slane %v3449_v63, 1 }
 0x504   :  { %v3380_v52 = vpop.permute.xlu1 %3379 }
 0x505   :  { %v3271_v19 = vpop.permute.xlu0 %3270  ;;  %v3388_v23 = vadd.f32 %v3380_v52, %v3313_v47 }
 0x506   :  { %v3275_v16 = vadd.f32 %v3271_v19, %v3187_v12 }
 0x508   :  { %v3350_v59 = vadd.f32 %v3346_v62, %v3275_v16 }
 0x50c   :  { %v3440_v31 = vpop.permute.xlu1 %3439 }
 0x50d   :  { %v3384_v34 = vpop.permute.xlu0 %3383  ;;  %v3448_v53 = vadd.f32 %v3440_v31, %v3368_v60 }
 0x50e   :  { %v3390_v61 = vadd.f32 %v3384_v34, %v3315_v54 }
 0x50f   :  { %v3454_v27 = vrot.slane %v3448_v53, 1 }
 0x511   :  { %v3456_v50 = vsel %vm241_vm1, %v3454_v27, %v3455_v29 }
 0x514   :  { %v3344_v1 = vpop.permute.xlu1 %3343 }
 0x515   :  { %v3444_v11 = vpop.permute.xlu0 %3443  ;;  %v3349_v40 = vadd.f32 %v3344_v1, %v3274_v17 }
 0x516   :  { %v3450_v49 = vadd.f32 %v3444_v11, %v3370_v18 }
 0x518   :  { %v3457_v14 = vrot.slane %v3450_v49, 1 }
 0x51a   :  { %v3458_v5 = vsel %vm241_vm1, %v3455_v29, %v3457_v14 }
 0x524   :  { %v3473_v55 = vpop.permute.xlu2 %3472 }
 0x525   :  { %v3479_v33 = vadd.f32 %v3473_v55, %v3390_v61 }
 0x527   :  { %v3486_v6 = vrot.slane %v3479_v33, 2 }
 0x536   :  { %v3469_v39 = vpop.permute.xlu0 %3468 }
 0x537   :  { %v3477_v4 = vadd.f32 %v3469_v39, %v3388_v23 }
 0x539   :  { %v3483_v42 = vrot.slane %v3477_v4, 2 }
 0x53d   :  { %v3471_v44 = vpop.permute.xlu1 %3470 }
 0x53e   :  { %v3478_v22 = vadd.f32 %v3471_v44, %v3389_v9  ;;  %v3419_v46 = vpop.permute.xlu0 %3418 }
 0x53f   :  { %v3424_v32 = vadd.f32 %v3419_v46, %v3349_v40 }
 0x540   :  { %v3484_v35 = vrot.slane %v3478_v22, 2 }
 0x541   :  { %v3461_v25 = vadd.f32 %v3456_v50, %v3424_v32 }
 0x542   :  { %v3485_v10 = vsel %vm443_vm3, %v3483_v42, %v3484_v35  ;;  %v3487_v41 = vsel %vm443_vm3, %v3484_v35, %v3486_v6 }
 0x543   :  { %v3490_v28 = vadd.f32 %v3485_v10, %v3461_v25 }
 0x545   :  { %v3494_v15 = vadd.f32 %v3493_v0, %v3490_v28  ;;  %v3421_v36 = vpop.permute.xlu1 %3420 }
 0x546   :  { %v3425_v48 = vadd.f32 %v3421_v36, %v3350_v59 }
 0x547   :  { %3498 = vrot.lane.b32.xlu2 %v3494_v15, %s3807_s24 }
 0x548   :  { %v3462_v7 = vadd.f32 %v3458_v5, %v3425_v48 }
 0x54a   :  { %v3491_v45 = vadd.f32 %v3487_v41, %v3462_v7 }
 0x54c   :  { %v3495_v58 = vadd.f32 %v3493_v0, %v3491_v45 }
 0x54e   :  { %3500 = vrot.lane.b32.xlu0 %v3495_v58, %s3807_s24 }
 0x5a1   :  { %v3499_v38 = vpop.permute.xlu2 %3498 }
 0x5a2   :  { %3505 = vst.msk [vmem:[#allocation11] sm:$0xff] %vm3504_vm7, %v3499_v38 }
 0x5a3   :  { %3508 = vst.msk [vmem:[#allocation11] sm:$0xff] %vm3507_vm8, %v3813_v3 }
 0x5c0   :  { %v3501_v37 = vpop.permute.xlu0 %3500 }
 0x5c1   :  { %3506 = vst.msk [vmem:[#allocation11 + $0x8] sm:$0xff] %vm3504_vm7, %v3501_v37 }
 0x5c2   :  { %3509 = vst.msk [vmem:[#allocation11 + $0x8] sm:$0xff] %vm3507_vm8, %v3813_v3 }
 0x5c3   :  { %3522 = dma.vmem_to_hbm [thread:$0]  %s3515_s4, 256, %s3517_s15, [#allocation6], %s3803_s6, %s3803_s6, %s3804_s0  }
 0x5c4   :  { %3798 = dma.done.wait [#allocation6], 256  }
 0x5c5   :  { %3799 = vsyncadd [#allocation6], 4294967040 }
 0x5c6   :  { %3527 = vsyncpa [#allocation5], 1 }
 0x5c7   :  { %3528 = vsyncpa [#allocation6], 1 }
 0x5c8   :  { %3529 = vsyncpa [#allocation7], 1 }
 0x5c9   :  { %3530 = vsyncpa [#allocation9], 1 }

</bundles_post_ra>
